<compile_context>
chip_gen: v6e
topology: v6e:2x2x1
jax: 0.10.0
libtpu: 0.0.40
codegen_flags: <defaults>
</compile_context>

<pallas_src>
import math
import functools

import jax
import jax.numpy as jnp
from jax import lax
from jax.experimental import pallas as pl
from jax.experimental.pallas import tpu as pltpu

# Keep reference-path XLA matmuls at full f32 precision so the numerical
# comparison against the Pallas kernels (f32 MXU accumulation) is tight.
jax.config.update("jax_default_matmul_precision", "highest")

_MiB = 1024 * 1024


def _round_up(x, m):
    return ((x + m - 1) // m) * m


def _vmem_limit(need_bytes, floor=32 * _MiB, cap=64 * _MiB):
    """Explicit scoped-VMEM request: >= default on all gens, <= v7x physical."""
    return int(min(cap, max(floor, need_bytes + 4 * _MiB)))


# --------------------------------------------------------------------------
# Generic fused matmul + bias Pallas kernel (hoisted input projection of every
# LSTM layer, the hoisted output projection, and the decoder).
# Grid: (M blocks, N blocks, K blocks); f32 accumulator; bias added once at
# the last K step.  N tiles are multiples of 128 -> lane-dense output stores.
# --------------------------------------------------------------------------
def _matmul_bias_kernel(x_ref, w_ref, b_ref, o_ref, acc_ref):
    k = pl.program_id(2)

    @pl.when(k == 0)
    def _():
        acc_ref[...] = jnp.zeros_like(acc_ref)

    acc_ref[...] += jnp.dot(x_ref[...], w_ref[...],
                            preferred_element_type=jnp.float32)

    @pl.when(k == pl.num_programs(2) - 1)
    def _():
        o_ref[...] = (acc_ref[...] + b_ref[...]).astype(o_ref.dtype)


def matmul_bias_pallas(x2d, w, b, *, out_dtype=jnp.float32,
                       tm_max=512, tn_max=512, tk_max=2048):
    """Compute x2d @ w + b.  x2d: [M, K], w: [K, N], b: [N]."""
    M, K = x2d.shape
    K2, N = w.shape
    assert K == K2

    # Row blocks: multiple of 8 sublanes; col blocks: multiple of 128 lanes.
    Mp = _round_up(M, 8)
    tm = min(Mp, tm_max)
    Mp = _round_up(Mp, tm)

    Np = _round_up(N, 128)
    tn = min(Np, tn_max)
    Np = _round_up(Np, tn)

    # K tiling only when K is too large to keep a (K, tn) strip resident.
    if K > tk_max:
        tk = tk_max
        Kp = _round_up(K, tk)
    else:
        tk = K
        Kp = K

    x2d = jnp.pad(x2d, ((0, Mp - M), (0, Kp - K)))
    w = jnp.pad(w, ((0, Kp - K), (0, Np - N)))
    b = jnp.pad(b.astype(jnp.float32), (0, Np - N)).reshape(1, Np)

    in_bytes = jnp.dtype(x2d.dtype).itemsize
    block_bytes = ((tm * tk + tk * tn) * in_bytes
                   + tn * 4
                   + tm * tn * jnp.dtype(out_dtype).itemsize)
    vmem_limit = _vmem_limit(2 * block_bytes + tm * tn * 4)

    out = pl.pallas_call(
        _matmul_bias_kernel,
        out_shape=jax.ShapeDtypeStruct((Mp, Np), out_dtype),
        grid_spec=pltpu.PrefetchScalarGridSpec(
            num_scalar_prefetch=0,
            grid=(Mp // tm, Np // tn, Kp // tk),
            in_specs=[
                pl.BlockSpec((tm, tk), lambda i, j, k: (i, k)),
                pl.BlockSpec((tk, tn), lambda i, j, k: (k, j)),
                pl.BlockSpec((1, tn), lambda i, j, k: (0, j)),
            ],
            out_specs=pl.BlockSpec((tm, tn), lambda i, j, k: (i, j)),
            scratch_shapes=[pltpu.VMEM((tm, tn), jnp.float32)],
        ),
        compiler_params=pltpu.CompilerParams(
            dimension_semantics=("parallel", "parallel", "arbitrary"),
            vmem_limit_bytes=vmem_limit),
    )(x2d, w, b)
    return out[:M, :N]


# --------------------------------------------------------------------------
# Recurrent TFLSTM kernel: T_BLK timesteps per grid step, single MXU matmul
# on the serial path (projection folded into Wcomb; carries m, not h).
# Inputs:  gx    [T_BLK, bsz_c, 4H]  (precomputed x@Wx^T + bias, fb folded)
#          Wcomb [H, 4H]  (= proj^T @ Wh^T), peephole diags [1, H] each
# Outputs: m_seq [T_BLK, bsz_c, H] (per-step, pre-projection), cT [bsz_c, H]
# State (m, c) lives in VMEM scratch; cT is written once on the last block.
# --------------------------------------------------------------------------
def _lstm_recurrence_kernel(gx_ref, wc_ref, wf_ref, wi_ref, wo_ref,
                            mseq_ref, c_ref, m_st, c_st,
                            *, hidden_size, t_blk, unroll):
    s = pl.program_id(1)

    @pl.when(s == 0)
    def _():
        m_st[...] = jnp.zeros_like(m_st)
        c_st[...] = jnp.zeros_like(c_st)

    H = hidden_size
    wc = wc_ref[...]          # [H, 4H]
    w_f = wf_ref[...]         # [1, H] (broadcast over batch)
    w_i = wi_ref[...]
    w_o = wo_ref[...]

    def step(t, carry):
        m_prev, c_prev = carry
        # Single recurrent matmul per step; x-part already folded into gx and
        # the output projection is hoisted out of the loop entirely.
        gates = gx_ref[t].astype(jnp.float32) + jnp.dot(
            m_prev.astype(wc.dtype), wc, preferred_element_type=jnp.float32)
        gi = gates[:, 0:H]
        gj = gates[:, H:2 * H]
        gf = gates[:, 2 * H:3 * H]      # forget_bias already folded into bias
        go = gates[:, 3 * H:4 * H]

        c_new = (jax.nn.sigmoid(gf + w_f * c_prev) * c_prev
                 + jax.nn.sigmoid(gi + w_i * c_prev) * jnp.tanh(gj))
        m_new = jax.nn.sigmoid(go + w_o * c_new) * jnp.tanh(c_new)

        mseq_ref[t] = m_new.astype(mseq_ref.dtype)
        return m_new, c_new

    m_fin, c_fin = lax.fori_loop(0, t_blk, step, (m_st[...], c_st[...]),
                                 unroll=unroll)
    m_st[...] = m_fin
    c_st[...] = c_fin

    @pl.when(s == pl.num_programs(1) - 1)
    def _():
        c_ref[...] = c_fin.astype(c_ref.dtype)


def _pick_t_blk(seq, bsz_c, hidden_size, itemsize, budget=8 * _MiB):
    """Largest time-block whose double-buffered gx/m blocks fit the budget."""
    for cand in (64, 32, 16, 8, 4, 2):
        if seq % cand:
            continue
        need = 2 * cand * bsz_c * (4 * hidden_size + hidden_size) * itemsize
        if need <= budget:
            return cand
    return 1


def tflstm_layer(x_tm, params, *, hidden_size, proj_size, forget_bias,
                 compute_dtype=jnp.float32):
    """One TFLSTMCell over a full time-major sequence.

    x_tm: [seq, bsz, in_size] f32.
    Returns (out_seq [seq, bsz, P], h_final [bsz, P], c_final [bsz, H]).
    """
    seq, bsz, in_size = x_tm.shape
    H, P = hidden_size, proj_size
    itemsize = jnp.dtype(compute_dtype).itemsize

    weight = params["weight"]                        # [4H, in+P]
    wx_T = jnp.transpose(weight[:, :in_size])        # [in, 4H]
    wh_T = jnp.transpose(weight[:, in_size:])        # [P, 4H]
    pw_T = jnp.transpose(params["proj_weight"])      # [H, P]
    # Fold the projection into the recurrent weights: h_prev @ Wh^T ==
    # m_prev @ (proj^T @ Wh^T) -> one matmul on the serial path.
    w_comb = jnp.dot(pw_T, wh_T)                     # [H, 4H]
    # Fold forget_bias into the f-gate bias columns at trace time.
    bias = params["bias"].at[2 * H:3 * H].add(forget_bias)
    wf = params["w_f_diag"].reshape(1, H).astype(jnp.float32)
    wi = params["w_i_diag"].reshape(1, H).astype(jnp.float32)
    wo = params["w_o_diag"].reshape(1, H).astype(jnp.float32)

    # Hoisted input projection: one big, parallel MXU matmul.
    gx = matmul_bias_pallas(
        x_tm.reshape(seq * bsz, in_size).astype(compute_dtype),
        wx_T.astype(compute_dtype), bias, out_dtype=compute_dtype)
    gx = gx.reshape(seq, bsz, 4 * H)

    # Optional batch split (2nd TensorCore on v7x); degenerates to 1 when the
    # per-chunk batch would violate the 8-sublane block rule (e.g. bsz=2).
    nb = 2 if bsz % 16 == 0 else 1
    bsz_c = bsz // nb

    # VMEM-budget-aware time-block size and capped unroll (avoid vreg spills).
    t_blk = _pick_t_blk(seq, bsz_c, H, itemsize)
    unroll = min(t_blk, 8)

    kernel = functools.partial(_lstm_recurrence_kernel,
                               hidden_size=H, t_blk=t_blk, unroll=unroll)

    grid_spec = pltpu.PrefetchScalarGridSpec(
        num_scalar_prefetch=0,
        grid=(nb, seq // t_blk),
        in_specs=[
            pl.BlockSpec((t_blk, bsz_c, 4 * H), lambda b, s: (s, b, 0)),  # gx
            pl.BlockSpec((H, 4 * H), lambda b, s: (0, 0)),                # Wcomb
            pl.BlockSpec((1, H), lambda b, s: (0, 0)),                    # w_f
            pl.BlockSpec((1, H), lambda b, s: (0, 0)),                    # w_i
            pl.BlockSpec((1, H), lambda b, s: (0, 0)),                    # w_o
        ],
        out_specs=[
            pl.BlockSpec((t_blk, bsz_c, H), lambda b, s: (s, b, 0)),      # m seq
            pl.BlockSpec((bsz_c, H), lambda b, s: (b, 0)),                # c final
        ],
        scratch_shapes=[
            pltpu.VMEM((bsz_c, H), jnp.float32),   # m carry (state)
            pltpu.VMEM((bsz_c, H), jnp.float32),   # c carry (state)
        ],
    )

    out_shapes = (
        jax.ShapeDtypeStruct((seq, bsz, H), compute_dtype),  # m sequence
        jax.ShapeDtypeStruct((bsz, H), jnp.float32),         # final c
    )

    vmem_limit = _vmem_limit(
        2 * t_blk * bsz_c * (4 * H + H) * itemsize     # gx + m blocks (dbl buf)
        + H * 4 * H * itemsize + 3 * H * 4             # resident weights
        + (bsz_c * H) * (4 + 4 + 4 + 4))               # c out + scratch

    m_seq, c_final = pl.pallas_call(
        kernel,
        out_shape=out_shapes,
        grid_spec=grid_spec,
        compiler_params=pltpu.CompilerParams(
            dimension_semantics=("parallel", "arbitrary"),  # batch ∥, time seq
            vmem_limit_bytes=vmem_limit),
    )(gx, w_comb.astype(compute_dtype), wf, wi, wo)

    # Hoisted output projection: bulk matmul off the serial critical path.
    out_seq = matmul_bias_pallas(
        m_seq.reshape(seq * bsz, H),
        pw_T.astype(compute_dtype),
        jnp.zeros((P,), jnp.float32),
        out_dtype=jnp.float32).reshape(seq, bsz, P)
    h_final = out_seq[-1]
    return out_seq, h_final, c_final


# --------------------------------------------------------------------------
# Full LM1B forward (inference): index_map gather -> embedding -> TFLSTM
# stack (batch_first=True) -> decoder.
# --------------------------------------------------------------------------
def lm1b_forward(tokens, params, *, hidden_size, proj_size, forget_bias=1.0,
                 compute_dtype=jnp.float32):
    """tokens: [bsz, seq] int32.  Returns (decoded [seq, bsz, vocab], hx)."""
    # TODO(synk): nn.Dropout layers omitted (eval-mode forward -> identity).
    mapped = params["index_map"][tokens]           # [bsz, seq]
    emb = params["embedding"][mapped]              # [bsz, seq, d]

    # TFLSTM iterates input[:, i] (batch_first=True) -> run time-major.
    x = jnp.transpose(emb, (1, 0, 2))              # [seq, bsz, d]
    hx = []
    for p in params["layers"]:
        out_seq, h_f, c_f = tflstm_layer(
            x, p, hidden_size=hidden_size, proj_size=proj_size,
            forget_bias=forget_bias, compute_dtype=compute_dtype)
        hx.append((h_f, c_f))
        x = out_seq

    # torch.stack(output, dim=batch_dim) with batch_first=True -> dim=0, i.e.
    # the output stays time-major [seq, bsz, P] (matches the reference code).
    output = x
    seq, bsz, P = output.shape
    dec = matmul_bias_pallas(
        output.reshape(seq * bsz, P).astype(compute_dtype),
        jnp.transpose(params["decoder_w"]).astype(compute_dtype),
        params["decoder_b"], out_dtype=jnp.float32)
    decoded = dec.reshape(seq, bsz, -1)
    return decoded, hx


# ---------------- deterministic parameter init --------------------------------
def init_lm1b_params(key, in_tokens, out_tokens, d, hidden_size, num_layers):
    proj_size = d
    stdv = 1.0 / math.sqrt(hidden_size)
    keys = jax.random.split(key, 4 + num_layers)
    u = lambda k, shape, s: jax.random.uniform(k, shape, jnp.float32, -s, s)
    params = {
        "index_map": jax.random.randint(keys[0], (out_tokens,), 0, in_tokens,
                                        dtype=jnp.int32),
        "embedding": u(keys[1], (in_tokens, d), 0.05),
        "decoder_w": u(keys[2], (out_tokens, d), 0.05),
        "decoder_b": u(keys[3], (out_tokens,), 0.05),
        "layers": [],
    }
    for i in range(num_layers):
        cell_in = d if i == 0 else proj_size
        ks = jax.random.split(keys[4 + i], 6)
        params["layers"].append({
            "weight": u(ks[0], (4 * hidden_size, cell_in + proj_size), stdv),
            "bias": u(ks[1], (4 * hidden_size,), stdv),
            "w_f_diag": u(ks[2], (hidden_size,), stdv),
            "w_i_diag": u(ks[3], (hidden_size,), stdv),
            "w_o_diag": u(ks[4], (hidden_size,), stdv),
            "proj_weight": u(ks[5], (proj_size, hidden_size), stdv),
        })
    return params


# ---------------- pure-JAX reference (mirrors the PyTorch code) ----------------
def _ref_lm1b(tokens, params, hidden_size, proj_size, forget_bias=1.0):
    mapped = params["index_map"][tokens]
    emb = params["embedding"][mapped]              # [bsz, seq, d]
    H, P = hidden_size, proj_size
    bsz, seq, _ = emb.shape
    hx = [(jnp.zeros((bsz, P), jnp.float32), jnp.zeros((bsz, H), jnp.float32))
          for _ in params["layers"]]
    outs = []
    for t in range(seq):
        x = emb[:, t]
        for j, p in enumerate(params["layers"]):
            h_prev, c_prev = hx[j]
            cat = jnp.concatenate([x, h_prev], axis=-1)
            g = cat @ p["weight"].T + p["bias"]
            gi, gj, gf, go = (g[:, :H], g[:, H:2*H], g[:, 2*H:3*H], g[:, 3*H:])
            c = (jax.nn.sigmoid(gf + p["w_f_diag"] * c_prev + forget_bias) * c_prev
                 + jax.nn.sigmoid(gi + p["w_i_diag"] * c_prev) * jnp.tanh(gj))
            m = jax.nn.sigmoid(go + p["w_o_diag"] * c) * jnp.tanh(c)
            h = m @ p["proj_weight"].T
            hx[j] = (h, c)
            x = h
        outs.append(x)
    output = jnp.stack(outs, axis=0)               # batch_first=True -> dim=0
    decoded = output @ params["decoder_w"].T + params["decoder_b"]
    return decoded, hx


if __name__ == "__main__":
    in_tokens, out_tokens = 40, 24
    d, nhid, nlayers = 16, 32, 2
    bsz, seq = 2, 8

    key = jax.random.PRNGKey(0)
    k_tok, k_par = jax.random.split(key)
    tokens = jax.random.randint(k_tok, (bsz, seq), 0, out_tokens,
                                dtype=jnp.int32)
    params = init_lm1b_params(k_par, in_tokens, out_tokens, d, nhid, nlayers)

    fwd = jax.jit(lm1b_forward,
                  static_argnames=("hidden_size", "proj_size", "forget_bias",
                                   "compute_dtype"))
    decoded, hidden = fwd(tokens, params, hidden_size=nhid, proj_size=d,
                          forget_bias=1.0)
    jax.block_until_ready((decoded, hidden))

    # Correctness against a pure-JAX mirror of the PyTorch semantics.
    ref_dec, ref_hx = _ref_lm1b(tokens, params, nhid, d, 1.0)
    assert decoded.shape == (seq, bsz, out_tokens)
    assert jnp.allclose(decoded, ref_dec, atol=1e-4, rtol=1e-4)
    for (h, c), (rh, rc) in zip(hidden, ref_hx):
        assert jnp.allclose(h, rh, atol=1e-4, rtol=1e-4)
        assert jnp.allclose(c, rc, atol=1e-4, rtol=1e-4)

    print("KERNEL_OK")
</pallas_src>

<mosaic_0001>
module attributes {stable_mosaic.version = 11 : i64} {
  func.func @_matmul_bias_kernel(%arg0: i32, %arg1: i32, %arg2: i32, %arg3: memref<16x16xf32, #tpu.memory_space<vmem>>, %arg4: memref<16x128xf32, #tpu.memory_space<vmem>>, %arg5: memref<1x128xf32, #tpu.memory_space<vmem>>, %arg6: memref<16x128xf32, #tpu.memory_space<vmem>>, %arg7: memref<16x128xf32, #tpu.memory_space<vmem>>) attributes {dimension_semantics = [#tpu.dimension_semantics<parallel>, #tpu.dimension_semantics<parallel>, #tpu.dimension_semantics<arbitrary>], iteration_bounds = array<i64: 1, 1, 1>, scalar_prefetch = 0 : i64, scratch_operands = 1 : i64, tpu.core_type = #tpu.core_type<tc>, window_params = [{transform_indices = @transform_0, window_bounds = array<i64: 16, 16>}, {transform_indices = @transform_1, window_bounds = array<i64: 16, 128>}, {transform_indices = @transform_2, window_bounds = array<i64: 1, 128>}, {transform_indices = @transform_3, window_bounds = array<i64: 16, 128>}]} {
    %c0_i32 = arith.constant 0 : i32
    %0 = arith.cmpi eq, %arg2, %c0_i32 : i32
    %1 = arith.extui %0 : i1 to i32
    %c0_i32_0 = arith.constant 0 : i32
    %2 = arith.cmpi ne, %1, %c0_i32_0 : i32
    scf.if %2 {
      %cst_10 = arith.constant 0.000000e+00 : f32
      %12 = vector.broadcast %cst_10 : f32 to vector<16x128xf32>
      %c0_11 = arith.constant 0 : index
      %c0_12 = arith.constant 0 : index
      %13 = vector.load %arg7[%c0_11, %c0_12] : memref<16x128xf32, #tpu.memory_space<vmem>>, vector<16x128xf32>
      tpu.vector_store %arg7[%c0_11, %c0_12], %12 {strides = array<i32>} : memref<16x128xf32, #tpu.memory_space<vmem>>, vector<16x128xf32>,
    } else {
    }
    %c0 = arith.constant 0 : index
    %c0_1 = arith.constant 0 : index
    %3 = vector.load %arg7[%c0, %c0_1] : memref<16x128xf32, #tpu.memory_space<vmem>>, vector<16x128xf32>
    %c0_2 = arith.constant 0 : index
    %c0_3 = arith.constant 0 : index
    %4 = vector.load %arg3[%c0_2, %c0_3] : memref<16x16xf32, #tpu.memory_space<vmem>>, vector<16x16xf32>
    %c0_4 = arith.constant 0 : index
    %c0_5 = arith.constant 0 : index
    %5 = vector.load %arg4[%c0_4, %c0_5] : memref<16x128xf32, #tpu.memory_space<vmem>>, vector<16x128xf32>
    %cst = arith.constant dense<0.000000e+00> : vector<16x128xf32>
    %6 = tpu.matmul %4, %5, %cst {dimension_numbers = #tpu.dot_dimension_numbers<[1], [0], [0], [1], [0, 0, 1, 1], [], []>, precision = #tpu.contract_precision<fp32>} : vector<16x16xf32>, vector<16x128xf32>, vector<16x128xf32> -> vector<16x128xf32>
    %7 = arith.addf %3, %6 : vector<16x128xf32>
    %c0_6 = arith.constant 0 : index
    %c0_7 = arith.constant 0 : index
    %8 = vector.load %arg7[%c0_6, %c0_7] : memref<16x128xf32, #tpu.memory_space<vmem>>, vector<16x128xf32>
    tpu.vector_store %arg7[%c0_6, %c0_7], %7 {strides = array<i32>} : memref<16x128xf32, #tpu.memory_space<vmem>>, vector<16x128xf32>,
    %c0_i32_8 = arith.constant 0 : i32
    %9 = arith.cmpi eq, %arg2, %c0_i32_8 : i32
    %10 = arith.extui %9 : i1 to i32
    %c0_i32_9 = arith.constant 0 : i32
    %11 = arith.cmpi ne, %10, %c0_i32_9 : i32
    scf.if %11 {
      %c0_10 = arith.constant 0 : index
      %c0_11 = arith.constant 0 : index
      %12 = vector.load %arg7[%c0_10, %c0_11] : memref<16x128xf32, #tpu.memory_space<vmem>>, vector<16x128xf32>
      %c0_12 = arith.constant 0 : index
      %c0_13 = arith.constant 0 : index
      %13 = vector.load %arg5[%c0_12, %c0_13] : memref<1x128xf32, #tpu.memory_space<vmem>>, vector<1x128xf32>
      %14 = vector.broadcast %13 : vector<1x128xf32> to vector<16x128xf32>
      %15 = arith.addf %12, %14 : vector<16x128xf32>
      %c0_14 = arith.constant 0 : index
      %c0_15 = arith.constant 0 : index
      %16 = vector.load %arg6[%c0_14, %c0_15] : memref<16x128xf32, #tpu.memory_space<vmem>>, vector<16x128xf32>
      tpu.vector_store %arg6[%c0_14, %c0_15], %15 {strides = array<i32>} : memref<16x128xf32, #tpu.memory_space<vmem>>, vector<16x128xf32>,
    } else {
    }
    return
  }
  func.func @transform_0(%arg0: i32, %arg1: i32, %arg2: i32) -> (i32, i32) {
    %c0_i32 = arith.constant 0 : i32
    return %arg0, %arg2 : i32, i32
  }
  func.func @transform_1(%arg0: i32, %arg1: i32, %arg2: i32) -> (i32, i32) {
    %c0_i32 = arith.constant 0 : i32
    return %arg2, %arg1 : i32, i32
  }
  func.func @transform_2(%arg0: i32, %arg1: i32, %arg2: i32) -> (i32, i32) {
    %c0_i32 = arith.constant 0 : i32
    %c0_i32_0 = arith.constant 0 : i32
    return %c0_i32, %arg1 : i32, i32
  }
  func.func @transform_3(%arg0: i32, %arg1: i32, %arg2: i32) -> (i32, i32) {
    %c0_i32 = arith.constant 0 : i32
    return %arg0, %arg1 : i32, i32
  }
}

module attributes {stable_mosaic.version = 11 : i64} {
  func.func @_lstm_recurrence_kernel(%arg0: i32, %arg1: i32, %arg2: memref<8x2x128xf32, #tpu.memory_space<vmem>>, %arg3: memref<32x128xf32, #tpu.memory_space<vmem>>, %arg4: memref<1x32xf32, #tpu.memory_space<vmem>>, %arg5: memref<1x32xf32, #tpu.memory_space<vmem>>, %arg6: memref<1x32xf32, #tpu.memory_space<vmem>>, %arg7: memref<8x2x32xf32, #tpu.memory_space<vmem>>, %arg8: memref<2x32xf32, #tpu.memory_space<vmem>>, %arg9: memref<2x32xf32, #tpu.memory_space<vmem>>, %arg10: memref<2x32xf32, #tpu.memory_space<vmem>>) attributes {dimension_semantics = [#tpu.dimension_semantics<parallel>, #tpu.dimension_semantics<arbitrary>], iteration_bounds = array<i64: 1, 1>, scalar_prefetch = 0 : i64, scratch_operands = 2 : i64, tpu.core_type = #tpu.core_type<tc>, window_params = [{transform_indices = @transform_0, window_bounds = array<i64: 8, 2, 128>}, {pipeline_mode = #tpu.pipeline_mode<synchronous>, transform_indices = @transform_1, window_bounds = array<i64: 32, 128>}, {pipeline_mode = #tpu.pipeline_mode<synchronous>, transform_indices = @transform_2, window_bounds = array<i64: 1, 32>}, {pipeline_mode = #tpu.pipeline_mode<synchronous>, transform_indices = @transform_3, window_bounds = array<i64: 1, 32>}, {pipeline_mode = #tpu.pipeline_mode<synchronous>, transform_indices = @transform_4, window_bounds = array<i64: 1, 32>}, {transform_indices = @transform_5, window_bounds = array<i64: 8, 2, 32>}, {transform_indices = @transform_6, window_bounds = array<i64: 2, 32>}]} {
    %c0_i32 = arith.constant 0 : i32
    %0 = arith.cmpi eq, %arg1, %c0_i32 : i32
    %1 = arith.extui %0 : i1 to i32
    %c0_i32_0 = arith.constant 0 : i32
    %2 = arith.cmpi ne, %1, %c0_i32_0 : i32
    scf.if %2 {
      %cst_82 = arith.constant 0.000000e+00 : f32
      %358 = vector.broadcast %cst_82 : f32 to vector<2x32xf32>
      %c0_83 = arith.constant 0 : index
      %c0_84 = arith.constant 0 : index
      %359 = vector.load %arg9[%c0_83, %c0_84] : memref<2x32xf32, #tpu.memory_space<vmem>>, vector<2x32xf32>
      tpu.vector_store %arg9[%c0_83, %c0_84], %358 {strides = array<i32>} : memref<2x32xf32, #tpu.memory_space<vmem>>, vector<2x32xf32>,
      %cst_85 = arith.constant 0.000000e+00 : f32
      %360 = vector.broadcast %cst_85 : f32 to vector<2x32xf32>
      %c0_86 = arith.constant 0 : index
      %c0_87 = arith.constant 0 : index
      %361 = vector.load %arg10[%c0_86, %c0_87] : memref<2x32xf32, #tpu.memory_space<vmem>>, vector<2x32xf32>
      tpu.vector_store %arg10[%c0_86, %c0_87], %360 {strides = array<i32>} : memref<2x32xf32, #tpu.memory_space<vmem>>, vector<2x32xf32>,
    } else {
    }
    %c0 = arith.constant 0 : index
    %c0_1 = arith.constant 0 : index
    %3 = vector.load %arg3[%c0, %c0_1] : memref<32x128xf32, #tpu.memory_space<vmem>>, vector<32x128xf32>
    %c0_2 = arith.constant 0 : index
    %c0_3 = arith.constant 0 : index
    %4 = vector.load %arg4[%c0_2, %c0_3] : memref<1x32xf32, #tpu.memory_space<vmem>>, vector<1x32xf32>
    %c0_4 = arith.constant 0 : index
    %c0_5 = arith.constant 0 : index
    %5 = vector.load %arg5[%c0_4, %c0_5] : memref<1x32xf32, #tpu.memory_space<vmem>>, vector<1x32xf32>
    %c0_6 = arith.constant 0 : index
    %c0_7 = arith.constant 0 : index
    %6 = vector.load %arg6[%c0_6, %c0_7] : memref<1x32xf32, #tpu.memory_space<vmem>>, vector<1x32xf32>
    %c0_8 = arith.constant 0 : index
    %c0_9 = arith.constant 0 : index
    %7 = vector.load %arg9[%c0_8, %c0_9] : memref<2x32xf32, #tpu.memory_space<vmem>>, vector<2x32xf32>
    %c0_10 = arith.constant 0 : index
    %c0_11 = arith.constant 0 : index
    %8 = vector.load %arg10[%c0_10, %c0_11] : memref<2x32xf32, #tpu.memory_space<vmem>>, vector<2x32xf32>
    %c0_i32_12 = arith.constant 0 : i32
    %9 = arith.index_cast %c0_i32_12 : i32 to index
    %c0_13 = arith.constant 0 : index
    %c0_14 = arith.constant 0 : index
    %10 = vector.load %arg2[%9, %c0_13, %c0_14] : memref<8x2x128xf32, #tpu.memory_space<vmem>>, vector<1x2x128xf32>
    %11 = vector.shape_cast %10 : vector<1x2x128xf32> to vector<2x128xf32>
    %cst = arith.constant dense<0.000000e+00> : vector<2x128xf32>
    %12 = tpu.matmul %7, %3, %cst {dimension_numbers = #tpu.dot_dimension_numbers<[1], [0], [0], [1], [0, 0, 1, 1], [], []>, precision = #tpu.contract_precision<fp32>} : vector<2x32xf32>, vector<32x128xf32>, vector<2x128xf32> -> vector<2x128xf32>
    %13 = arith.addf %11, %12 : vector<2x128xf32>
    %14 = vector.extract_strided_slice %13 {offsets = [0, 0], sizes = [2, 32], strides = [1, 1]} : vector<2x128xf32> to vector<2x32xf32>
    %15 = vector.extract_strided_slice %13 {offsets = [0, 32], sizes = [2, 32], strides = [1, 1]} : vector<2x128xf32> to vector<2x32xf32>
    %16 = vector.extract_strided_slice %13 {offsets = [0, 64], sizes = [2, 32], strides = [1, 1]} : vector<2x128xf32> to vector<2x32xf32>
    %17 = vector.extract_strided_slice %13 {offsets = [0, 96], sizes = [2, 32], strides = [1, 1]} : vector<2x128xf32> to vector<2x32xf32>
    %18 = vector.broadcast %4 : vector<1x32xf32> to vector<2x32xf32>
    %19 = arith.mulf %18, %8 : vector<2x32xf32>
    %20 = arith.addf %16, %19 : vector<2x32xf32>
    %21 = arith.negf %20 : vector<2x32xf32>
    %22 = math.exp %21 : vector<2x32xf32>
    %cst_15 = arith.constant 1.000000e+00 : f32
    %23 = vector.broadcast %cst_15 : f32 to vector<2x32xf32>
    %24 = arith.addf %23, %22 : vector<2x32xf32>
    %25 = arith.divf %23, %24 : vector<2x32xf32>
    %26 = arith.mulf %25, %8 : vector<2x32xf32>
    %27 = vector.broadcast %5 : vector<1x32xf32> to vector<2x32xf32>
    %28 = arith.mulf %27, %8 : vector<2x32xf32>
    %29 = arith.addf %14, %28 : vector<2x32xf32>
    %30 = arith.negf %29 : vector<2x32xf32>
    %31 = math.exp %30 : vector<2x32xf32>
    %cst_16 = arith.constant 1.000000e+00 : f32
    %32 = vector.broadcast %cst_16 : f32 to vector<2x32xf32>
    %33 = arith.addf %32, %31 : vector<2x32xf32>
    %34 = arith.divf %32, %33 : vector<2x32xf32>
    %35 = math.tanh %15 : vector<2x32xf32>
    %36 = arith.mulf %34, %35 : vector<2x32xf32>
    %37 = arith.addf %26, %36 : vector<2x32xf32>
    %38 = vector.broadcast %6 : vector<1x32xf32> to vector<2x32xf32>
    %39 = arith.mulf %38, %37 : vector<2x32xf32>
    %40 = arith.addf %17, %39 : vector<2x32xf32>
    %41 = arith.negf %40 : vector<2x32xf32>
    %42 = math.exp %41 : vector<2x32xf32>
    %cst_17 = arith.constant 1.000000e+00 : f32
    %43 = vector.broadcast %cst_17 : f32 to vector<2x32xf32>
    %44 = arith.addf %43, %42 : vector<2x32xf32>
    %45 = arith.divf %43, %44 : vector<2x32xf32>
    %46 = math.tanh %37 : vector<2x32xf32>
    %47 = arith.mulf %45, %46 : vector<2x32xf32>
    %48 = arith.index_cast %c0_i32_12 : i32 to index
    %c0_18 = arith.constant 0 : index
    %c0_19 = arith.constant 0 : index
    %49 = vector.load %arg7[%48, %c0_18, %c0_19] : memref<8x2x32xf32, #tpu.memory_space<vmem>>, vector<1x2x32xf32>
    %50 = vector.shape_cast %49 : vector<1x2x32xf32> to vector<2x32xf32>
    %51 = vector.shape_cast %47 : vector<2x32xf32> to vector<1x2x32xf32>
    tpu.vector_store %arg7[%48, %c0_18, %c0_19], %51 {strides = array<i32>} : memref<8x2x32xf32, #tpu.memory_space<vmem>>, vector<1x2x32xf32>,
    %c1_i32 = arith.constant 1 : i32
    %52 = arith.index_cast %c1_i32 : i32 to index
    %c0_20 = arith.constant 0 : index
    %c0_21 = arith.constant 0 : index
    %53 = vector.load %arg2[%52, %c0_20, %c0_21] : memref<8x2x128xf32, #tpu.memory_space<vmem>>, vector<1x2x128xf32>
    %54 = vector.shape_cast %53 : vector<1x2x128xf32> to vector<2x128xf32>
    %cst_22 = arith.constant dense<0.000000e+00> : vector<2x128xf32>
    %55 = tpu.matmul %47, %3, %cst_22 {dimension_numbers = #tpu.dot_dimension_numbers<[1], [0], [0], [1], [0, 0, 1, 1], [], []>, precision = #tpu.contract_precision<fp32>} : vector<2x32xf32>, vector<32x128xf32>, vector<2x128xf32> -> vector<2x128xf32>
    %56 = arith.addf %54, %55 : vector<2x128xf32>
    %57 = vector.extract_strided_slice %56 {offsets = [0, 0], sizes = [2, 32], strides = [1, 1]} : vector<2x128xf32> to vector<2x32xf32>
    %58 = vector.extract_strided_slice %56 {offsets = [0, 32], sizes = [2, 32], strides = [1, 1]} : vector<2x128xf32> to vector<2x32xf32>
    %59 = vector.extract_strided_slice %56 {offsets = [0, 64], sizes = [2, 32], strides = [1, 1]} : vector<2x128xf32> to vector<2x32xf32>
    %60 = vector.extract_strided_slice %56 {offsets = [0, 96], sizes = [2, 32], strides = [1, 1]} : vector<2x128xf32> to vector<2x32xf32>
    %61 = vector.broadcast %4 : vector<1x32xf32> to vector<2x32xf32>
    %62 = arith.mulf %61, %37 : vector<2x32xf32>
    %63 = arith.addf %59, %62 : vector<2x32xf32>
    %64 = arith.negf %63 : vector<2x32xf32>
    %65 = math.exp %64 : vector<2x32xf32>
    %cst_23 = arith.constant 1.000000e+00 : f32
    %66 = vector.broadcast %cst_23 : f32 to vector<2x32xf32>
    %67 = arith.addf %66, %65 : vector<2x32xf32>
    %68 = arith.divf %66, %67 : vector<2x32xf32>
    %69 = arith.mulf %68, %37 : vector<2x32xf32>
    %70 = vector.broadcast %5 : vector<1x32xf32> to vector<2x32xf32>
    %71 = arith.mulf %70, %37 : vector<2x32xf32>
    %72 = arith.addf %57, %71 : vector<2x32xf32>
    %73 = arith.negf %72 : vector<2x32xf32>
    %74 = math.exp %73 : vector<2x32xf32>
    %cst_24 = arith.constant 1.000000e+00 : f32
    %75 = vector.broadcast %cst_24 : f32 to vector<2x32xf32>
    %76 = arith.addf %75, %74 : vector<2x32xf32>
    %77 = arith.divf %75, %76 : vector<2x32xf32>
    %78 = math.tanh %58 : vector<2x32xf32>
    %79 = arith.mulf %77, %78 : vector<2x32xf32>
    %80 = arith.addf %69, %79 : vector<2x32xf32>
    %81 = vector.broadcast %6 : vector<1x32xf32> to vector<2x32xf32>
    %82 = arith.mulf %81, %80 : vector<2x32xf32>
    %83 = arith.addf %60, %82 : vector<2x32xf32>
    %84 = arith.negf %83 : vector<2x32xf32>
    %85 = math.exp %84 : vector<2x32xf32>
    %cst_25 = arith.constant 1.000000e+00 : f32
    %86 = vector.broadcast %cst_25 : f32 to vector<2x32xf32>
    %87 = arith.addf %86, %85 : vector<2x32xf32>
    %88 = arith.divf %86, %87 : vector<2x32xf32>
    %89 = math.tanh %80 : vector<2x32xf32>
    %90 = arith.mulf %88, %89 : vector<2x32xf32>
    %91 = arith.index_cast %c1_i32 : i32 to index
    %c0_26 = arith.constant 0 : index
    %c0_27 = arith.constant 0 : index
    %92 = vector.load %arg7[%91, %c0_26, %c0_27] : memref<8x2x32xf32, #tpu.memory_space<vmem>>, vector<1x2x32xf32>
    %93 = vector.shape_cast %92 : vector<1x2x32xf32> to vector<2x32xf32>
    %94 = vector.shape_cast %90 : vector<2x32xf32> to vector<1x2x32xf32>
    tpu.vector_store %arg7[%91, %c0_26, %c0_27], %94 {strides = array<i32>} : memref<8x2x32xf32, #tpu.memory_space<vmem>>, vector<1x2x32xf32>,
    %c2_i32 = arith.constant 2 : i32
    %95 = arith.index_cast %c2_i32 : i32 to index
    %c0_28 = arith.constant 0 : index
    %c0_29 = arith.constant 0 : index
    %96 = vector.load %arg2[%95, %c0_28, %c0_29] : memref<8x2x128xf32, #tpu.memory_space<vmem>>, vector<1x2x128xf32>
    %97 = vector.shape_cast %96 : vector<1x2x128xf32> to vector<2x128xf32>
    %cst_30 = arith.constant dense<0.000000e+00> : vector<2x128xf32>
    %98 = tpu.matmul %90, %3, %cst_30 {dimension_numbers = #tpu.dot_dimension_numbers<[1], [0], [0], [1], [0, 0, 1, 1], [], []>, precision = #tpu.contract_precision<fp32>} : vector<2x32xf32>, vector<32x128xf32>, vector<2x128xf32> -> vector<2x128xf32>
    %99 = arith.addf %97, %98 : vector<2x128xf32>
    %100 = vector.extract_strided_slice %99 {offsets = [0, 0], sizes = [2, 32], strides = [1, 1]} : vector<2x128xf32> to vector<2x32xf32>
    %101 = vector.extract_strided_slice %99 {offsets = [0, 32], sizes = [2, 32], strides = [1, 1]} : vector<2x128xf32> to vector<2x32xf32>
    %102 = vector.extract_strided_slice %99 {offsets = [0, 64], sizes = [2, 32], strides = [1, 1]} : vector<2x128xf32> to vector<2x32xf32>
    %103 = vector.extract_strided_slice %99 {offsets = [0, 96], sizes = [2, 32], strides = [1, 1]} : vector<2x128xf32> to vector<2x32xf32>
    %104 = vector.broadcast %4 : vector<1x32xf32> to vector<2x32xf32>
    %105 = arith.mulf %104, %80 : vector<2x32xf32>
    %106 = arith.addf %102, %105 : vector<2x32xf32>
    %107 = arith.negf %106 : vector<2x32xf32>
    %108 = math.exp %107 : vector<2x32xf32>
    %cst_31 = arith.constant 1.000000e+00 : f32
    %109 = vector.broadcast %cst_31 : f32 to vector<2x32xf32>
    %110 = arith.addf %109, %108 : vector<2x32xf32>
    %111 = arith.divf %109, %110 : vector<2x32xf32>
    %112 = arith.mulf %111, %80 : vector<2x32xf32>
    %113 = vector.broadcast %5 : vector<1x32xf32> to vector<2x32xf32>
    %114 = arith.mulf %113, %80 : vector<2x32xf32>
    %115 = arith.addf %100, %114 : vector<2x32xf32>
    %116 = arith.negf %115 : vector<2x32xf32>
    %117 = math.exp %116 : vector<2x32xf32>
    %cst_32 = arith.constant 1.000000e+00 : f32
    %118 = vector.broadcast %cst_32 : f32 to vector<2x32xf32>
    %119 = arith.addf %118, %117 : vector<2x32xf32>
    %120 = arith.divf %118, %119 : vector<2x32xf32>
    %121 = math.tanh %101 : vector<2x32xf32>
    %122 = arith.mulf %120, %121 : vector<2x32xf32>
    %123 = arith.addf %112, %122 : vector<2x32xf32>
    %124 = vector.broadcast %6 : vector<1x32xf32> to vector<2x32xf32>
    %125 = arith.mulf %124, %123 : vector<2x32xf32>
    %126 = arith.addf %103, %125 : vector<2x32xf32>
    %127 = arith.negf %126 : vector<2x32xf32>
    %128 = math.exp %127 : vector<2x32xf32>
    %cst_33 = arith.constant 1.000000e+00 : f32
    %129 = vector.broadcast %cst_33 : f32 to vector<2x32xf32>
    %130 = arith.addf %129, %128 : vector<2x32xf32>
    %131 = arith.divf %129, %130 : vector<2x32xf32>
    %132 = math.tanh %123 : vector<2x32xf32>
    %133 = arith.mulf %131, %132 : vector<2x32xf32>
    %134 = arith.index_cast %c2_i32 : i32 to index
    %c0_34 = arith.constant 0 : index
    %c0_35 = arith.constant 0 : index
    %135 = vector.load %arg7[%134, %c0_34, %c0_35] : memref<8x2x32xf32, #tpu.memory_space<vmem>>, vector<1x2x32xf32>
    %136 = vector.shape_cast %135 : vector<1x2x32xf32> to vector<2x32xf32>
    %137 = vector.shape_cast %133 : vector<2x32xf32> to vector<1x2x32xf32>
    tpu.vector_store %arg7[%134, %c0_34, %c0_35], %137 {strides = array<i32>} : memref<8x2x32xf32, #tpu.memory_space<vmem>>, vector<1x2x32xf32>,
    %c3_i32 = arith.constant 3 : i32
    %138 = arith.index_cast %c3_i32 : i32 to index
    %c0_36 = arith.constant 0 : index
    %c0_37 = arith.constant 0 : index
    %139 = vector.load %arg2[%138, %c0_36, %c0_37] : memref<8x2x128xf32, #tpu.memory_space<vmem>>, vector<1x2x128xf32>
    %140 = vector.shape_cast %139 : vector<1x2x128xf32> to vector<2x128xf32>
    %cst_38 = arith.constant dense<0.000000e+00> : vector<2x128xf32>
    %141 = tpu.matmul %133, %3, %cst_38 {dimension_numbers = #tpu.dot_dimension_numbers<[1], [0], [0], [1], [0, 0, 1, 1], [], []>, precision = #tpu.contract_precision<fp32>} : vector<2x32xf32>, vector<32x128xf32>, vector<2x128xf32> -> vector<2x128xf32>
    %142 = arith.addf %140, %141 : vector<2x128xf32>
    %143 = vector.extract_strided_slice %142 {offsets = [0, 0], sizes = [2, 32], strides = [1, 1]} : vector<2x128xf32> to vector<2x32xf32>
    %144 = vector.extract_strided_slice %142 {offsets = [0, 32], sizes = [2, 32], strides = [1, 1]} : vector<2x128xf32> to vector<2x32xf32>
    %145 = vector.extract_strided_slice %142 {offsets = [0, 64], sizes = [2, 32], strides = [1, 1]} : vector<2x128xf32> to vector<2x32xf32>
    %146 = vector.extract_strided_slice %142 {offsets = [0, 96], sizes = [2, 32], strides = [1, 1]} : vector<2x128xf32> to vector<2x32xf32>
    %147 = vector.broadcast %4 : vector<1x32xf32> to vector<2x32xf32>
    %148 = arith.mulf %147, %123 : vector<2x32xf32>
    %149 = arith.addf %145, %148 : vector<2x32xf32>
    %150 = arith.negf %149 : vector<2x32xf32>
    %151 = math.exp %150 : vector<2x32xf32>
    %cst_39 = arith.constant 1.000000e+00 : f32
    %152 = vector.broadcast %cst_39 : f32 to vector<2x32xf32>
    %153 = arith.addf %152, %151 : vector<2x32xf32>
    %154 = arith.divf %152, %153 : vector<2x32xf32>
    %155 = arith.mulf %154, %123 : vector<2x32xf32>
    %156 = vector.broadcast %5 : vector<1x32xf32> to vector<2x32xf32>
    %157 = arith.mulf %156, %123 : vector<2x32xf32>
    %158 = arith.addf %143, %157 : vector<2x32xf32>
    %159 = arith.negf %158 : vector<2x32xf32>
    %160 = math.exp %159 : vector<2x32xf32>
    %cst_40 = arith.constant 1.000000e+00 : f32
    %161 = vector.broadcast %cst_40 : f32 to vector<2x32xf32>
    %162 = arith.addf %161, %160 : vector<2x32xf32>
    %163 = arith.divf %161, %162 : vector<2x32xf32>
    %164 = math.tanh %144 : vector<2x32xf32>
    %165 = arith.mulf %163, %164 : vector<2x32xf32>
    %166 = arith.addf %155, %165 : vector<2x32xf32>
    %167 = vector.broadcast %6 : vector<1x32xf32> to vector<2x32xf32>
    %168 = arith.mulf %167, %166 : vector<2x32xf32>
    %169 = arith.addf %146, %168 : vector<2x32xf32>
    %170 = arith.negf %169 : vector<2x32xf32>
    %171 = math.exp %170 : vector<2x32xf32>
    %cst_41 = arith.constant 1.000000e+00 : f32
    %172 = vector.broadcast %cst_41 : f32 to vector<2x32xf32>
    %173 = arith.addf %172, %171 : vector<2x32xf32>
    %174 = arith.divf %172, %173 : vector<2x32xf32>
    %175 = math.tanh %166 : vector<2x32xf32>
    %176 = arith.mulf %174, %175 : vector<2x32xf32>
    %177 = arith.index_cast %c3_i32 : i32 to index
    %c0_42 = arith.constant 0 : index
    %c0_43 = arith.constant 0 : index
    %178 = vector.load %arg7[%177, %c0_42, %c0_43] : memref<8x2x32xf32, #tpu.memory_space<vmem>>, vector<1x2x32xf32>
    %179 = vector.shape_cast %178 : vector<1x2x32xf32> to vector<2x32xf32>
    %180 = vector.shape_cast %176 : vector<2x32xf32> to vector<1x2x32xf32>
    tpu.vector_store %arg7[%177, %c0_42, %c0_43], %180 {strides = array<i32>} : memref<8x2x32xf32, #tpu.memory_space<vmem>>, vector<1x2x32xf32>,
    %c4_i32 = arith.constant 4 : i32
    %181 = arith.index_cast %c4_i32 : i32 to index
    %c0_44 = arith.constant 0 : index
    %c0_45 = arith.constant 0 : index
    %182 = vector.load %arg2[%181, %c0_44, %c0_45] : memref<8x2x128xf32, #tpu.memory_space<vmem>>, vector<1x2x128xf32>
    %183 = vector.shape_cast %182 : vector<1x2x128xf32> to vector<2x128xf32>
    %cst_46 = arith.constant dense<0.000000e+00> : vector<2x128xf32>
    %184 = tpu.matmul %176, %3, %cst_46 {dimension_numbers = #tpu.dot_dimension_numbers<[1], [0], [0], [1], [0, 0, 1, 1], [], []>, precision = #tpu.contract_precision<fp32>} : vector<2x32xf32>, vector<32x128xf32>, vector<2x128xf32> -> vector<2x128xf32>
    %185 = arith.addf %183, %184 : vector<2x128xf32>
    %186 = vector.extract_strided_slice %185 {offsets = [0, 0], sizes = [2, 32], strides = [1, 1]} : vector<2x128xf32> to vector<2x32xf32>
    %187 = vector.extract_strided_slice %185 {offsets = [0, 32], sizes = [2, 32], strides = [1, 1]} : vector<2x128xf32> to vector<2x32xf32>
    %188 = vector.extract_strided_slice %185 {offsets = [0, 64], sizes = [2, 32], strides = [1, 1]} : vector<2x128xf32> to vector<2x32xf32>
    %189 = vector.extract_strided_slice %185 {offsets = [0, 96], sizes = [2, 32], strides = [1, 1]} : vector<2x128xf32> to vector<2x32xf32>
    %190 = vector.broadcast %4 : vector<1x32xf32> to vector<2x32xf32>
    %191 = arith.mulf %190, %166 : vector<2x32xf32>
    %192 = arith.addf %188, %191 : vector<2x32xf32>
    %193 = arith.negf %192 : vector<2x32xf32>
    %194 = math.exp %193 : vector<2x32xf32>
    %cst_47 = arith.constant 1.000000e+00 : f32
    %195 = vector.broadcast %cst_47 : f32 to vector<2x32xf32>
    %196 = arith.addf %195, %194 : vector<2x32xf32>
    %197 = arith.divf %195, %196 : vector<2x32xf32>
    %198 = arith.mulf %197, %166 : vector<2x32xf32>
    %199 = vector.broadcast %5 : vector<1x32xf32> to vector<2x32xf32>
    %200 = arith.mulf %199, %166 : vector<2x32xf32>
    %201 = arith.addf %186, %200 : vector<2x32xf32>
    %202 = arith.negf %201 : vector<2x32xf32>
    %203 = math.exp %202 : vector<2x32xf32>
    %cst_48 = arith.constant 1.000000e+00 : f32
    %204 = vector.broadcast %cst_48 : f32 to vector<2x32xf32>
    %205 = arith.addf %204, %203 : vector<2x32xf32>
    %206 = arith.divf %204, %205 : vector<2x32xf32>
    %207 = math.tanh %187 : vector<2x32xf32>
    %208 = arith.mulf %206, %207 : vector<2x32xf32>
    %209 = arith.addf %198, %208 : vector<2x32xf32>
    %210 = vector.broadcast %6 : vector<1x32xf32> to vector<2x32xf32>
    %211 = arith.mulf %210, %209 : vector<2x32xf32>
    %212 = arith.addf %189, %211 : vector<2x32xf32>
    %213 = arith.negf %212 : vector<2x32xf32>
    %214 = math.exp %213 : vector<2x32xf32>
    %cst_49 = arith.constant 1.000000e+00 : f32
    %215 = vector.broadcast %cst_49 : f32 to vector<2x32xf32>
    %216 = arith.addf %215, %214 : vector<2x32xf32>
    %217 = arith.divf %215, %216 : vector<2x32xf32>
    %218 = math.tanh %209 : vector<2x32xf32>
    %219 = arith.mulf %217, %218 : vector<2x32xf32>
    %220 = arith.index_cast %c4_i32 : i32 to index
    %c0_50 = arith.constant 0 : index
    %c0_51 = arith.constant 0 : index
    %221 = vector.load %arg7[%220, %c0_50, %c0_51] : memref<8x2x32xf32, #tpu.memory_space<vmem>>, vector<1x2x32xf32>
    %222 = vector.shape_cast %221 : vector<1x2x32xf32> to vector<2x32xf32>
    %223 = vector.shape_cast %219 : vector<2x32xf32> to vector<1x2x32xf32>
    tpu.vector_store %arg7[%220, %c0_50, %c0_51], %223 {strides = array<i32>} : memref<8x2x32xf32, #tpu.memory_space<vmem>>, vector<1x2x32xf32>,
    %c5_i32 = arith.constant 5 : i32
    %224 = arith.index_cast %c5_i32 : i32 to index
    %c0_52 = arith.constant 0 : index
    %c0_53 = arith.constant 0 : index
    %225 = vector.load %arg2[%224, %c0_52, %c0_53] : memref<8x2x128xf32, #tpu.memory_space<vmem>>, vector<1x2x128xf32>
    %226 = vector.shape_cast %225 : vector<1x2x128xf32> to vector<2x128xf32>
    %cst_54 = arith.constant dense<0.000000e+00> : vector<2x128xf32>
    %227 = tpu.matmul %219, %3, %cst_54 {dimension_numbers = #tpu.dot_dimension_numbers<[1], [0], [0], [1], [0, 0, 1, 1], [], []>, precision = #tpu.contract_precision<fp32>} : vector<2x32xf32>, vector<32x128xf32>, vector<2x128xf32> -> vector<2x128xf32>
    %228 = arith.addf %226, %227 : vector<2x128xf32>
    %229 = vector.extract_strided_slice %228 {offsets = [0, 0], sizes = [2, 32], strides = [1, 1]} : vector<2x128xf32> to vector<2x32xf32>
    %230 = vector.extract_strided_slice %228 {offsets = [0, 32], sizes = [2, 32], strides = [1, 1]} : vector<2x128xf32> to vector<2x32xf32>
    %231 = vector.extract_strided_slice %228 {offsets = [0, 64], sizes = [2, 32], strides = [1, 1]} : vector<2x128xf32> to vector<2x32xf32>
    %232 = vector.extract_strided_slice %228 {offsets = [0, 96], sizes = [2, 32], strides = [1, 1]} : vector<2x128xf32> to vector<2x32xf32>
    %233 = vector.broadcast %4 : vector<1x32xf32> to vector<2x32xf32>
    %234 = arith.mulf %233, %209 : vector<2x32xf32>
    %235 = arith.addf %231, %234 : vector<2x32xf32>
    %236 = arith.negf %235 : vector<2x32xf32>
    %237 = math.exp %236 : vector<2x32xf32>
    %cst_55 = arith.constant 1.000000e+00 : f32
    %238 = vector.broadcast %cst_55 : f32 to vector<2x32xf32>
    %239 = arith.addf %238, %237 : vector<2x32xf32>
    %240 = arith.divf %238, %239 : vector<2x32xf32>
    %241 = arith.mulf %240, %209 : vector<2x32xf32>
    %242 = vector.broadcast %5 : vector<1x32xf32> to vector<2x32xf32>
    %243 = arith.mulf %242, %209 : vector<2x32xf32>
    %244 = arith.addf %229, %243 : vector<2x32xf32>
    %245 = arith.negf %244 : vector<2x32xf32>
    %246 = math.exp %245 : vector<2x32xf32>
    %cst_56 = arith.constant 1.000000e+00 : f32
    %247 = vector.broadcast %cst_56 : f32 to vector<2x32xf32>
    %248 = arith.addf %247, %246 : vector<2x32xf32>
    %249 = arith.divf %247, %248 : vector<2x32xf32>
    %250 = math.tanh %230 : vector<2x32xf32>
    %251 = arith.mulf %249, %250 : vector<2x32xf32>
    %252 = arith.addf %241, %251 : vector<2x32xf32>
    %253 = vector.broadcast %6 : vector<1x32xf32> to vector<2x32xf32>
    %254 = arith.mulf %253, %252 : vector<2x32xf32>
    %255 = arith.addf %232, %254 : vector<2x32xf32>
    %256 = arith.negf %255 : vector<2x32xf32>
    %257 = math.exp %256 : vector<2x32xf32>
    %cst_57 = arith.constant 1.000000e+00 : f32
    %258 = vector.broadcast %cst_57 : f32 to vector<2x32xf32>
    %259 = arith.addf %258, %257 : vector<2x32xf32>
    %260 = arith.divf %258, %259 : vector<2x32xf32>
    %261 = math.tanh %252 : vector<2x32xf32>
    %262 = arith.mulf %260, %261 : vector<2x32xf32>
    %263 = arith.index_cast %c5_i32 : i32 to index
    %c0_58 = arith.constant 0 : index
    %c0_59 = arith.constant 0 : index
    %264 = vector.load %arg7[%263, %c0_58, %c0_59] : memref<8x2x32xf32, #tpu.memory_space<vmem>>, vector<1x2x32xf32>
    %265 = vector.shape_cast %264 : vector<1x2x32xf32> to vector<2x32xf32>
    %266 = vector.shape_cast %262 : vector<2x32xf32> to vector<1x2x32xf32>
    tpu.vector_store %arg7[%263, %c0_58, %c0_59], %266 {strides = array<i32>} : memref<8x2x32xf32, #tpu.memory_space<vmem>>, vector<1x2x32xf32>,
    %c6_i32 = arith.constant 6 : i32
    %267 = arith.index_cast %c6_i32 : i32 to index
    %c0_60 = arith.constant 0 : index
    %c0_61 = arith.constant 0 : index
    %268 = vector.load %arg2[%267, %c0_60, %c0_61] : memref<8x2x128xf32, #tpu.memory_space<vmem>>, vector<1x2x128xf32>
    %269 = vector.shape_cast %268 : vector<1x2x128xf32> to vector<2x128xf32>
    %cst_62 = arith.constant dense<0.000000e+00> : vector<2x128xf32>
    %270 = tpu.matmul %262, %3, %cst_62 {dimension_numbers = #tpu.dot_dimension_numbers<[1], [0], [0], [1], [0, 0, 1, 1], [], []>, precision = #tpu.contract_precision<fp32>} : vector<2x32xf32>, vector<32x128xf32>, vector<2x128xf32> -> vector<2x128xf32>
    %271 = arith.addf %269, %270 : vector<2x128xf32>
    %272 = vector.extract_strided_slice %271 {offsets = [0, 0], sizes = [2, 32], strides = [1, 1]} : vector<2x128xf32> to vector<2x32xf32>
    %273 = vector.extract_strided_slice %271 {offsets = [0, 32], sizes = [2, 32], strides = [1, 1]} : vector<2x128xf32> to vector<2x32xf32>
    %274 = vector.extract_strided_slice %271 {offsets = [0, 64], sizes = [2, 32], strides = [1, 1]} : vector<2x128xf32> to vector<2x32xf32>
    %275 = vector.extract_strided_slice %271 {offsets = [0, 96], sizes = [2, 32], strides = [1, 1]} : vector<2x128xf32> to vector<2x32xf32>
    %276 = vector.broadcast %4 : vector<1x32xf32> to vector<2x32xf32>
    %277 = arith.mulf %276, %252 : vector<2x32xf32>
    %278 = arith.addf %274, %277 : vector<2x32xf32>
    %279 = arith.negf %278 : vector<2x32xf32>
    %280 = math.exp %279 : vector<2x32xf32>
    %cst_63 = arith.constant 1.000000e+00 : f32
    %281 = vector.broadcast %cst_63 : f32 to vector<2x32xf32>
    %282 = arith.addf %281, %280 : vector<2x32xf32>
    %283 = arith.divf %281, %282 : vector<2x32xf32>
    %284 = arith.mulf %283, %252 : vector<2x32xf32>
    %285 = vector.broadcast %5 : vector<1x32xf32> to vector<2x32xf32>
    %286 = arith.mulf %285, %252 : vector<2x32xf32>
    %287 = arith.addf %272, %286 : vector<2x32xf32>
    %288 = arith.negf %287 : vector<2x32xf32>
    %289 = math.exp %288 : vector<2x32xf32>
    %cst_64 = arith.constant 1.000000e+00 : f32
    %290 = vector.broadcast %cst_64 : f32 to vector<2x32xf32>
    %291 = arith.addf %290, %289 : vector<2x32xf32>
    %292 = arith.divf %290, %291 : vector<2x32xf32>
    %293 = math.tanh %273 : vector<2x32xf32>
    %294 = arith.mulf %292, %293 : vector<2x32xf32>
    %295 = arith.addf %284, %294 : vector<2x32xf32>
    %296 = vector.broadcast %6 : vector<1x32xf32> to vector<2x32xf32>
    %297 = arith.mulf %296, %295 : vector<2x32xf32>
    %298 = arith.addf %275, %297 : vector<2x32xf32>
    %299 = arith.negf %298 : vector<2x32xf32>
    %300 = math.exp %299 : vector<2x32xf32>
    %cst_65 = arith.constant 1.000000e+00 : f32
    %301 = vector.broadcast %cst_65 : f32 to vector<2x32xf32>
    %302 = arith.addf %301, %300 : vector<2x32xf32>
    %303 = arith.divf %301, %302 : vector<2x32xf32>
    %304 = math.tanh %295 : vector<2x32xf32>
    %305 = arith.mulf %303, %304 : vector<2x32xf32>
    %306 = arith.index_cast %c6_i32 : i32 to index
    %c0_66 = arith.constant 0 : index
    %c0_67 = arith.constant 0 : index
    %307 = vector.load %arg7[%306, %c0_66, %c0_67] : memref<8x2x32xf32, #tpu.memory_space<vmem>>, vector<1x2x32xf32>
    %308 = vector.shape_cast %307 : vector<1x2x32xf32> to vector<2x32xf32>
    %309 = vector.shape_cast %305 : vector<2x32xf32> to vector<1x2x32xf32>
    tpu.vector_store %arg7[%306, %c0_66, %c0_67], %309 {strides = array<i32>} : memref<8x2x32xf32, #tpu.memory_space<vmem>>, vector<1x2x32xf32>,
    %c7_i32 = arith.constant 7 : i32
    %310 = arith.index_cast %c7_i32 : i32 to index
    %c0_68 = arith.constant 0 : index
    %c0_69 = arith.constant 0 : index
    %311 = vector.load %arg2[%310, %c0_68, %c0_69] : memref<8x2x128xf32, #tpu.memory_space<vmem>>, vector<1x2x128xf32>
    %312 = vector.shape_cast %311 : vector<1x2x128xf32> to vector<2x128xf32>
    %cst_70 = arith.constant dense<0.000000e+00> : vector<2x128xf32>
    %313 = tpu.matmul %305, %3, %cst_70 {dimension_numbers = #tpu.dot_dimension_numbers<[1], [0], [0], [1], [0, 0, 1, 1], [], []>, precision = #tpu.contract_precision<fp32>} : vector<2x32xf32>, vector<32x128xf32>, vector<2x128xf32> -> vector<2x128xf32>
    %314 = arith.addf %312, %313 : vector<2x128xf32>
    %315 = vector.extract_strided_slice %314 {offsets = [0, 0], sizes = [2, 32], strides = [1, 1]} : vector<2x128xf32> to vector<2x32xf32>
    %316 = vector.extract_strided_slice %314 {offsets = [0, 32], sizes = [2, 32], strides = [1, 1]} : vector<2x128xf32> to vector<2x32xf32>
    %317 = vector.extract_strided_slice %314 {offsets = [0, 64], sizes = [2, 32], strides = [1, 1]} : vector<2x128xf32> to vector<2x32xf32>
    %318 = vector.extract_strided_slice %314 {offsets = [0, 96], sizes = [2, 32], strides = [1, 1]} : vector<2x128xf32> to vector<2x32xf32>
    %319 = vector.broadcast %4 : vector<1x32xf32> to vector<2x32xf32>
    %320 = arith.mulf %319, %295 : vector<2x32xf32>
    %321 = arith.addf %317, %320 : vector<2x32xf32>
    %322 = arith.negf %321 : vector<2x32xf32>
    %323 = math.exp %322 : vector<2x32xf32>
    %cst_71 = arith.constant 1.000000e+00 : f32
    %324 = vector.broadcast %cst_71 : f32 to vector<2x32xf32>
    %325 = arith.addf %324, %323 : vector<2x32xf32>
    %326 = arith.divf %324, %325 : vector<2x32xf32>
    %327 = arith.mulf %326, %295 : vector<2x32xf32>
    %328 = vector.broadcast %5 : vector<1x32xf32> to vector<2x32xf32>
    %329 = arith.mulf %328, %295 : vector<2x32xf32>
    %330 = arith.addf %315, %329 : vector<2x32xf32>
    %331 = arith.negf %330 : vector<2x32xf32>
    %332 = math.exp %331 : vector<2x32xf32>
    %cst_72 = arith.constant 1.000000e+00 : f32
    %333 = vector.broadcast %cst_72 : f32 to vector<2x32xf32>
    %334 = arith.addf %333, %332 : vector<2x32xf32>
    %335 = arith.divf %333, %334 : vector<2x32xf32>
    %336 = math.tanh %316 : vector<2x32xf32>
    %337 = arith.mulf %335, %336 : vector<2x32xf32>
    %338 = arith.addf %327, %337 : vector<2x32xf32>
    %339 = vector.broadcast %6 : vector<1x32xf32> to vector<2x32xf32>
    %340 = arith.mulf %339, %338 : vector<2x32xf32>
    %341 = arith.addf %318, %340 : vector<2x32xf32>
    %342 = arith.negf %341 : vector<2x32xf32>
    %343 = math.exp %342 : vector<2x32xf32>
    %cst_73 = arith.constant 1.000000e+00 : f32
    %344 = vector.broadcast %cst_73 : f32 to vector<2x32xf32>
    %345 = arith.addf %344, %343 : vector<2x32xf32>
    %346 = arith.divf %344, %345 : vector<2x32xf32>
    %347 = math.tanh %338 : vector<2x32xf32>
    %348 = arith.mulf %346, %347 : vector<2x32xf32>
    %349 = arith.index_cast %c7_i32 : i32 to index
    %c0_74 = arith.constant 0 : index
    %c0_75 = arith.constant 0 : index
    %350 = vector.load %arg7[%349, %c0_74, %c0_75] : memref<8x2x32xf32, #tpu.memory_space<vmem>>, vector<1x2x32xf32>
    %351 = vector.shape_cast %350 : vector<1x2x32xf32> to vector<2x32xf32>
    %352 = vector.shape_cast %348 : vector<2x32xf32> to vector<1x2x32xf32>
    tpu.vector_store %arg7[%349, %c0_74, %c0_75], %352 {strides = array<i32>} : memref<8x2x32xf32, #tpu.memory_space<vmem>>, vector<1x2x32xf32>,
    %c8_i32 = arith.constant 8 : i32
    %c0_76 = arith.constant 0 : index
    %c0_77 = arith.constant 0 : index
    %353 = vector.load %arg9[%c0_76, %c0_77] : memref<2x32xf32, #tpu.memory_space<vmem>>, vector<2x32xf32>
    tpu.vector_store %arg9[%c0_76, %c0_77], %348 {strides = array<i32>} : memref<2x32xf32, #tpu.memory_space<vmem>>, vector<2x32xf32>,
    %c0_78 = arith.constant 0 : index
    %c0_79 = arith.constant 0 : index
    %354 = vector.load %arg10[%c0_78, %c0_79] : memref<2x32xf32, #tpu.memory_space<vmem>>, vector<2x32xf32>
    tpu.vector_store %arg10[%c0_78, %c0_79], %338 {strides = array<i32>} : memref<2x32xf32, #tpu.memory_space<vmem>>, vector<2x32xf32>,
    %c0_i32_80 = arith.constant 0 : i32
    %355 = arith.cmpi eq, %arg1, %c0_i32_80 : i32
    %356 = arith.extui %355 : i1 to i32
    %c0_i32_81 = arith.constant 0 : i32
    %357 = arith.cmpi ne, %356, %c0_i32_81 : i32
    scf.if %357 {
      %c0_82 = arith.constant 0 : index
      %c0_83 = arith.constant 0 : index
      %358 = vector.load %arg8[%c0_82, %c0_83] : memref<2x32xf32, #tpu.memory_space<vmem>>, vector<2x32xf32>
      tpu.vector_store %arg8[%c0_82, %c0_83], %338 {strides = array<i32>} : memref<2x32xf32, #tpu.memory_space<vmem>>, vector<2x32xf32>,
    } else {
    }
    return
  }
  func.func @transform_0(%arg0: i32, %arg1: i32) -> (i32, i32, i32) {
    %c0_i32 = arith.constant 0 : i32
    %c0_i32_0 = arith.constant 0 : i32
    return %arg1, %arg0, %c0_i32 : i32, i32, i32
  }
  func.func @transform_1(%arg0: i32, %arg1: i32) -> (i32, i32) {
    %c0_i32 = arith.constant 0 : i32
    %c0_i32_0 = arith.constant 0 : i32
    %c0_i32_1 = arith.constant 0 : i32
    return %c0_i32, %c0_i32_0 : i32, i32
  }
  func.func @transform_2(%arg0: i32, %arg1: i32) -> (i32, i32) {
    %c0_i32 = arith.constant 0 : i32
    %c0_i32_0 = arith.constant 0 : i32
    %c0_i32_1 = arith.constant 0 : i32
    return %c0_i32, %c0_i32_0 : i32, i32
  }
  func.func @transform_3(%arg0: i32, %arg1: i32) -> (i32, i32) {
    %c0_i32 = arith.constant 0 : i32
    %c0_i32_0 = arith.constant 0 : i32
    %c0_i32_1 = arith.constant 0 : i32
    return %c0_i32, %c0_i32_0 : i32, i32
  }
  func.func @transform_4(%arg0: i32, %arg1: i32) -> (i32, i32) {
    %c0_i32 = arith.constant 0 : i32
    %c0_i32_0 = arith.constant 0 : i32
    %c0_i32_1 = arith.constant 0 : i32
    return %c0_i32, %c0_i32_0 : i32, i32
  }
  func.func @transform_5(%arg0: i32, %arg1: i32) -> (i32, i32, i32) {
    %c0_i32 = arith.constant 0 : i32
    %c0_i32_0 = arith.constant 0 : i32
    return %arg1, %arg0, %c0_i32 : i32, i32, i32
  }
  func.func @transform_6(%arg0: i32, %arg1: i32) -> (i32, i32) {
    %c0_i32 = arith.constant 0 : i32
    %c0_i32_0 = arith.constant 0 : i32
    return %arg0, %c0_i32 : i32, i32
  }
}

module attributes {stable_mosaic.version = 11 : i64} {
  func.func @_matmul_bias_kernel(%arg0: i32, %arg1: i32, %arg2: i32, %arg3: memref<16x32xf32, #tpu.memory_space<vmem>>, %arg4: memref<32x128xf32, #tpu.memory_space<vmem>>, %arg5: memref<1x128xf32, #tpu.memory_space<vmem>>, %arg6: memref<16x128xf32, #tpu.memory_space<vmem>>, %arg7: memref<16x128xf32, #tpu.memory_space<vmem>>) attributes {dimension_semantics = [#tpu.dimension_semantics<parallel>, #tpu.dimension_semantics<parallel>, #tpu.dimension_semantics<arbitrary>], iteration_bounds = array<i64: 1, 1, 1>, scalar_prefetch = 0 : i64, scratch_operands = 1 : i64, tpu.core_type = #tpu.core_type<tc>, window_params = [{transform_indices = @transform_0, window_bounds = array<i64: 16, 32>}, {transform_indices = @transform_1, window_bounds = array<i64: 32, 128>}, {transform_indices = @transform_2, window_bounds = array<i64: 1, 128>}, {transform_indices = @transform_3, window_bounds = array<i64: 16, 128>}]} {
    %c0_i32 = arith.constant 0 : i32
    %0 = arith.cmpi eq, %arg2, %c0_i32 : i32
    %1 = arith.extui %0 : i1 to i32
    %c0_i32_0 = arith.constant 0 : i32
    %2 = arith.cmpi ne, %1, %c0_i32_0 : i32
    scf.if %2 {
      %cst_10 = arith.constant 0.000000e+00 : f32
      %12 = vector.broadcast %cst_10 : f32 to vector<16x128xf32>
      %c0_11 = arith.constant 0 : index
      %c0_12 = arith.constant 0 : index
      %13 = vector.load %arg7[%c0_11, %c0_12] : memref<16x128xf32, #tpu.memory_space<vmem>>, vector<16x128xf32>
      tpu.vector_store %arg7[%c0_11, %c0_12], %12 {strides = array<i32>} : memref<16x128xf32, #tpu.memory_space<vmem>>, vector<16x128xf32>,
    } else {
    }
    %c0 = arith.constant 0 : index
    %c0_1 = arith.constant 0 : index
    %3 = vector.load %arg7[%c0, %c0_1] : memref<16x128xf32, #tpu.memory_space<vmem>>, vector<16x128xf32>
    %c0_2 = arith.constant 0 : index
    %c0_3 = arith.constant 0 : index
    %4 = vector.load %arg3[%c0_2, %c0_3] : memref<16x32xf32, #tpu.memory_space<vmem>>, vector<16x32xf32>
    %c0_4 = arith.constant 0 : index
    %c0_5 = arith.constant 0 : index
    %5 = vector.load %arg4[%c0_4, %c0_5] : memref<32x128xf32, #tpu.memory_space<vmem>>, vector<32x128xf32>
    %cst = arith.constant dense<0.000000e+00> : vector<16x128xf32>
    %6 = tpu.matmul %4, %5, %cst {dimension_numbers = #tpu.dot_dimension_numbers<[1], [0], [0], [1], [0, 0, 1, 1], [], []>, precision = #tpu.contract_precision<fp32>} : vector<16x32xf32>, vector<32x128xf32>, vector<16x128xf32> -> vector<16x128xf32>
    %7 = arith.addf %3, %6 : vector<16x128xf32>
    %c0_6 = arith.constant 0 : index
    %c0_7 = arith.constant 0 : index
    %8 = vector.load %arg7[%c0_6, %c0_7] : memref<16x128xf32, #tpu.memory_space<vmem>>, vector<16x128xf32>
    tpu.vector_store %arg7[%c0_6, %c0_7], %7 {strides = array<i32>} : memref<16x128xf32, #tpu.memory_space<vmem>>, vector<16x128xf32>,
    %c0_i32_8 = arith.constant 0 : i32
    %9 = arith.cmpi eq, %arg2, %c0_i32_8 : i32
    %10 = arith.extui %9 : i1 to i32
    %c0_i32_9 = arith.constant 0 : i32
    %11 = arith.cmpi ne, %10, %c0_i32_9 : i32
    scf.if %11 {
      %c0_10 = arith.constant 0 : index
      %c0_11 = arith.constant 0 : index
      %12 = vector.load %arg7[%c0_10, %c0_11] : memref<16x128xf32, #tpu.memory_space<vmem>>, vector<16x128xf32>
      %c0_12 = arith.constant 0 : index
      %c0_13 = arith.constant 0 : index
      %13 = vector.load %arg5[%c0_12, %c0_13] : memref<1x128xf32, #tpu.memory_space<vmem>>, vector<1x128xf32>
      %14 = vector.broadcast %13 : vector<1x128xf32> to vector<16x128xf32>
      %15 = arith.addf %12, %14 : vector<16x128xf32>
      %c0_14 = arith.constant 0 : index
      %c0_15 = arith.constant 0 : index
      %16 = vector.load %arg6[%c0_14, %c0_15] : memref<16x128xf32, #tpu.memory_space<vmem>>, vector<16x128xf32>
      tpu.vector_store %arg6[%c0_14, %c0_15], %15 {strides = array<i32>} : memref<16x128xf32, #tpu.memory_space<vmem>>, vector<16x128xf32>,
    } else {
    }
    return
  }
  func.func @transform_0(%arg0: i32, %arg1: i32, %arg2: i32) -> (i32, i32) {
    %c0_i32 = arith.constant 0 : i32
    return %arg0, %arg2 : i32, i32
  }
  func.func @transform_1(%arg0: i32, %arg1: i32, %arg2: i32) -> (i32, i32) {
    %c0_i32 = arith.constant 0 : i32
    return %arg2, %arg1 : i32, i32
  }
  func.func @transform_2(%arg0: i32, %arg1: i32, %arg2: i32) -> (i32, i32) {
    %c0_i32 = arith.constant 0 : i32
    %c0_i32_0 = arith.constant 0 : i32
    return %c0_i32, %arg1 : i32, i32
  }
  func.func @transform_3(%arg0: i32, %arg1: i32, %arg2: i32) -> (i32, i32) {
    %c0_i32 = arith.constant 0 : i32
    return %arg0, %arg1 : i32, i32
  }
}

module attributes {stable_mosaic.version = 11 : i64} {
  func.func @_matmul_bias_kernel(%arg0: i32, %arg1: i32, %arg2: i32, %arg3: memref<16x16xf32, #tpu.memory_space<vmem>>, %arg4: memref<16x128xf32, #tpu.memory_space<vmem>>, %arg5: memref<1x128xf32, #tpu.memory_space<vmem>>, %arg6: memref<16x128xf32, #tpu.memory_space<vmem>>, %arg7: memref<16x128xf32, #tpu.memory_space<vmem>>) attributes {dimension_semantics = [#tpu.dimension_semantics<parallel>, #tpu.dimension_semantics<parallel>, #tpu.dimension_semantics<arbitrary>], iteration_bounds = array<i64: 1, 1, 1>, scalar_prefetch = 0 : i64, scratch_operands = 1 : i64, tpu.core_type = #tpu.core_type<tc>, window_params = [{transform_indices = @transform_0, window_bounds = array<i64: 16, 16>}, {transform_indices = @transform_1, window_bounds = array<i64: 16, 128>}, {transform_indices = @transform_2, window_bounds = array<i64: 1, 128>}, {transform_indices = @transform_3, window_bounds = array<i64: 16, 128>}]} {
    %c0_i32 = arith.constant 0 : i32
    %0 = arith.cmpi eq, %arg2, %c0_i32 : i32
    %1 = arith.extui %0 : i1 to i32
    %c0_i32_0 = arith.constant 0 : i32
    %2 = arith.cmpi ne, %1, %c0_i32_0 : i32
    scf.if %2 {
      %cst_10 = arith.constant 0.000000e+00 : f32
      %12 = vector.broadcast %cst_10 : f32 to vector<16x128xf32>
      %c0_11 = arith.constant 0 : index
      %c0_12 = arith.constant 0 : index
      %13 = vector.load %arg7[%c0_11, %c0_12] : memref<16x128xf32, #tpu.memory_space<vmem>>, vector<16x128xf32>
      tpu.vector_store %arg7[%c0_11, %c0_12], %12 {strides = array<i32>} : memref<16x128xf32, #tpu.memory_space<vmem>>, vector<16x128xf32>,
    } else {
    }
    %c0 = arith.constant 0 : index
    %c0_1 = arith.constant 0 : index
    %3 = vector.load %arg7[%c0, %c0_1] : memref<16x128xf32, #tpu.memory_space<vmem>>, vector<16x128xf32>
    %c0_2 = arith.constant 0 : index
    %c0_3 = arith.constant 0 : index
    %4 = vector.load %arg3[%c0_2, %c0_3] : memref<16x16xf32, #tpu.memory_space<vmem>>, vector<16x16xf32>
    %c0_4 = arith.constant 0 : index
    %c0_5 = arith.constant 0 : index
    %5 = vector.load %arg4[%c0_4, %c0_5] : memref<16x128xf32, #tpu.memory_space<vmem>>, vector<16x128xf32>
    %cst = arith.constant dense<0.000000e+00> : vector<16x128xf32>
    %6 = tpu.matmul %4, %5, %cst {dimension_numbers = #tpu.dot_dimension_numbers<[1], [0], [0], [1], [0, 0, 1, 1], [], []>, precision = #tpu.contract_precision<fp32>} : vector<16x16xf32>, vector<16x128xf32>, vector<16x128xf32> -> vector<16x128xf32>
    %7 = arith.addf %3, %6 : vector<16x128xf32>
    %c0_6 = arith.constant 0 : index
    %c0_7 = arith.constant 0 : index
    %8 = vector.load %arg7[%c0_6, %c0_7] : memref<16x128xf32, #tpu.memory_space<vmem>>, vector<16x128xf32>
    tpu.vector_store %arg7[%c0_6, %c0_7], %7 {strides = array<i32>} : memref<16x128xf32, #tpu.memory_space<vmem>>, vector<16x128xf32>,
    %c0_i32_8 = arith.constant 0 : i32
    %9 = arith.cmpi eq, %arg2, %c0_i32_8 : i32
    %10 = arith.extui %9 : i1 to i32
    %c0_i32_9 = arith.constant 0 : i32
    %11 = arith.cmpi ne, %10, %c0_i32_9 : i32
    scf.if %11 {
      %c0_10 = arith.constant 0 : index
      %c0_11 = arith.constant 0 : index
      %12 = vector.load %arg7[%c0_10, %c0_11] : memref<16x128xf32, #tpu.memory_space<vmem>>, vector<16x128xf32>
      %c0_12 = arith.constant 0 : index
      %c0_13 = arith.constant 0 : index
      %13 = vector.load %arg5[%c0_12, %c0_13] : memref<1x128xf32, #tpu.memory_space<vmem>>, vector<1x128xf32>
      %14 = vector.broadcast %13 : vector<1x128xf32> to vector<16x128xf32>
      %15 = arith.addf %12, %14 : vector<16x128xf32>
      %c0_14 = arith.constant 0 : index
      %c0_15 = arith.constant 0 : index
      %16 = vector.load %arg6[%c0_14, %c0_15] : memref<16x128xf32, #tpu.memory_space<vmem>>, vector<16x128xf32>
      tpu.vector_store %arg6[%c0_14, %c0_15], %15 {strides = array<i32>} : memref<16x128xf32, #tpu.memory_space<vmem>>, vector<16x128xf32>,
    } else {
    }
    return
  }
  func.func @transform_0(%arg0: i32, %arg1: i32, %arg2: i32) -> (i32, i32) {
    %c0_i32 = arith.constant 0 : i32
    return %arg0, %arg2 : i32, i32
  }
  func.func @transform_1(%arg0: i32, %arg1: i32, %arg2: i32) -> (i32, i32) {
    %c0_i32 = arith.constant 0 : i32
    return %arg2, %arg1 : i32, i32
  }
  func.func @transform_2(%arg0: i32, %arg1: i32, %arg2: i32) -> (i32, i32) {
    %c0_i32 = arith.constant 0 : i32
    %c0_i32_0 = arith.constant 0 : i32
    return %c0_i32, %arg1 : i32, i32
  }
  func.func @transform_3(%arg0: i32, %arg1: i32, %arg2: i32) -> (i32, i32) {
    %c0_i32 = arith.constant 0 : i32
    return %arg0, %arg1 : i32, i32
  }
}

</mosaic_0001>

<bundles_post_ra>
// kernel: lm1b_forward.9
= control target key start
LH: loop header
LB: loop body
LE: loop exit
PB: predicated region body
PF: predicated region fallthrough
CT: control target
= control target key end

     0   :  { %vm28_vm0 = vcmask 261120   ;;  %s785_s1 = inlined_call_operand.vmem [shape: f32[32,128], index: 1, kind: input, shape index: {}]   ;;  %s786_s0 = inlined_call_operand.vmem [shape: f32[16,32], index: 0, kind: input, shape index: {}]   ;;  %s787_s2 = inlined_call_operand.vmem [shape: f32[1,128], index: 2, kind: input, shape index: {}]   ;;  %s788_s3 = inlined_call_operand.vmem [shape: f32[16,128], index: 3, kind: output, shape index: {}]  }
   0x1   :  { %v27_v0 = vld [vmem:[%s785_s1 + $0x18] sm:$0xff]  ;;  %v26_v1 = vld [vmem:[%s785_s1 + $0x10] sm:$0xff]  ;;  %v25_v2 = vld [vmem:[%s785_s1 + $0x8] sm:$0xff] }
   0x2   :  { %v719_v3 = vand.u32 4294901760, %v27_v0  ;;  %v721_v4 = vand.u32 4294901760, %v26_v1  ;;  %v723_v5 = vand.u32 4294901760, %v25_v2  ;;  %v24_v6 = vld [vmem:[%s785_s1] sm:$0xff]  ;;  %v23_v8 = vld [vmem:[%s786_s0 + $0x8] sm:$0xff] }
   0x3   :  { %v22_v7 = vld [vmem:[%s786_s0] sm:$0xff]  ;;  %v734_v9 = vand.u32 4294901760, %v24_v6  ;;  %v33_v11 = vsel %vm28_vm0, %v23_v8, 0 }
   0x4   :  { %v30_v10 = vsel %vm28_vm0, %v22_v7, 0  ;;  %624 = vmatprep.subr.mxu0 %v719_v3  ;;  %v150_v12 = vsub.f32 %v27_v0, %v719_v3  ;;  %v740_v14 = vand.u32 4294901760, %v33_v11  ;;  %v157_v15 = vsub.f32 %v26_v1, %v721_v4  ;;  %v587_v56 = vld [vmem:[%s787_s2] ss:$0 sm:$0xff] }
   0x5   :  { %v738_v13 = vand.u32 4294901760, %v30_v10  ;;  %625 = vmatpush3.msra.mxu0 %v719_v3  ;;  %v164_v16 = vsub.f32 %v25_v2, %v723_v5  ;;  %v171_v17 = vsub.f32 %v24_v6, %v734_v9 }
   0x6   :  { %626 = vmatprep.subr.mxu0 %v721_v4  ;;  %v151_v18 = vand.u32 4294901760, %v150_v12  ;;  %v158_v20 = vand.u32 4294901760, %v157_v15  ;;  %v115_v21 = vsub.f32 %v33_v11, %v740_v14 }
   0x7   :  { %v105_v19 = vsub.f32 %v30_v10, %v738_v13  ;;  %643 = vmatprep.mubr.f32.mxu1 %v738_v13  ;;  %627 = vmatpush3.msra.mxu0 %v721_v4  ;;  %v165_v22 = vand.u32 4294901760, %v164_v16  ;;  %v172_v23 = vand.u32 4294901760, %v171_v17 }
   0x8   :  { %628 = vmatprep.subr.mxu0 %v723_v5  ;;  %v152_v24 = vsub.f32 %v150_v12, %v151_v18  ;;  %v159_v26 = vsub.f32 %v157_v15, %v158_v20  ;;  %v116_v27 = vand.u32 4294901760, %v115_v21 }
   0x9   :  { %v106_v25 = vand.u32 4294901760, %v105_v19  ;;  %629 = vmatpush3.msra.mxu0 %v723_v5  ;;  %v166_v28 = vsub.f32 %v164_v16, %v165_v22  ;;  %v173_v29 = vsub.f32 %v171_v17, %v172_v23 }
   0xa   :  { %630 = vmatprep.subr.mxu0 %v734_v9  ;;  %v153_v30 = vand.u32 4294901760, %v152_v24  ;;  %v160_v32 = vand.u32 4294901760, %v159_v26  ;;  %v117_v33 = vsub.f32 %v115_v21, %v116_v27 }
   0xb   :  { %v107_v31 = vsub.f32 %v105_v19, %v106_v25  ;;  %631 = vmatpush3.msra.mxu0 %v734_v9  ;;  %v167_v36 = vand.u32 4294901760, %v166_v28  ;;  %v174_v37 = vand.u32 4294901760, %v173_v29 }
   0xc   :  { %635 = vmatprep.subr.mxu1 %v153_v30  ;;  %646 = vmatprep.subr.mxu0 %v150_v12  ;;  %v118_v35 = vand.u32 4294901760, %v117_v33 }
   0xd   :  { %v108_v34 = vand.u32 4294901760, %v107_v31  ;;  %636 = vmatpush3.msra.mxu1 %v153_v30 }
   0xe   :  { %637 = vmatprep.subr.mxu1 %v160_v32 }
   0xf   :  { %632 = vmatprep.mubr.f32.mxu0 %v108_v34  ;;  %638 = vmatpush3.msra.mxu1 %v160_v32 }
  0x10   :  { %633 = vmatmul.mubr.f32.vlgmr.msra.gmra.mxu0 %v118_v35  ;;  %639 = vmatprep.subr.mxu1 %v167_v36 }
  0x11   :  { %647 = vmatpush3.msra.mxu0 %v150_v12  ;;  %640 = vmatpush3.msra.mxu1 %v167_v36 }
  0x12   :  { %648 = vmatprep.subr.mxu0 %v157_v15  ;;  %641 = vmatprep.subr.mxu1 %v174_v37 }
  0x13   :  { %649 = vmatpush3.msra.mxu0 %v157_v15  ;;  %642 = vmatpush3.msra.mxu1 %v174_v37 }
  0x14   :  { %650 = vmatprep.subr.mxu0 %v164_v16  ;;  %644 = vmatmul.mubr.f32.vlgmr.msra.gmra.mxu1 %v740_v14 }
  0x15   :  { %651 = vmatpush3.msra.mxu0 %v164_v16  ;;  %657 = vmatprep.subr.mxu1 %v719_v3 }
  0x16   :  { %652 = vmatprep.subr.mxu0 %v171_v17  ;;  %654 = vmatprep.mubr.f32.mxu0 %v105_v19 }
  0x17   :  { %653 = vmatpush3.msra.mxu0 %v171_v17  ;;  %658 = vmatpush3.msra.mxu1 %v719_v3 }
  0x18   :  { %655 = vmatmul.mubr.f32.vlgmr.msra.gmra.mxu0 %v115_v21  ;;  %659 = vmatprep.subr.mxu1 %v721_v4 }
  0x19   :  { %668 = vmatprep.subr.mxu0 %v151_v18  ;;  %660 = vmatpush3.msra.mxu1 %v721_v4 }
  0x1a   :  { %669 = vmatpush3.msra.mxu0 %v151_v18  ;;  %661 = vmatprep.subr.mxu1 %v723_v5 }
  0x1b   :  { %670 = vmatprep.subr.mxu0 %v158_v20  ;;  %662 = vmatpush3.msra.mxu1 %v723_v5 }
  0x1c   :  { %671 = vmatpush3.msra.mxu0 %v158_v20  ;;  %663 = vmatprep.subr.mxu1 %v734_v9 }
  0x1d   :  { %672 = vmatprep.subr.mxu0 %v165_v22  ;;  %664 = vmatpush3.msra.mxu1 %v734_v9 }
  0x1e   :  { %665 = vmatprep.mubr.f32.mxu1 %v106_v25  ;;  %673 = vmatpush3.msra.mxu0 %v165_v22 }
  0x1f   :  { %666 = vmatmul.mubr.f32.vlgmr.msra.gmra.mxu1 %v116_v27  ;;  %674 = vmatprep.subr.mxu0 %v172_v23 }
  0x20   :  { %679 = vmatprep.subr.mxu1 %v719_v3  ;;  %675 = vmatpush3.msra.mxu0 %v172_v23 }
  0x21   :  { %676 = vmatprep.mubr.f32.mxu0 %v738_v13  ;;  %680 = vmatpush3.msra.mxu1 %v719_v3 }
  0x22   :  { %677 = vmatmul.mubr.f32.vlgmr.msra.gmra.mxu0 %v740_v14  ;;  %681 = vmatprep.subr.mxu1 %v721_v4 }
  0x23   :  { %687 = vmatprep.mubr.f32.mxu1 %v738_v13  ;;  %682 = vmatpush3.msra.mxu1 %v721_v4 }
  0x24   :  { %683 = vmatprep.subr.mxu1 %v723_v5 }
  0x25   :  { %684 = vmatpush3.msra.mxu1 %v723_v5 }
  0x26   :  { %685 = vmatprep.subr.mxu1 %v734_v9 }
  0x27   :  { %686 = vmatpush3.msra.mxu1 %v734_v9 }
  0x28   :  { %688 = vmatmul.mubr.f32.vlgmr.msra.gmra.mxu1 %v740_v14 }
  0xd0   :  { %v634_v38 = vpop.f32.mrf.mxu0 }
  0xd2   :  { %v110_v39 = vpop.f32.mrf.mxu0 }
  0xd4   :  { %v645_v40 = vpop.f32.mrf.mxu1 }
  0xd5   :  { %v218_v43 = vadd.f32 %v645_v40, %v634_v38 }
  0xd6   :  { %v211_v41 = vpop.f32.mrf.mxu1 }
  0xd7   :  { %v212_v45 = vadd.f32 %v211_v41, %v110_v39 }
  0xd8   :  { %v656_v42 = vpop.f32.mrf.mxu0 }
  0xd9   :  { %v305_v47 = vadd.f32 %v656_v42, %v218_v43 }
  0xda   :  { %v297_v46 = vpop.f32.mrf.mxu0 }
  0xdb   :  { %v298_v50 = vadd.f32 %v297_v46, %v212_v45 }
  0xdf   :  { %v667_v44 = vpop.f32.mrf.mxu1 }
  0xe0   :  { %v390_v51 = vadd.f32 %v667_v44, %v305_v47 }
  0xe1   :  { %v381_v48 = vpop.f32.mrf.mxu1 }
  0xe2   :  { %v678_v49 = vpop.f32.mrf.mxu0  ;;  %v382_v52 = vadd.f32 %v381_v48, %v298_v50 }
  0xe3   :  { %v479_v54 = vadd.f32 %v678_v49, %v390_v51 }
  0xe4   :  { %v472_v53 = vpop.f32.mrf.mxu0 }
  0xe5   :  { %v473_v57 = vadd.f32 %v472_v53, %v382_v52 }
  0xe8   :  { %v689_v55 = vpop.f32.mrf.mxu1 }
  0xe9   :  { %v560_v58 = vadd.f32 %v689_v55, %v479_v54 }
  0xea   :  { %v553_v59 = vpop.f32.mrf.mxu1 }
  0xeb   :  { %v580_v60 = vadd.f32 %v587_v56, %v560_v58  ;;  %v554_v61 = vadd.f32 %v553_v59, %v473_v57 }
  0xed   :  { %582 = vst [vmem:[%s788_s3 + $0x8] sm:$0xff] %v580_v60  ;;  %v579_v62 = vadd.f32 %v587_v56, %v554_v61 }
  0xef   :  { %581 = vst [vmem:[%s788_s3] sm:$0xff] %v579_v62 }

// kernel: lm1b_forward.7
= control target key start
LH: loop header
LB: loop body
LE: loop exit
PB: predicated region body
PF: predicated region fallthrough
CT: control target
= control target key end

     0   :  { %vm26_vm0 = vcmask 130048   ;;  %s667_s1 = inlined_call_operand.vmem [shape: f32[16,128], index: 1, kind: input, shape index: {}]   ;;  %s668_s0 = inlined_call_operand.vmem [shape: f32[16,16], index: 0, kind: input, shape index: {}]   ;;  %s669_s2 = inlined_call_operand.vmem [shape: f32[1,128], index: 2, kind: input, shape index: {}]   ;;  %s670_s3 = inlined_call_operand.vmem [shape: f32[16,128], index: 3, kind: output, shape index: {}]  }
   0x1   :  { %v25_v0 = vld [vmem:[%s667_s1 + $0x8] sm:$0xff]  ;;  %v24_v1 = vld [vmem:[%s667_s1] sm:$0xff] }
   0x2   :  { %v22_v2 = vld [vmem:[%s668_s0] sm:$0xff]  ;;  %v62_v3 = vand.u32 4294901760, %v25_v0  ;;  %v65_v4 = vand.u32 4294901760, %v24_v1  ;;  %v23_v5 = vld [vmem:[%s668_s0 + $0x8] sm:$0xff] }
   0x3   :  { %v28_v6 = vsel %vm26_vm0, %v22_v2, 0  ;;  %v31_v7 = vsel %vm26_vm0, %v23_v5, 0  ;;  %v559_v44 = vld [vmem:[%s669_s2] ss:$0 sm:$0xff] }
   0x4   :  { %v100_v8 = vand.u32 4294901760, %v28_v6  ;;  %584 = vmatprep.subr.mxu0 %v62_v3  ;;  %v150_v9 = vsub.f32 %v25_v0, %v62_v3  ;;  %v110_v10 = vand.u32 4294901760, %v31_v7  ;;  %v157_v11 = vsub.f32 %v24_v1, %v65_v4 }
   0x5   :  { %585 = vmatpush3.msra.mxu0 %v62_v3 }
   0x6   :  { %v101_v12 = vsub.f32 %v28_v6, %v100_v8  ;;  %595 = vmatprep.mubr.f32.mxu1 %v100_v8  ;;  %586 = vmatprep.subr.mxu0 %v65_v4  ;;  %v151_v13 = vand.u32 4294901760, %v150_v9  ;;  %v111_v14 = vsub.f32 %v31_v7, %v110_v10  ;;  %v158_v15 = vand.u32 4294901760, %v157_v11 }
   0x7   :  { %587 = vmatpush3.msra.mxu0 %v65_v4 }
   0x8   :  { %v102_v16 = vand.u32 4294901760, %v101_v12  ;;  %v152_v17 = vsub.f32 %v150_v9, %v151_v13  ;;  %v112_v18 = vand.u32 4294901760, %v111_v14  ;;  %v159_v19 = vsub.f32 %v157_v11, %v158_v15  ;;  %598 = vmatprep.subr.mxu0 %v150_v9 }
   0xa   :  { %v103_v20 = vsub.f32 %v101_v12, %v102_v16  ;;  %v153_v21 = vand.u32 4294901760, %v152_v17  ;;  %v113_v22 = vsub.f32 %v111_v14, %v112_v18  ;;  %v160_v23 = vand.u32 4294901760, %v159_v19 }
   0xc   :  { %v104_v24 = vand.u32 4294901760, %v103_v20  ;;  %591 = vmatprep.subr.mxu1 %v153_v21  ;;  %v114_v25 = vand.u32 4294901760, %v113_v22 }
   0xd   :  { %592 = vmatpush3.msra.mxu1 %v153_v21 }
   0xe   :  { %588 = vmatprep.mubr.f32.mxu0 %v104_v24  ;;  %593 = vmatprep.subr.mxu1 %v160_v23 }
   0xf   :  { %589 = vmatmul.mubr.f32.vlgmr.msra.gmra.mxu0 %v114_v25  ;;  %594 = vmatpush3.msra.mxu1 %v160_v23 }
  0x10   :  { %599 = vmatpush3.msra.mxu0 %v150_v9  ;;  %596 = vmatmul.mubr.f32.vlgmr.msra.gmra.mxu1 %v110_v10 }
  0x11   :  { %600 = vmatprep.subr.mxu0 %v157_v11  ;;  %605 = vmatprep.subr.mxu1 %v62_v3 }
  0x12   :  { %601 = vmatpush3.msra.mxu0 %v157_v11  ;;  %602 = vmatprep.mubr.f32.mxu0 %v101_v12 }
  0x13   :  { %606 = vmatpush3.msra.mxu1 %v62_v3  ;;  %603 = vmatmul.mubr.f32.vlgmr.msra.gmra.mxu0 %v111_v14 }
  0x14   :  { %607 = vmatprep.subr.mxu1 %v65_v4  ;;  %612 = vmatprep.subr.mxu0 %v151_v13 }
  0x15   :  { %608 = vmatpush3.msra.mxu1 %v65_v4  ;;  %609 = vmatprep.mubr.f32.mxu1 %v102_v16 }
  0x16   :  { %613 = vmatpush3.msra.mxu0 %v151_v13  ;;  %610 = vmatmul.mubr.f32.vlgmr.msra.gmra.mxu1 %v112_v18 }
  0x17   :  { %614 = vmatprep.subr.mxu0 %v158_v15  ;;  %619 = vmatprep.subr.mxu1 %v62_v3 }
  0x18   :  { %615 = vmatpush3.msra.mxu0 %v158_v15  ;;  %616 = vmatprep.mubr.f32.mxu0 %v100_v8 }
  0x19   :  { %620 = vmatpush3.msra.mxu1 %v62_v3  ;;  %617 = vmatmul.mubr.f32.vlgmr.msra.gmra.mxu0 %v110_v10 }
  0x1a   :  { %621 = vmatprep.subr.mxu1 %v65_v4  ;;  %623 = vmatprep.mubr.f32.mxu1 %v100_v8 }
  0x1b   :  { %622 = vmatpush3.msra.mxu1 %v65_v4 }
  0x1c   :  { %624 = vmatmul.mubr.f32.vlgmr.msra.gmra.mxu1 %v110_v10 }
  0xcf   :  { %v590_v26 = vpop.f32.mrf.mxu0 }
  0xd0   :  { %v597_v28 = vpop.f32.mrf.mxu1 }
  0xd1   :  { %v106_v27 = vpop.f32.mrf.mxu0  ;;  %v204_v29 = vadd.f32 %v597_v28, %v590_v26 }
  0xd2   :  { %v197_v30 = vpop.f32.mrf.mxu1 }
  0xd3   :  { %v198_v31 = vadd.f32 %v197_v30, %v106_v27  ;;  %v604_v32 = vpop.f32.mrf.mxu0 }
  0xd4   :  { %v287_v33 = vadd.f32 %v604_v32, %v204_v29 }
  0xd5   :  { %v279_v34 = vpop.f32.mrf.mxu0 }
  0xd6   :  { %v280_v35 = vadd.f32 %v279_v34, %v198_v31  ;;  %v611_v36 = vpop.f32.mrf.mxu1 }
  0xd7   :  { %v370_v37 = vadd.f32 %v611_v36, %v287_v33 }
  0xd8   :  { %v361_v38 = vpop.f32.mrf.mxu1 }
  0xd9   :  { %v362_v39 = vadd.f32 %v361_v38, %v280_v35  ;;  %v618_v40 = vpop.f32.mrf.mxu0 }
  0xda   :  { %v453_v41 = vadd.f32 %v618_v40, %v370_v37 }
  0xdb   :  { %v446_v42 = vpop.f32.mrf.mxu0 }
  0xdc   :  { %v625_v43 = vpop.f32.mrf.mxu1  ;;  %v447_v45 = vadd.f32 %v446_v42, %v362_v39 }
  0xdd   :  { %v532_v46 = vadd.f32 %v625_v43, %v453_v41 }
  0xde   :  { %v525_v47 = vpop.f32.mrf.mxu1 }
  0xdf   :  { %v552_v48 = vadd.f32 %v559_v44, %v532_v46  ;;  %v526_v49 = vadd.f32 %v525_v47, %v447_v45 }
  0xe1   :  { %554 = vst [vmem:[%s670_s3 + $0x8] sm:$0xff] %v552_v48  ;;  %v551_v50 = vadd.f32 %v559_v44, %v526_v49 }
  0xe3   :  { %553 = vst [vmem:[%s670_s3] sm:$0xff] %v551_v50 }

// kernel: lm1b_forward.13
= control target key start
LH: loop header
LB: loop body
LE: loop exit
PB: predicated region body
PF: predicated region fallthrough
CT: control target
= control target key end

     0   :  { %vm27_vm0 = vcmask 130048   ;;  %s705_s0 = inlined_call_operand.vmem [shape: f32[16,16], index: 0, kind: input, shape index: {}]   ;;  %s706_s1 = inlined_call_operand.vmem [shape: f32[16,128], index: 1, kind: input, shape index: {}]   ;;  %s707_s2 = inlined_call_operand.vmem [shape: f32[1,128], index: 2, kind: input, shape index: {}]   ;;  %s708_s3 = inlined_call_operand.hbm [shape: f32[16,128], index: 3, kind: output, shape index: {}]  }
   0x1   :  { %v26_v0 = vld [vmem:[%s706_s1 + $0x8] sm:$0xff]  ;;  %v25_v1 = vld [vmem:[%s706_s1] sm:$0xff] }
   0x2   :  { %v23_v2 = vld [vmem:[%s705_s0] sm:$0xff]  ;;  %v63_v3 = vand.u32 4294901760, %v26_v0  ;;  %v66_v4 = vand.u32 4294901760, %v25_v1  ;;  %v24_v5 = vld [vmem:[%s705_s0 + $0x8] sm:$0xff] }
   0x3   :  { %v29_v6 = vsel %vm27_vm0, %v23_v2, 0 }
   0x4   :  { %8 = vsyncpa [#allocation4], 0  ;;  %v32_v7 = vsel %vm27_vm0, %v24_v5, 0  ;;  %v101_v8 = vand.u32 4294901760, %v29_v6  ;;  %597 = vmatprep.subr.mxu0 %v63_v3  ;;  %v151_v9 = vsub.f32 %v26_v0, %v63_v3  ;;  %v158_v11 = vsub.f32 %v25_v1, %v66_v4  ;;  %v572_v44 = vld [vmem:[%s707_s2] ss:$0 sm:$0xff] }
   0x5   :  { %v111_v10 = vand.u32 4294901760, %v32_v7  ;;  %598 = vmatpush3.msra.mxu0 %v63_v3  ;;  %s664_s20 = smov [#allocation3]  }
   0x6   :  { %v102_v12 = vsub.f32 %v29_v6, %v101_v8  ;;  %608 = vmatprep.mubr.f32.mxu1 %v101_v8  ;;  %599 = vmatprep.subr.mxu0 %v66_v4  ;;  %v152_v13 = vand.u32 4294901760, %v151_v9  ;;  %v159_v15 = vand.u32 4294901760, %v158_v11  ;;  %s561_s21 = sshll.u32 %s664_s20, 4  ;;  %s562_s21 = int_to_ptr.vmem [resolvable:$true] %s561_s21 }
   0x7   :  { %v112_v14 = vsub.f32 %v32_v7, %v111_v10  ;;  %600 = vmatpush3.msra.mxu0 %v66_v4  ;;  %s642_s22 = scalar_lea.vmem %s562_s21, 256  ;;  %p647_p1 = scmp.lt.s32.totalorder %s562_s21, %s562_s21 }
   0x8   :  { %v103_v16 = vand.u32 4294901760, %v102_v12  ;;  %v153_v17 = vsub.f32 %v151_v9, %v152_v13  ;;  %v160_v19 = vsub.f32 %v158_v11, %v159_v15  ;;  %611 = vmatprep.subr.mxu0 %v151_v9  ;;  %p643_p0 = scmp.ne.s32.totalorder %s562_s21, %s642_s22  ;;  %p648_p2 = scmp.lt.s32.totalorder %s642_s22, %s642_s22 }
   0x9   :  { %v113_v18 = vand.u32 4294901760, %v112_v14 }
   0xa   :  { %v104_v20 = vsub.f32 %v102_v12, %v103_v16  ;;  %v154_v21 = vand.u32 4294901760, %v153_v17  ;;  %v161_v23 = vand.u32 4294901760, %v160_v19  ;;  %p649_p3 = por %p648_p2, %p647_p1 }
   0xb   :  { %v114_v22 = vsub.f32 %v112_v14, %v113_v18 }
   0xc   :  { %v105_v24 = vand.u32 4294901760, %v104_v20  ;;  %604 = vmatprep.subr.mxu1 %v154_v21  ;;  %p650_p4 = pnand %p649_p3, %p643_p0 }
   0xd   :  { %v115_v25 = vand.u32 4294901760, %v114_v22  ;;  %605 = vmatpush3.msra.mxu1 %v154_v21 }
   0xe   :  { %601 = vmatprep.mubr.f32.mxu0 %v105_v24  ;;  %606 = vmatprep.subr.mxu1 %v161_v23 }
   0xf   :  { %602 = vmatmul.mubr.f32.vlgmr.msra.gmra.mxu0 %v115_v25  ;;  %607 = vmatpush3.msra.mxu1 %v161_v23 }
  0x10   :  { %612 = vmatpush3.msra.mxu0 %v151_v9  ;;  %609 = vmatmul.mubr.f32.vlgmr.msra.gmra.mxu1 %v111_v10 }
  0x11   :  { %613 = vmatprep.subr.mxu0 %v158_v11  ;;  %618 = vmatprep.subr.mxu1 %v63_v3 }
  0x12   :  { %614 = vmatpush3.msra.mxu0 %v158_v11  ;;  %615 = vmatprep.mubr.f32.mxu0 %v102_v12 }
  0x13   :  { %619 = vmatpush3.msra.mxu1 %v63_v3  ;;  %616 = vmatmul.mubr.f32.vlgmr.msra.gmra.mxu0 %v112_v14 }
  0x14   :  { %620 = vmatprep.subr.mxu1 %v66_v4  ;;  %625 = vmatprep.subr.mxu0 %v152_v13 }
  0x15   :  { %621 = vmatpush3.msra.mxu1 %v66_v4  ;;  %622 = vmatprep.mubr.f32.mxu1 %v103_v16 }
  0x16   :  { %626 = vmatpush3.msra.mxu0 %v152_v13  ;;  %623 = vmatmul.mubr.f32.vlgmr.msra.gmra.mxu1 %v113_v18 }
  0x17   :  { %627 = vmatprep.subr.mxu0 %v159_v15  ;;  %632 = vmatprep.subr.mxu1 %v63_v3 }
  0x18   :  { %628 = vmatpush3.msra.mxu0 %v159_v15  ;;  %629 = vmatprep.mubr.f32.mxu0 %v101_v8 }
  0x19   :  { %633 = vmatpush3.msra.mxu1 %v63_v3  ;;  %630 = vmatmul.mubr.f32.vlgmr.msra.gmra.mxu0 %v111_v10 }
  0x1a   :  { %634 = vmatprep.subr.mxu1 %v66_v4  ;;  %636 = vmatprep.mubr.f32.mxu1 %v101_v8 }
  0x1b   :  { %635 = vmatpush3.msra.mxu1 %v66_v4 }
  0x1c   :  { %637 = vmatmul.mubr.f32.vlgmr.msra.gmra.mxu1 %v111_v10 }
  0xcf   :  { %v603_v26 = vpop.f32.mrf.mxu0 }
  0xd0   :  { %v610_v28 = vpop.f32.mrf.mxu1 }
  0xd1   :  { %v107_v27 = vpop.f32.mrf.mxu0  ;;  %v205_v29 = vadd.f32 %v610_v28, %v603_v26 }
  0xd2   :  { %v198_v30 = vpop.f32.mrf.mxu1 }
  0xd3   :  { %v199_v31 = vadd.f32 %v198_v30, %v107_v27  ;;  %v617_v32 = vpop.f32.mrf.mxu0 }
  0xd4   :  { %v288_v33 = vadd.f32 %v617_v32, %v205_v29 }
  0xd5   :  { %v280_v34 = vpop.f32.mrf.mxu0 }
  0xd6   :  { %v281_v35 = vadd.f32 %v280_v34, %v199_v31  ;;  %v624_v36 = vpop.f32.mrf.mxu1 }
  0xd7   :  { %v371_v37 = vadd.f32 %v624_v36, %v288_v33 }
  0xd8   :  { %v362_v38 = vpop.f32.mrf.mxu1 }
  0xd9   :  { %v363_v39 = vadd.f32 %v362_v38, %v281_v35  ;;  %v631_v40 = vpop.f32.mrf.mxu0 }
  0xda   :  { %v454_v41 = vadd.f32 %v631_v40, %v371_v37 }
  0xdb   :  { %v447_v42 = vpop.f32.mrf.mxu0 }
  0xdc   :  { %v638_v43 = vpop.f32.mrf.mxu1  ;;  %v448_v45 = vadd.f32 %v447_v42, %v363_v39 }
  0xdd   :  { %v533_v46 = vadd.f32 %v638_v43, %v454_v41 }
  0xde   :  { %v526_v47 = vpop.f32.mrf.mxu1 }
  0xdf   :  { %v553_v48 = vadd.f32 %v572_v44, %v533_v46  ;;  %v527_v49 = vadd.f32 %v526_v47, %v448_v45 }
  0xe1   :  { %555 = vst [vmem:[#allocation3 + $0x8] sm:$0xff] %v553_v48  ;;  %v552_v50 = vadd.f32 %v572_v44, %v527_v49 }
  0xe3   :  { %554 = vst [vmem:[#allocation3] sm:$0xff] %v552_v50 }
  0xe4   :  { %653 = shalt.err (!%p650_p4)
}
  0xe5   :  { %s665_s23 = smov 128   ;;  %s666_s2 = smov 8  }
  0xe6   :  { %567 = dma.vmem_to_hbm [thread:$0]  %s562_s21, 256, %s708_s3, [#allocation4], %s665_s23, %s665_s23, %s666_s2  }
  0xe7   :  { %662 = dma.done.wait [#allocation4], 256  }
  0xe8   :  { %663 = vsyncadd [#allocation4], 4294967040 }
  0xe9   :  { %571 = vsyncpa [#allocation4], 1 }

// kernel: lm1b_forward.8
= control target key start
LH: loop header
LB: loop body
LE: loop exit
PB: predicated region body
PF: predicated region fallthrough
CT: control target
= control target key end

     0   :  { %vm27_vm0 = vcmask 254976   ;;  %v5454_v3 = vmov 0.0   ;;  %vm5455_vm1 = vmmov 0   ;;  %s6290_s0 = inlined_call_operand.vmem [shape: f32[8,2,128], index: 0, kind: input, shape index: {}]   ;;  %s6291_s1 = inlined_call_operand.vmem [shape: f32[32,128], index: 1, kind: input, shape index: {}]   ;;  %s6292_s2 = inlined_call_operand.vmem [shape: f32[1,32], index: 2, kind: input, shape index: {}]   ;;  %s6293_s3 = inlined_call_operand.vmem [shape: f32[1,32], index: 3, kind: input, shape index: {}]   ;;  %s6294_s4 = inlined_call_operand.vmem [shape: f32[1,32], index: 4, kind: input, shape index: {}]   ;;  %s6295_s5 = inlined_call_operand.vmem [shape: f32[8,2,32], index: 5, kind: output, shape index: {0}]   ;;  %s6296_s6 = inlined_call_operand.hbm [shape: f32[2,32], index: 6, kind: output, shape index: {1}]  }
   0x1   :  { %v33_v0 = vld [vmem:[%s6291_s1 + $0x18] sm:$0xff]  ;;  %v32_v1 = vld [vmem:[%s6291_s1 + $0x10] sm:$0xff]  ;;  %v31_v2 = vld [vmem:[%s6291_s1 + $0x8] sm:$0xff]  ;;  %4767 = vmatprep.subr.mxu0 %v5454_v3  ;;  %4778 = vmatprep.subr.mxu1 %v5454_v3  ;;  %28 = vst.msk [vmem:[#allocation2] sm:$0x3] %vm27_vm0, %v5454_v3 }
   0x2   :  { %v5506_v4 = vand.u32 4294901760, %v33_v0  ;;  %v5508_v5 = vand.u32 4294901760, %v32_v1  ;;  %v5510_v6 = vand.u32 4294901760, %v31_v2  ;;  %v30_v7 = vld [vmem:[%s6291_s1] sm:$0xff]  ;;  %29 = vst.msk [vmem:[#allocation3] sm:$0x3] %vm27_vm0, %v5454_v3  ;;  %4775 = vmatprep.mubr.msk.f32.mxu0 %vm5455_vm1, %v5454_v3  ;;  %4786 = vmatprep.mubr.msk.f32.mxu1 %vm5455_vm1, %v5454_v3 }
   0x3   :  { %v5519_v8 = vand.u32 4294901760, %v30_v7 }
   0x4   :  { %12 = vsyncpa [#allocation5], 0  ;;  %4768 = vmatpush3.msra.mxu0 %v5506_v4  ;;  %v5527_v9 = vsub.f32 %v33_v0, %v5506_v4  ;;  %v5530_v10 = vsub.f32 %v32_v1, %v5508_v5  ;;  %v5533_v11 = vsub.f32 %v31_v2, %v5510_v6  ;;  %vm40_vm2 = vcmask 261120   ;;  %s5456_s1 = smov 64   ;;  %v39_v47 = vld [vmem:[%s6290_s0] sm:$0x3] }
   0x5   :  { %4769 = vmatprep.subr.mxu0 %v5454_v3  ;;  %v5537_v12 = vsub.f32 %v30_v7, %v5519_v8  ;;  %v5649_v52 = vld [vmem:[%s6292_s2] ss:$0 sm:$0xff]  ;;  %s5457_s9 = smov 96   ;;  %s5458_s12 = smov 32  }
   0x6   :  { %v5540_v13 = vand.u32 4294901760, %v5527_v9  ;;  %4770 = vmatpush3.msra.mxu0 %v5508_v5  ;;  %v5544_v14 = vand.u32 4294901760, %v5530_v10  ;;  %v5547_v15 = vand.u32 4294901760, %v5533_v11  ;;  %v5657_v55 = vld [vmem:[%s6293_s3] ss:$0 sm:$0xff] }
   0x7   :  { %4771 = vmatprep.subr.mxu0 %v5454_v3  ;;  %v5551_v16 = vand.u32 4294901760, %v5537_v12 }
   0x8   :  { %v151_v17 = vsub.f32 %v5527_v9, %v5540_v13  ;;  %v158_v18 = vsub.f32 %v5530_v10, %v5544_v14  ;;  %4772 = vmatpush3.msra.mxu0 %v5510_v6  ;;  %v165_v19 = vsub.f32 %v5533_v11, %v5547_v15  ;;  %v37_v20 = vld [vmem:[#allocation2] sm:$0x3] }
   0x9   :  { %4773 = vmatprep.subr.mxu0 %v5454_v3  ;;  %v172_v23 = vsub.f32 %v5537_v12, %v5551_v16  ;;  %v42_v24 = vsel %vm40_vm2, %v37_v20, 0  ;;  %v38_v32 = vld [vmem:[#allocation3] sm:$0x3] }
   0xa   :  { %v5561_v21 = vand.u32 4294901760, %v151_v17  ;;  %v5563_v22 = vand.u32 4294901760, %v158_v18  ;;  %4774 = vmatpush3.msra.mxu0 %v5519_v8  ;;  %v113_v25 = vand.u32 4294901760, %v42_v24  ;;  %v5571_v26 = vand.u32 4294901760, %v165_v19  ;;  %549 = vrot.lane.b32.xlu1 %v38_v32, %s5456_s1 }
   0xb   :  { %4789 = vmatprep.subr.mxu0 %v5454_v3  ;;  %v5575_v28 = vand.u32 4294901760, %v172_v23  ;;  %v536_v54 = vmul.f32 %v5649_v52, %v38_v32  ;;  %v559_v56 = vmul.f32 %v5657_v55, %v38_v32 }
   0xc   :  { %4779 = vmatpush3.msra.mxu1 %v5561_v21  ;;  %v114_v27 = vsub.f32 %v42_v24, %v113_v25 }
   0xd   :  { %4780 = vmatprep.subr.mxu1 %v5454_v3 }
   0xe   :  { %4781 = vmatpush3.msra.mxu1 %v5563_v22  ;;  %v115_v29 = vand.u32 4294901760, %v114_v27 }
   0xf   :  { %4782 = vmatprep.subr.mxu1 %v5454_v3 }
  0x10   :  { %4783 = vmatpush3.msra.mxu1 %v5571_v26  ;;  %v116_v30 = vsub.f32 %v114_v27, %v115_v29 }
  0x11   :  { %4784 = vmatprep.subr.mxu1 %v5454_v3 }
  0x12   :  { %4785 = vmatpush3.msra.mxu1 %v5575_v28  ;;  %v117_v31 = vand.u32 4294901760, %v116_v30 }
  0x13   :  { %4800 = vmatprep.subr.mxu1 %v5454_v3  ;;  %4787 = vmatmul.mubr.f32.vlgmr.msra.gmra.mxu1 %v113_v25 }
  0x14   :  { %4801 = vmatpush3.msra.mxu1 %v5506_v4  ;;  %4808 = vmatprep.mubr.msk.f32.mxu1 %vm5455_vm1, %v5454_v3 }
  0x15   :  { %4776 = vmatmul.mubr.f32.vlgmr.msra.gmra.mxu0 %v117_v31  ;;  %4802 = vmatprep.subr.mxu1 %v5454_v3 }
  0x16   :  { %4790 = vmatpush3.msra.mxu0 %v5527_v9  ;;  %4803 = vmatpush3.msra.mxu1 %v5508_v5 }
  0x17   :  { %4791 = vmatprep.subr.mxu0 %v5454_v3  ;;  %4804 = vmatprep.subr.mxu1 %v5454_v3 }
  0x18   :  { %4792 = vmatpush3.msra.mxu0 %v5530_v10  ;;  %4805 = vmatpush3.msra.mxu1 %v5510_v6 }
  0x19   :  { %4793 = vmatprep.subr.mxu0 %v5454_v3  ;;  %4806 = vmatprep.subr.mxu1 %v5454_v3 }
  0x1a   :  { %4794 = vmatpush3.msra.mxu0 %v5533_v11  ;;  %4797 = vmatprep.mubr.msk.f32.mxu0 %vm5455_vm1, %v5454_v3 }
  0x1b   :  { %4795 = vmatprep.subr.mxu0 %v5454_v3  ;;  %4807 = vmatpush3.msra.mxu1 %v5519_v8 }
  0x1c   :  { %4796 = vmatpush3.msra.mxu0 %v5537_v12  ;;  %4822 = vmatprep.subr.mxu1 %v5454_v3 }
  0x1d   :  { %4798 = vmatmul.mubr.f32.vlgmr.msra.gmra.mxu0 %v114_v27  ;;  %4811 = vmatprep.subr.mxu0 %v5454_v3  ;;  %v5670_v27 = vld [vmem:[%s6294_s4] ss:$0 sm:$0xff] }
  0x1e   :  { %4809 = vmatmul.mubr.f32.vlgmr.msra.gmra.mxu1 %v115_v29  ;;  %4812 = vmatpush3.msra.mxu0 %v5540_v13 }
  0x1f   :  { %4823 = vmatpush3.msra.mxu1 %v5506_v4  ;;  %4813 = vmatprep.subr.mxu0 %v5454_v3 }
  0x20   :  { %4824 = vmatprep.subr.mxu1 %v5454_v3  ;;  %4814 = vmatpush3.msra.mxu0 %v5544_v14 }
  0x21   :  { %4825 = vmatpush3.msra.mxu1 %v5508_v5  ;;  %4815 = vmatprep.subr.mxu0 %v5454_v3 }
  0x22   :  { %4826 = vmatprep.subr.mxu1 %v5454_v3  ;;  %4816 = vmatpush3.msra.mxu0 %v5547_v15 }
  0x23   :  { %4827 = vmatpush3.msra.mxu1 %v5510_v6  ;;  %4817 = vmatprep.subr.mxu0 %v5454_v3 }
  0x24   :  { %4828 = vmatprep.subr.mxu1 %v5454_v3  ;;  %4818 = vmatpush3.msra.mxu0 %v5551_v16 }
  0x25   :  { %4819 = vmatprep.mubr.msk.f32.mxu0 %vm5455_vm1, %v5454_v3  ;;  %4829 = vmatpush3.msra.mxu1 %v5519_v8 }
  0x26   :  { %4830 = vmatprep.mubr.msk.f32.mxu1 %vm5455_vm1, %v5454_v3  ;;  %4820 = vmatmul.mubr.f32.vlgmr.msra.gmra.mxu0 %v113_v25 }
  0x27   :  { %4831 = vmatmul.mubr.f32.vlgmr.msra.gmra.mxu1 %v113_v25  ;;  %4844 = vmatprep.subr.mxu1 %v5454_v3 }
  0x28   :  { %4845 = vmatpush3.msra.mxu1 %v5561_v21  ;;  %4833 = vmatprep.subr.mxu0 %v5454_v3 }
  0x29   :  { %4846 = vmatprep.subr.mxu1 %v5454_v3  ;;  %4852 = vmatprep.mubr.msk.f32.mxu1 %vm5455_vm1, %v5454_v3 }
  0x2a   :  { %4847 = vmatpush3.msra.mxu1 %v5563_v22  ;;  %4834 = vmatpush3.msra.mxu0 %v5506_v4 }
  0x2b   :  { %4848 = vmatprep.subr.mxu1 %v5454_v3  ;;  %4835 = vmatprep.subr.mxu0 %v5454_v3 }
  0x2c   :  { %4849 = vmatpush3.msra.mxu1 %v5571_v26  ;;  %4836 = vmatpush3.msra.mxu0 %v5508_v5 }
  0x2d   :  { %4850 = vmatprep.subr.mxu1 %v5454_v3  ;;  %4837 = vmatprep.subr.mxu0 %v5454_v3 }
  0x2e   :  { %4851 = vmatpush3.msra.mxu1 %v5575_v28  ;;  %4838 = vmatpush3.msra.mxu0 %v5510_v6 }
  0x2f   :  { %4866 = vmatprep.subr.mxu1 %v5454_v3  ;;  %4839 = vmatprep.subr.mxu0 %v5454_v3 }
  0x30   :  { %4840 = vmatpush3.msra.mxu0 %v5519_v8  ;;  %4841 = vmatprep.mubr.msk.f32.mxu0 %vm5455_vm1, %v5454_v3 }
  0x31   :  { %4855 = vmatprep.subr.mxu0 %v5454_v3 }
  0x7c   :  { %v550_v19 = vpop.permute.xlu1 %549 }
  0xd3   :  { %v210_v33 = vpop.f32.mrf.mxu1 }
  0xd5   :  { %v119_v34 = vpop.f32.mrf.mxu0  ;;  %v4788_v35 = vpop.f32.mrf.mxu1 }
  0xd6   :  { %v211_v39 = vadd.f32 %v210_v33, %v119_v34 }
  0xd7   :  { %v4777_v36 = vpop.f32.mrf.mxu0 }
  0xdd   :  { %v290_v37 = vpop.f32.mrf.mxu0 }
  0xde   :  { %v367_v38 = vpop.f32.mrf.mxu1  ;;  %v291_v42 = vadd.f32 %v290_v37, %v211_v39 }
  0xdf   :  { %v4799_v40 = vpop.f32.mrf.mxu0 }
  0xe0   :  { %v4810_v41 = vpop.f32.mrf.mxu1  ;;  %v368_v43 = vadd.f32 %v367_v38, %v291_v42 }
  0xe6   :  { %v450_v44 = vpop.f32.mrf.mxu0 }
  0xe7   :  { %v451_v45 = vadd.f32 %v450_v44, %v368_v43  ;;  %v525_v46 = vpop.f32.mrf.mxu1 }
  0xe8   :  { %v4821_v48 = vpop.f32.mrf.mxu0 }
  0xe9   :  { %v526_v49 = vadd.f32 %v525_v46, %v451_v45  ;;  %v4832_v50 = vpop.f32.mrf.mxu1 }
  0xeb   :  { %v529_v51 = vadd.f32 %v526_v49, %v39_v47 }
  0xed   :  { %5301 = vtanh.f32 %v529_v51  ;;  %v560_v57 = vadd.f32 %v559_v56, %v529_v51 }
  0xef   :  { %v4489_v58 = vmul.f32 -1.442695, %v560_v57 }
  0xf1   :  { %5303 = vpow2.f32 %v4489_v58 }
  0xfa   :  { %v5302_v53 = vpop.eup %5301 }
  0xfb   :  { %569 = vrot.lane.b32.xlu0 %v5302_v53, %s5457_s9 }
  0xfe   :  { %v5304_v59 = vpop.eup %5303 }
  0xff   :  { %538 = vrot.lane.b32.xlu0 %v536_v54, %s5456_s1  ;;  %v564_v60 = vadd.f32 1.0, %v5304_v59 }
 0x101   :  { %5305 = vrcp.f32 %v564_v60 }
 0x10e   :  { %v5306_v61 = vpop.eup %5305 }
 0x16d   :  { %v570_v62 = vpop.permute.xlu0 %569 }
 0x16e   :  { %v572_v63 = vmul.f32 %v5306_v61, %v570_v62 }
 0x170   :  { %574 = vrot.lane.b32.xlu1 %v572_v63, %s5456_s1 }
 0x171   :  { %v539_v0 = vpop.permute.xlu0 %538 }
 0x172   :  { %v541_v1 = vadd.f32 %v539_v0, %v529_v51  ;;  %v4492_v0 = vld [vmem:[%s6290_s0 + $0x2] sm:$0x3] }
 0x174   :  { %v4487_v2 = vmul.f32 -1.442695, %v541_v1 }
 0x176   :  { %5307 = vpow2.f32 %v4487_v2 }
 0x183   :  { %v5308_v7 = vpop.eup %5307 }
 0x184   :  { %v545_v17 = vadd.f32 1.0, %v5308_v7 }
 0x186   :  { %5309 = vrcp.f32 %v545_v17 }
 0x193   :  { %v5310_v18 = vpop.eup %5309 }
 0x194   :  { %v552_v20 = vmul.f32 %v5310_v18, %v550_v19 }
 0x1e2   :  { %v575_v23 = vpop.permute.xlu1 %574 }
 0x1e3   :  { %v5661_v24 = vadd.f32 %v575_v23, %v552_v20 }
 0x1e5   :  { %5311 = vtanh.f32 %v5661_v24  ;;  %585 = vrot.lane.b32.xlu0 %v5661_v24, %s5456_s1 }
 0x1f2   :  { %v5312_v25 = vpop.eup %5311 }
 0x1f3   :  { %602 = vrot.lane.b32.xlu0 %v5312_v25, %s5458_s12 }
 0x257   :  { %v5672_v29 = vpop.permute.xlu0 %585 }
 0x258   :  { %v588_v30 = vmul.f32 %v5670_v27, %v5672_v29  ;;  %v1102_v39 = vmul.f32 %v5649_v52, %v5672_v29  ;;  %v1115_v18 = vmul.f32 %v5657_v55, %v5672_v29 }
 0x25a   :  { %590 = vrot.lane.b32.xlu1 %v588_v30, %s5457_s9 }
 0x265   :  { %v603_v37 = vpop.permute.xlu0 %602 }
 0x2cc   :  { %v591_v31 = vpop.permute.xlu1 %590 }
 0x2cd   :  { %v593_v32 = vadd.f32 %v591_v31, %v529_v51 }
 0x2cf   :  { %v4491_v33 = vmul.f32 -1.442695, %v593_v32 }
 0x2d1   :  { %5313 = vpow2.f32 %v4491_v33 }
 0x2de   :  { %v5314_v34 = vpop.eup %5313 }
 0x2df   :  { %v597_v35 = vadd.f32 1.0, %v5314_v34 }
 0x2e1   :  { %5315 = vrcp.f32 %v597_v35 }
 0x2ee   :  { %v5316_v36 = vpop.eup %5315 }
 0x2ef   :  { %v605_v38 = vmul.f32 %v5316_v36, %v603_v37 }
 0x2f1   :  { %607 = vrot.lane.b32.xlu1 %v605_v38, %s5458_s12 }
 0x2f5   :  { %1104 = vrot.lane.b32.xlu1 %v1102_v39, %s5456_s1 }
 0x363   :  { %v608_v40 = vpop.permute.xlu1 %607 }
 0x364   :  { %611 = vst.msk [vmem:[%s6295_s5] sm:$0x3] %vm27_vm0, %v608_v40  ;;  %v614_v41 = vsel %vm40_vm2, %v608_v40, 0 }
 0x365   :  { %v685_v42 = vand.u32 4294901760, %v614_v41 }
 0x367   :  { %v686_v43 = vsub.f32 %v614_v41, %v685_v42  ;;  %4853 = vmatmul.mubr.f32.vlgmr.msra.gmra.mxu1 %v685_v42  ;;  %v1105_v33 = vpop.permute.xlu1 %1104 }
 0x368   :  { %4867 = vmatpush3.msra.mxu1 %v5506_v4  ;;  %4874 = vmatprep.mubr.msk.f32.mxu1 %vm5455_vm1, %v5454_v3 }
 0x369   :  { %v687_v44 = vand.u32 4294901760, %v686_v43  ;;  %4868 = vmatprep.subr.mxu1 %v5454_v3 }
 0x36a   :  { %4869 = vmatpush3.msra.mxu1 %v5508_v5 }
 0x36b   :  { %v688_v45 = vsub.f32 %v686_v43, %v687_v44  ;;  %4870 = vmatprep.subr.mxu1 %v5454_v3 }
 0x36c   :  { %4871 = vmatpush3.msra.mxu1 %v5510_v6 }
 0x36d   :  { %4872 = vmatprep.subr.mxu1 %v5454_v3  ;;  %v689_v46 = vand.u32 4294901760, %v688_v45 }
 0x36e   :  { %4873 = vmatpush3.msra.mxu1 %v5519_v8 }
 0x36f   :  { %4875 = vmatmul.mubr.f32.vlgmr.msra.gmra.mxu1 %v687_v44  ;;  %4888 = vmatprep.subr.mxu1 %v5454_v3 }
 0x370   :  { %4842 = vmatmul.mubr.f32.vlgmr.msra.gmra.mxu0 %v689_v46  ;;  %4889 = vmatpush3.msra.mxu1 %v5506_v4 }
 0x371   :  { %4856 = vmatpush3.msra.mxu0 %v5527_v9  ;;  %4890 = vmatprep.subr.mxu1 %v5454_v3 }
 0x372   :  { %4857 = vmatprep.subr.mxu0 %v5454_v3  ;;  %4891 = vmatpush3.msra.mxu1 %v5508_v5 }
 0x373   :  { %4858 = vmatpush3.msra.mxu0 %v5530_v10  ;;  %4892 = vmatprep.subr.mxu1 %v5454_v3 }
 0x374   :  { %4859 = vmatprep.subr.mxu0 %v5454_v3  ;;  %4893 = vmatpush3.msra.mxu1 %v5510_v6 }
 0x375   :  { %4860 = vmatpush3.msra.mxu0 %v5533_v11  ;;  %4894 = vmatprep.subr.mxu1 %v5454_v3 }
 0x376   :  { %4861 = vmatprep.subr.mxu0 %v5454_v3  ;;  %4863 = vmatprep.mubr.msk.f32.mxu0 %vm5455_vm1, %v5454_v3 }
 0x377   :  { %4862 = vmatpush3.msra.mxu0 %v5537_v12  ;;  %4895 = vmatpush3.msra.mxu1 %v5519_v8 }
 0x378   :  { %4896 = vmatprep.mubr.msk.f32.mxu1 %vm5455_vm1, %v5454_v3  ;;  %4864 = vmatmul.mubr.f32.vlgmr.msra.gmra.mxu0 %v686_v43 }
 0x379   :  { %4877 = vmatprep.subr.mxu0 %v5454_v3  ;;  %4897 = vmatmul.mubr.f32.vlgmr.msra.gmra.mxu1 %v685_v42 }
 0x37a   :  { %4878 = vmatpush3.msra.mxu0 %v5540_v13  ;;  %4885 = vmatprep.mubr.msk.f32.mxu0 %vm5455_vm1, %v5454_v3 }
 0x37b   :  { %4879 = vmatprep.subr.mxu0 %v5454_v3  ;;  %4910 = vmatprep.subr.mxu1 %v5454_v3 }
 0x37c   :  { %4880 = vmatpush3.msra.mxu0 %v5544_v14  ;;  %4911 = vmatpush3.msra.mxu1 %v5561_v21 }
 0x37d   :  { %4881 = vmatprep.subr.mxu0 %v5454_v3  ;;  %4912 = vmatprep.subr.mxu1 %v5454_v3 }
 0x37e   :  { %4882 = vmatpush3.msra.mxu0 %v5547_v15  ;;  %4913 = vmatpush3.msra.mxu1 %v5563_v22 }
 0x37f   :  { %4883 = vmatprep.subr.mxu0 %v5454_v3  ;;  %4914 = vmatprep.subr.mxu1 %v5454_v3 }
 0x380   :  { %4884 = vmatpush3.msra.mxu0 %v5551_v16  ;;  %4915 = vmatpush3.msra.mxu1 %v5571_v26 }
 0x381   :  { %4886 = vmatmul.mubr.f32.vlgmr.msra.gmra.mxu0 %v685_v42  ;;  %4916 = vmatprep.subr.mxu1 %v5454_v3 }
 0x382   :  { %4917 = vmatpush3.msra.mxu1 %v5575_v28  ;;  %4899 = vmatprep.subr.mxu0 %v5454_v3 }
 0x383   :  { %4918 = vmatprep.mubr.msk.f32.mxu1 %vm5455_vm1, %v5454_v3  ;;  %4932 = vmatprep.subr.mxu1 %v5454_v3 }
 0x384   :  { %4900 = vmatpush3.msra.mxu0 %v5506_v4  ;;  %4907 = vmatprep.mubr.msk.f32.mxu0 %vm5455_vm1, %v5454_v3 }
 0x385   :  { %4901 = vmatprep.subr.mxu0 %v5454_v3 }
 0x386   :  { %4902 = vmatpush3.msra.mxu0 %v5508_v5 }
 0x387   :  { %4903 = vmatprep.subr.mxu0 %v5454_v3 }
 0x388   :  { %4904 = vmatpush3.msra.mxu0 %v5510_v6 }
 0x389   :  { %4905 = vmatprep.subr.mxu0 %v5454_v3 }
 0x38a   :  { %4906 = vmatpush3.msra.mxu0 %v5519_v8 }
 0x38b   :  { %4921 = vmatprep.subr.mxu0 %v5454_v3 }
 0x427   :  { %v782_v47 = vpop.f32.mrf.mxu1 }
 0x429   :  { %v4854_v48 = vpop.f32.mrf.mxu1 }
 0x42f   :  { %v939_v49 = vpop.f32.mrf.mxu1 }
 0x430   :  { %v691_v50 = vpop.f32.mrf.mxu0 }
 0x431   :  { %v4876_v51 = vpop.f32.mrf.mxu1  ;;  %v783_v57 = vadd.f32 %v782_v47, %v691_v50 }
 0x432   :  { %v4843_v53 = vpop.f32.mrf.mxu0 }
 0x438   :  { %v862_v54 = vpop.f32.mrf.mxu0 }
 0x439   :  { %v1097_v56 = vpop.f32.mrf.mxu1  ;;  %v863_v60 = vadd.f32 %v862_v54, %v783_v57 }
 0x43a   :  { %v4865_v58 = vpop.f32.mrf.mxu0 }
 0x43b   :  { %v4898_v59 = vpop.f32.mrf.mxu1  ;;  %v940_v61 = vadd.f32 %v939_v49, %v863_v60 }
 0x441   :  { %v1022_v62 = vpop.f32.mrf.mxu0 }
 0x442   :  { %v1023_v63 = vadd.f32 %v1022_v62, %v940_v61 }
 0x443   :  { %v4887_v1 = vpop.f32.mrf.mxu0 }
 0x444   :  { %v1098_v2 = vadd.f32 %v1097_v56, %v1023_v63 }
 0x446   :  { %v1101_v7 = vadd.f32 %v4492_v0, %v1098_v2 }
 0x448   :  { %5317 = vtanh.f32 %v1101_v7  ;;  %v1116_v19 = vadd.f32 %v1115_v18, %v1101_v7  ;;  %v1107_v34 = vadd.f32 %v1105_v33, %v1101_v7 }
 0x44a   :  { %v4494_v20 = vmul.f32 -1.442695, %v1116_v19  ;;  %v4493_v35 = vmul.f32 -1.442695, %v1107_v34 }
 0x44c   :  { %5319 = vpow2.f32 %v4494_v20 }
 0x455   :  { %v5318_v17 = vpop.eup %5317 }
 0x456   :  { %1125 = vrot.lane.b32.xlu0 %v5318_v17, %s5457_s9 }
 0x459   :  { %v5320_v23 = vpop.eup %5319 }
 0x45a   :  { %v1120_v25 = vadd.f32 1.0, %v5320_v23 }
 0x45c   :  { %5321 = vrcp.f32 %v1120_v25 }
 0x45d   :  { %5323 = vpow2.f32 %v4493_v35 }
 0x469   :  { %v5322_v30 = vpop.eup %5321 }
 0x46a   :  { %v5324_v36 = vpop.eup %5323 }
 0x46b   :  { %v1111_v37 = vadd.f32 1.0, %v5324_v36 }
 0x46d   :  { %5325 = vrcp.f32 %v1111_v37 }
 0x47a   :  { %v5326_v38 = vpop.eup %5325 }
 0x47b   :  { %v1114_v29 = vmul.f32 %v5326_v38, %v5661_v24 }
 0x4c8   :  { %v1126_v31 = vpop.permute.xlu0 %1125 }
 0x4c9   :  { %v1128_v32 = vmul.f32 %v5322_v30, %v1126_v31 }
 0x4cb   :  { %1130 = vrot.lane.b32.xlu0 %v1128_v32, %s5456_s1  ;;  %v4497_v32 = vld [vmem:[%s6290_s0 + $0x4] sm:$0x3] }
 0x53d   :  { %v1131_v39 = vpop.permute.xlu0 %1130 }
 0x53e   :  { %v5754_v40 = vadd.f32 %v1131_v39, %v1114_v29 }
 0x540   :  { %5327 = vtanh.f32 %v5754_v40  ;;  %1135 = vrot.lane.b32.xlu1 %v5754_v40, %s5456_s1 }
 0x54d   :  { %v5328_v41 = vpop.eup %5327 }
 0x54e   :  { %1152 = vrot.lane.b32.xlu1 %v5328_v41, %s5458_s12 }
 0x5b2   :  { %v5760_v42 = vpop.permute.xlu1 %1135 }
 0x5b3   :  { %v1138_v43 = vmul.f32 %v5670_v27, %v5760_v42  ;;  %v1652_v51 = vmul.f32 %v5649_v52, %v5760_v42  ;;  %v1665_v37 = vmul.f32 %v5657_v55, %v5760_v42 }
 0x5b5   :  { %1140 = vrot.lane.b32.xlu0 %v1138_v43, %s5457_s9 }
 0x5c0   :  { %v1153_v49 = vpop.permute.xlu1 %1152 }
 0x627   :  { %v1141_v44 = vpop.permute.xlu0 %1140 }
 0x628   :  { %v1143_v24 = vadd.f32 %v1141_v44, %v1101_v7 }
 0x62a   :  { %v4495_v45 = vmul.f32 -1.442695, %v1143_v24 }
 0x62c   :  { %5329 = vpow2.f32 %v4495_v45 }
 0x639   :  { %v5330_v46 = vpop.eup %5329 }
 0x63a   :  { %v1147_v47 = vadd.f32 1.0, %v5330_v46 }
 0x63c   :  { %5331 = vrcp.f32 %v1147_v47 }
 0x649   :  { %v5332_v48 = vpop.eup %5331 }
 0x64a   :  { %v1155_v50 = vmul.f32 %v5332_v48, %v1153_v49 }
 0x64c   :  { %1157 = vrot.lane.b32.xlu0 %v1155_v50, %s5458_s12 }
 0x650   :  { %1654 = vrot.lane.b32.xlu0 %v1652_v51, %s5456_s1 }
 0x6be   :  { %v1158_v53 = vpop.permute.xlu0 %1157 }
 0x6bf   :  { %4496 = vst.msk [vmem:[%s6295_s5 + $0x2] sm:$0x3] %vm27_vm0, %v1158_v53  ;;  %v1164_v54 = vsel %vm40_vm2, %v1158_v53, 0 }
 0x6c0   :  { %v1235_v56 = vand.u32 4294901760, %v1164_v54 }
 0x6c2   :  { %v1236_v57 = vsub.f32 %v1164_v54, %v1235_v56  ;;  %4919 = vmatmul.mubr.f32.vlgmr.msra.gmra.mxu1 %v1235_v56  ;;  %v1655_v45 = vpop.permute.xlu0 %1654 }
 0x6c3   :  { %4933 = vmatpush3.msra.mxu1 %v5506_v4  ;;  %4940 = vmatprep.mubr.msk.f32.mxu1 %vm5455_vm1, %v5454_v3 }
 0x6c4   :  { %v1237_v58 = vand.u32 4294901760, %v1236_v57  ;;  %4934 = vmatprep.subr.mxu1 %v5454_v3 }
 0x6c5   :  { %4935 = vmatpush3.msra.mxu1 %v5508_v5 }
 0x6c6   :  { %v1238_v59 = vsub.f32 %v1236_v57, %v1237_v58  ;;  %4936 = vmatprep.subr.mxu1 %v5454_v3 }
 0x6c7   :  { %4937 = vmatpush3.msra.mxu1 %v5510_v6 }
 0x6c8   :  { %4938 = vmatprep.subr.mxu1 %v5454_v3  ;;  %v1239_v60 = vand.u32 4294901760, %v1238_v59 }
 0x6c9   :  { %4939 = vmatpush3.msra.mxu1 %v5519_v8 }
 0x6ca   :  { %4941 = vmatmul.mubr.f32.vlgmr.msra.gmra.mxu1 %v1237_v58  ;;  %4954 = vmatprep.subr.mxu1 %v5454_v3 }
 0x6cb   :  { %4908 = vmatmul.mubr.f32.vlgmr.msra.gmra.mxu0 %v1239_v60  ;;  %4955 = vmatpush3.msra.mxu1 %v5506_v4 }
 0x6cc   :  { %4922 = vmatpush3.msra.mxu0 %v5527_v9  ;;  %4956 = vmatprep.subr.mxu1 %v5454_v3 }
 0x6cd   :  { %4923 = vmatprep.subr.mxu0 %v5454_v3  ;;  %4957 = vmatpush3.msra.mxu1 %v5508_v5 }
 0x6ce   :  { %4924 = vmatpush3.msra.mxu0 %v5530_v10  ;;  %4958 = vmatprep.subr.mxu1 %v5454_v3 }
 0x6cf   :  { %4925 = vmatprep.subr.mxu0 %v5454_v3  ;;  %4959 = vmatpush3.msra.mxu1 %v5510_v6 }
 0x6d0   :  { %4926 = vmatpush3.msra.mxu0 %v5533_v11  ;;  %4960 = vmatprep.subr.mxu1 %v5454_v3 }
 0x6d1   :  { %4927 = vmatprep.subr.mxu0 %v5454_v3  ;;  %4929 = vmatprep.mubr.msk.f32.mxu0 %vm5455_vm1, %v5454_v3 }
 0x6d2   :  { %4928 = vmatpush3.msra.mxu0 %v5537_v12  ;;  %4961 = vmatpush3.msra.mxu1 %v5519_v8 }
 0x6d3   :  { %4962 = vmatprep.mubr.msk.f32.mxu1 %vm5455_vm1, %v5454_v3  ;;  %4930 = vmatmul.mubr.f32.vlgmr.msra.gmra.mxu0 %v1236_v57 }
 0x6d4   :  { %4943 = vmatprep.subr.mxu0 %v5454_v3  ;;  %4963 = vmatmul.mubr.f32.vlgmr.msra.gmra.mxu1 %v1235_v56 }
 0x6d5   :  { %4944 = vmatpush3.msra.mxu0 %v5540_v13  ;;  %4951 = vmatprep.mubr.msk.f32.mxu0 %vm5455_vm1, %v5454_v3 }
 0x6d6   :  { %4945 = vmatprep.subr.mxu0 %v5454_v3  ;;  %4976 = vmatprep.subr.mxu1 %v5454_v3 }
 0x6d7   :  { %4946 = vmatpush3.msra.mxu0 %v5544_v14  ;;  %4977 = vmatpush3.msra.mxu1 %v5561_v21 }
 0x6d8   :  { %4947 = vmatprep.subr.mxu0 %v5454_v3  ;;  %4978 = vmatprep.subr.mxu1 %v5454_v3 }
 0x6d9   :  { %4948 = vmatpush3.msra.mxu0 %v5547_v15  ;;  %4979 = vmatpush3.msra.mxu1 %v5563_v22 }
 0x6da   :  { %4949 = vmatprep.subr.mxu0 %v5454_v3  ;;  %4980 = vmatprep.subr.mxu1 %v5454_v3 }
 0x6db   :  { %4950 = vmatpush3.msra.mxu0 %v5551_v16  ;;  %4981 = vmatpush3.msra.mxu1 %v5571_v26 }
 0x6dc   :  { %4952 = vmatmul.mubr.f32.vlgmr.msra.gmra.mxu0 %v1235_v56  ;;  %4982 = vmatprep.subr.mxu1 %v5454_v3 }
 0x6dd   :  { %4983 = vmatpush3.msra.mxu1 %v5575_v28  ;;  %4965 = vmatprep.subr.mxu0 %v5454_v3 }
 0x6de   :  { %4984 = vmatprep.mubr.msk.f32.mxu1 %vm5455_vm1, %v5454_v3  ;;  %4998 = vmatprep.subr.mxu1 %v5454_v3 }
 0x6df   :  { %4966 = vmatpush3.msra.mxu0 %v5506_v4  ;;  %4973 = vmatprep.mubr.msk.f32.mxu0 %vm5455_vm1, %v5454_v3 }
 0x6e0   :  { %4967 = vmatprep.subr.mxu0 %v5454_v3 }
 0x6e1   :  { %4968 = vmatpush3.msra.mxu0 %v5508_v5 }
 0x6e2   :  { %4969 = vmatprep.subr.mxu0 %v5454_v3 }
 0x6e3   :  { %4970 = vmatpush3.msra.mxu0 %v5510_v6 }
 0x6e4   :  { %4971 = vmatprep.subr.mxu0 %v5454_v3 }
 0x6e5   :  { %4972 = vmatpush3.msra.mxu0 %v5519_v8 }
 0x6e6   :  { %4987 = vmatprep.subr.mxu0 %v5454_v3 }
 0x782   :  { %v1332_v61 = vpop.f32.mrf.mxu1 }
 0x784   :  { %v4920_v62 = vpop.f32.mrf.mxu1 }
 0x78a   :  { %v1489_v63 = vpop.f32.mrf.mxu1 }
 0x78b   :  { %v1241_v0 = vpop.f32.mrf.mxu0 }
 0x78c   :  { %v4942_v1 = vpop.f32.mrf.mxu1  ;;  %v1333_v18 = vadd.f32 %v1332_v61, %v1241_v0 }
 0x78d   :  { %v4909_v2 = vpop.f32.mrf.mxu0 }
 0x793   :  { %v1412_v7 = vpop.f32.mrf.mxu0 }
 0x794   :  { %v1647_v17 = vpop.f32.mrf.mxu1  ;;  %v1413_v23 = vadd.f32 %v1412_v7, %v1333_v18 }
 0x795   :  { %v4931_v19 = vpop.f32.mrf.mxu0 }
 0x796   :  { %v4964_v20 = vpop.f32.mrf.mxu1  ;;  %v1490_v25 = vadd.f32 %v1489_v63, %v1413_v23 }
 0x79c   :  { %v1572_v30 = vpop.f32.mrf.mxu0 }
 0x79d   :  { %v1573_v31 = vadd.f32 %v1572_v30, %v1490_v25 }
 0x79e   :  { %v4953_v33 = vpop.f32.mrf.mxu0 }
 0x79f   :  { %v1648_v34 = vadd.f32 %v1647_v17, %v1573_v31 }
 0x7a1   :  { %v1651_v35 = vadd.f32 %v4497_v32, %v1648_v34 }
 0x7a3   :  { %5333 = vtanh.f32 %v1651_v35  ;;  %v1666_v38 = vadd.f32 %v1665_v37, %v1651_v35  ;;  %v1657_v46 = vadd.f32 %v1655_v45, %v1651_v35 }
 0x7a5   :  { %v4499_v29 = vmul.f32 -1.442695, %v1666_v38  ;;  %v4498_v47 = vmul.f32 -1.442695, %v1657_v46 }
 0x7a7   :  { %5335 = vpow2.f32 %v4499_v29 }
 0x7b0   :  { %v5334_v36 = vpop.eup %5333 }
 0x7b1   :  { %1675 = vrot.lane.b32.xlu1 %v5334_v36, %s5457_s9 }
 0x7b4   :  { %v5336_v39 = vpop.eup %5335 }
 0x7b5   :  { %v1670_v41 = vadd.f32 1.0, %v5336_v39 }
 0x7b7   :  { %5337 = vrcp.f32 %v1670_v41 }
 0x7b8   :  { %5339 = vpow2.f32 %v4498_v47 }
 0x7c4   :  { %v5338_v43 = vpop.eup %5337 }
 0x7c5   :  { %v5340_v48 = vpop.eup %5339 }
 0x7c6   :  { %v1661_v49 = vadd.f32 1.0, %v5340_v48 }
 0x7c8   :  { %5341 = vrcp.f32 %v1661_v49 }
 0x7d5   :  { %v5342_v50 = vpop.eup %5341 }
 0x7d6   :  { %v1664_v42 = vmul.f32 %v5342_v50, %v5754_v40 }
 0x823   :  { %v1676_v44 = vpop.permute.xlu1 %1675 }
 0x824   :  { %v1678_v24 = vmul.f32 %v5338_v43, %v1676_v44 }
 0x826   :  { %1680 = vrot.lane.b32.xlu1 %v1678_v24, %s5456_s1  ;;  %v4502_v24 = vld [vmem:[%s6290_s0 + $0x6] sm:$0x3] }
 0x898   :  { %v1681_v51 = vpop.permute.xlu1 %1680 }
 0x899   :  { %v5842_v53 = vadd.f32 %v1681_v51, %v1664_v42 }
 0x89b   :  { %5343 = vtanh.f32 %v5842_v53  ;;  %1685 = vrot.lane.b32.xlu0 %v5842_v53, %s5456_s1 }
 0x8a8   :  { %v5344_v54 = vpop.eup %5343 }
 0x8a9   :  { %1702 = vrot.lane.b32.xlu0 %v5344_v54, %s5458_s12 }
 0x90d   :  { %v5848_v56 = vpop.permute.xlu0 %1685 }
 0x90e   :  { %v1688_v57 = vmul.f32 %v5670_v27, %v5848_v56  ;;  %v2202_v1 = vmul.f32 %v5649_v52, %v5848_v56  ;;  %v2215_v49 = vmul.f32 %v5657_v55, %v5848_v56 }
 0x910   :  { %1690 = vrot.lane.b32.xlu1 %v1688_v57, %s5457_s9 }
 0x91b   :  { %v1703_v63 = vpop.permute.xlu0 %1702 }
 0x982   :  { %v1691_v58 = vpop.permute.xlu1 %1690 }
 0x983   :  { %v1693_v40 = vadd.f32 %v1691_v58, %v1651_v35 }
 0x985   :  { %v4500_v59 = vmul.f32 -1.442695, %v1693_v40 }
 0x987   :  { %5345 = vpow2.f32 %v4500_v59 }
 0x994   :  { %v5346_v60 = vpop.eup %5345 }
 0x995   :  { %v1697_v61 = vadd.f32 1.0, %v5346_v60 }
 0x997   :  { %5347 = vrcp.f32 %v1697_v61 }
 0x9a4   :  { %v5348_v62 = vpop.eup %5347 }
 0x9a5   :  { %v1705_v0 = vmul.f32 %v5348_v62, %v1703_v63 }
 0x9a7   :  { %1707 = vrot.lane.b32.xlu1 %v1705_v0, %s5458_s12 }
 0x9ab   :  { %2204 = vrot.lane.b32.xlu1 %v2202_v1, %s5456_s1 }
 0xa19   :  { %v1708_v2 = vpop.permute.xlu1 %1707 }
 0xa1a   :  { %4501 = vst.msk [vmem:[%s6295_s5 + $0x4] sm:$0x3] %vm27_vm0, %v1708_v2  ;;  %v1714_v7 = vsel %vm40_vm2, %v1708_v2, 0 }
 0xa1b   :  { %v1785_v17 = vand.u32 4294901760, %v1714_v7 }
 0xa1d   :  { %v1786_v18 = vsub.f32 %v1714_v7, %v1785_v17  ;;  %4985 = vmatmul.mubr.f32.vlgmr.msra.gmra.mxu1 %v1785_v17  ;;  %v2205_v59 = vpop.permute.xlu1 %2204 }
 0xa1e   :  { %4999 = vmatpush3.msra.mxu1 %v5506_v4  ;;  %5006 = vmatprep.mubr.msk.f32.mxu1 %vm5455_vm1, %v5454_v3 }
 0xa1f   :  { %v1787_v19 = vand.u32 4294901760, %v1786_v18  ;;  %5000 = vmatprep.subr.mxu1 %v5454_v3 }
 0xa20   :  { %5001 = vmatpush3.msra.mxu1 %v5508_v5 }
 0xa21   :  { %v1788_v20 = vsub.f32 %v1786_v18, %v1787_v19  ;;  %5002 = vmatprep.subr.mxu1 %v5454_v3 }
 0xa22   :  { %5003 = vmatpush3.msra.mxu1 %v5510_v6 }
 0xa23   :  { %5004 = vmatprep.subr.mxu1 %v5454_v3  ;;  %v1789_v23 = vand.u32 4294901760, %v1788_v20 }
 0xa24   :  { %5005 = vmatpush3.msra.mxu1 %v5519_v8 }
 0xa25   :  { %5007 = vmatmul.mubr.f32.vlgmr.msra.gmra.mxu1 %v1787_v19  ;;  %5020 = vmatprep.subr.mxu1 %v5454_v3 }
 0xa26   :  { %4974 = vmatmul.mubr.f32.vlgmr.msra.gmra.mxu0 %v1789_v23  ;;  %5021 = vmatpush3.msra.mxu1 %v5506_v4 }
 0xa27   :  { %4988 = vmatpush3.msra.mxu0 %v5527_v9  ;;  %5022 = vmatprep.subr.mxu1 %v5454_v3 }
 0xa28   :  { %4989 = vmatprep.subr.mxu0 %v5454_v3  ;;  %5023 = vmatpush3.msra.mxu1 %v5508_v5 }
 0xa29   :  { %4990 = vmatpush3.msra.mxu0 %v5530_v10  ;;  %5024 = vmatprep.subr.mxu1 %v5454_v3 }
 0xa2a   :  { %4991 = vmatprep.subr.mxu0 %v5454_v3  ;;  %5025 = vmatpush3.msra.mxu1 %v5510_v6 }
 0xa2b   :  { %4992 = vmatpush3.msra.mxu0 %v5533_v11  ;;  %5026 = vmatprep.subr.mxu1 %v5454_v3 }
 0xa2c   :  { %4993 = vmatprep.subr.mxu0 %v5454_v3  ;;  %4995 = vmatprep.mubr.msk.f32.mxu0 %vm5455_vm1, %v5454_v3 }
 0xa2d   :  { %4994 = vmatpush3.msra.mxu0 %v5537_v12  ;;  %5027 = vmatpush3.msra.mxu1 %v5519_v8 }
 0xa2e   :  { %5028 = vmatprep.mubr.msk.f32.mxu1 %vm5455_vm1, %v5454_v3  ;;  %4996 = vmatmul.mubr.f32.vlgmr.msra.gmra.mxu0 %v1786_v18 }
 0xa2f   :  { %5009 = vmatprep.subr.mxu0 %v5454_v3  ;;  %5029 = vmatmul.mubr.f32.vlgmr.msra.gmra.mxu1 %v1785_v17 }
 0xa30   :  { %5010 = vmatpush3.msra.mxu0 %v5540_v13  ;;  %5017 = vmatprep.mubr.msk.f32.mxu0 %vm5455_vm1, %v5454_v3 }
 0xa31   :  { %5011 = vmatprep.subr.mxu0 %v5454_v3  ;;  %5042 = vmatprep.subr.mxu1 %v5454_v3 }
 0xa32   :  { %5012 = vmatpush3.msra.mxu0 %v5544_v14  ;;  %5043 = vmatpush3.msra.mxu1 %v5561_v21 }
 0xa33   :  { %5013 = vmatprep.subr.mxu0 %v5454_v3  ;;  %5044 = vmatprep.subr.mxu1 %v5454_v3 }
 0xa34   :  { %5014 = vmatpush3.msra.mxu0 %v5547_v15  ;;  %5045 = vmatpush3.msra.mxu1 %v5563_v22 }
 0xa35   :  { %5015 = vmatprep.subr.mxu0 %v5454_v3  ;;  %5046 = vmatprep.subr.mxu1 %v5454_v3 }
 0xa36   :  { %5016 = vmatpush3.msra.mxu0 %v5551_v16  ;;  %5047 = vmatpush3.msra.mxu1 %v5571_v26 }
 0xa37   :  { %5018 = vmatmul.mubr.f32.vlgmr.msra.gmra.mxu0 %v1785_v17  ;;  %5048 = vmatprep.subr.mxu1 %v5454_v3 }
 0xa38   :  { %5049 = vmatpush3.msra.mxu1 %v5575_v28  ;;  %5031 = vmatprep.subr.mxu0 %v5454_v3 }
 0xa39   :  { %5050 = vmatprep.mubr.msk.f32.mxu1 %vm5455_vm1, %v5454_v3  ;;  %5064 = vmatprep.subr.mxu1 %v5454_v3 }
 0xa3a   :  { %5032 = vmatpush3.msra.mxu0 %v5506_v4  ;;  %5039 = vmatprep.mubr.msk.f32.mxu0 %vm5455_vm1, %v5454_v3 }
 0xa3b   :  { %5033 = vmatprep.subr.mxu0 %v5454_v3 }
 0xa3c   :  { %5034 = vmatpush3.msra.mxu0 %v5508_v5 }
 0xa3d   :  { %5035 = vmatprep.subr.mxu0 %v5454_v3 }
 0xa3e   :  { %5036 = vmatpush3.msra.mxu0 %v5510_v6 }
 0xa3f   :  { %5037 = vmatprep.subr.mxu0 %v5454_v3 }
 0xa40   :  { %5038 = vmatpush3.msra.mxu0 %v5519_v8 }
 0xa41   :  { %5053 = vmatprep.subr.mxu0 %v5454_v3 }
 0xadd   :  { %v1882_v25 = vpop.f32.mrf.mxu1 }
 0xadf   :  { %v4986_v30 = vpop.f32.mrf.mxu1 }
 0xae5   :  { %v2039_v31 = vpop.f32.mrf.mxu1 }
 0xae6   :  { %v1791_v32 = vpop.f32.mrf.mxu0 }
 0xae7   :  { %v5008_v33 = vpop.f32.mrf.mxu1  ;;  %v1883_v37 = vadd.f32 %v1882_v25, %v1791_v32 }
 0xae8   :  { %v4975_v34 = vpop.f32.mrf.mxu0 }
 0xaee   :  { %v1962_v35 = vpop.f32.mrf.mxu0 }
 0xaef   :  { %v2197_v36 = vpop.f32.mrf.mxu1  ;;  %v1963_v39 = vadd.f32 %v1962_v35, %v1883_v37 }
 0xaf0   :  { %v4997_v38 = vpop.f32.mrf.mxu0 }
 0xaf1   :  { %v5030_v29 = vpop.f32.mrf.mxu1  ;;  %v2040_v41 = vadd.f32 %v2039_v31, %v1963_v39 }
 0xaf7   :  { %v2122_v43 = vpop.f32.mrf.mxu0 }
 0xaf8   :  { %v2123_v44 = vadd.f32 %v2122_v43, %v2040_v41 }
 0xaf9   :  { %v5019_v45 = vpop.f32.mrf.mxu0 }
 0xafa   :  { %v2198_v46 = vadd.f32 %v2197_v36, %v2123_v44 }
 0xafc   :  { %v2201_v47 = vadd.f32 %v4502_v24, %v2198_v46 }
 0xafe   :  { %5349 = vtanh.f32 %v2201_v47  ;;  %v2216_v50 = vadd.f32 %v2215_v49, %v2201_v47  ;;  %v2207_v60 = vadd.f32 %v2205_v59, %v2201_v47 }
 0xb00   :  { %v4504_v42 = vmul.f32 -1.442695, %v2216_v50  ;;  %v4503_v61 = vmul.f32 -1.442695, %v2207_v60  ;;  %v6017_v60 = vld [vmem:[%s6293_s3] ss:$0 sm:$0xff] }
 0xb02   :  { %5351 = vpow2.f32 %v4504_v42 }
 0xb0b   :  { %v5350_v48 = vpop.eup %5349 }
 0xb0c   :  { %2225 = vrot.lane.b32.xlu0 %v5350_v48, %s5457_s9 }
 0xb0f   :  { %v5352_v51 = vpop.eup %5351 }
 0xb10   :  { %v2220_v54 = vadd.f32 1.0, %v5352_v51 }
 0xb12   :  { %5353 = vrcp.f32 %v2220_v54  ;;  %v4507_v54 = vld [vmem:[%s6290_s0 + $0x8] sm:$0x3] }
 0xb13   :  { %5355 = vpow2.f32 %v4503_v61 }
 0xb1f   :  { %v5354_v57 = vpop.eup %5353 }
 0xb20   :  { %v5356_v62 = vpop.eup %5355 }
 0xb21   :  { %v2211_v63 = vadd.f32 1.0, %v5356_v62 }
 0xb23   :  { %5357 = vrcp.f32 %v2211_v63 }
 0xb30   :  { %v5358_v0 = vpop.eup %5357 }
 0xb31   :  { %v2214_v55 = vmul.f32 %v5358_v0, %v5842_v53 }
 0xb7e   :  { %v2226_v58 = vpop.permute.xlu0 %2225 }
 0xb7f   :  { %v2228_v40 = vmul.f32 %v5354_v57, %v2226_v58 }
 0xb81   :  { %2230 = vrot.lane.b32.xlu0 %v2228_v40, %s5456_s1 }
 0xbf3   :  { %v2231_v56 = vpop.permute.xlu0 %2230 }
 0xbf4   :  { %v5930_v1 = vadd.f32 %v2231_v56, %v2214_v55 }
 0xbf6   :  { %5359 = vtanh.f32 %v5930_v1  ;;  %2235 = vrot.lane.b32.xlu1 %v5930_v1, %s5456_s1 }
 0xc03   :  { %v5360_v2 = vpop.eup %5359 }
 0xc04   :  { %2252 = vrot.lane.b32.xlu1 %v5360_v2, %s5458_s12 }
 0xc68   :  { %v5936_v7 = vpop.permute.xlu1 %2235 }
 0xc69   :  { %v2238_v17 = vmul.f32 %v5670_v27, %v5936_v7  ;;  %v2752_v32 = vmul.f32 %v5649_v52, %v5936_v7  ;;  %v2765_v61 = vmul.f32 %v6017_v60, %v5936_v7 }
 0xc6b   :  { %2240 = vrot.lane.b32.xlu0 %v2238_v17, %s5457_s9 }
 0xc76   :  { %v2253_v30 = vpop.permute.xlu1 %2252 }
 0xcdd   :  { %v2241_v18 = vpop.permute.xlu0 %2240 }
 0xcde   :  { %v2243_v53 = vadd.f32 %v2241_v18, %v2201_v47 }
 0xce0   :  { %v4505_v19 = vmul.f32 -1.442695, %v2243_v53 }
 0xce2   :  { %5361 = vpow2.f32 %v4505_v19 }
 0xcef   :  { %v5362_v20 = vpop.eup %5361 }
 0xcf0   :  { %v2247_v23 = vadd.f32 1.0, %v5362_v20 }
 0xcf2   :  { %5363 = vrcp.f32 %v2247_v23 }
 0xcff   :  { %v5364_v25 = vpop.eup %5363 }
 0xd00   :  { %v2255_v31 = vmul.f32 %v5364_v25, %v2253_v30 }
 0xd02   :  { %2257 = vrot.lane.b32.xlu0 %v2255_v31, %s5458_s12 }
 0xd06   :  { %2754 = vrot.lane.b32.xlu0 %v2752_v32, %s5456_s1 }
 0xd74   :  { %v2258_v27 = vpop.permute.xlu0 %2257 }
 0xd75   :  { %4506 = vst.msk [vmem:[%s6295_s5 + $0x6] sm:$0x3] %vm27_vm0, %v2258_v27  ;;  %v2264_v33 = vsel %vm40_vm2, %v2258_v27, 0 }
 0xd76   :  { %v2335_v34 = vand.u32 4294901760, %v2264_v33 }
 0xd78   :  { %v2336_v35 = vsub.f32 %v2264_v33, %v2335_v34  ;;  %5051 = vmatmul.mubr.f32.vlgmr.msra.gmra.mxu1 %v2335_v34  ;;  %v2755_v18 = vpop.permute.xlu0 %2754  ;;  %v6034_v33 = vld [vmem:[%s6294_s4] ss:$0 sm:$0xff] }
 0xd79   :  { %5065 = vmatpush3.msra.mxu1 %v5506_v4  ;;  %5072 = vmatprep.mubr.msk.f32.mxu1 %vm5455_vm1, %v5454_v3 }
 0xd7a   :  { %v2337_v36 = vand.u32 4294901760, %v2336_v35  ;;  %5066 = vmatprep.subr.mxu1 %v5454_v3 }
 0xd7b   :  { %5067 = vmatpush3.msra.mxu1 %v5508_v5 }
 0xd7c   :  { %v2338_v52 = vsub.f32 %v2336_v35, %v2337_v36  ;;  %5068 = vmatprep.subr.mxu1 %v5454_v3 }
 0xd7d   :  { %5069 = vmatpush3.msra.mxu1 %v5510_v6 }
 0xd7e   :  { %5070 = vmatprep.subr.mxu1 %v5454_v3  ;;  %v2339_v37 = vand.u32 4294901760, %v2338_v52 }
 0xd7f   :  { %5071 = vmatpush3.msra.mxu1 %v5519_v8 }
 0xd80   :  { %5073 = vmatmul.mubr.f32.vlgmr.msra.gmra.mxu1 %v2337_v36  ;;  %5086 = vmatprep.subr.mxu1 %v5454_v3 }
 0xd81   :  { %5040 = vmatmul.mubr.f32.vlgmr.msra.gmra.mxu0 %v2339_v37  ;;  %5087 = vmatpush3.msra.mxu1 %v5506_v4 }
 0xd82   :  { %5054 = vmatpush3.msra.mxu0 %v5527_v9  ;;  %5088 = vmatprep.subr.mxu1 %v5454_v3 }
 0xd83   :  { %5055 = vmatprep.subr.mxu0 %v5454_v3  ;;  %5089 = vmatpush3.msra.mxu1 %v5508_v5 }
 0xd84   :  { %5056 = vmatpush3.msra.mxu0 %v5530_v10  ;;  %5090 = vmatprep.subr.mxu1 %v5454_v3 }
 0xd85   :  { %5057 = vmatprep.subr.mxu0 %v5454_v3  ;;  %5091 = vmatpush3.msra.mxu1 %v5510_v6 }
 0xd86   :  { %5058 = vmatpush3.msra.mxu0 %v5533_v11  ;;  %5092 = vmatprep.subr.mxu1 %v5454_v3 }
 0xd87   :  { %5059 = vmatprep.subr.mxu0 %v5454_v3  ;;  %5061 = vmatprep.mubr.msk.f32.mxu0 %vm5455_vm1, %v5454_v3 }
 0xd88   :  { %5060 = vmatpush3.msra.mxu0 %v5537_v12  ;;  %5093 = vmatpush3.msra.mxu1 %v5519_v8 }
 0xd89   :  { %5094 = vmatprep.mubr.msk.f32.mxu1 %vm5455_vm1, %v5454_v3  ;;  %5062 = vmatmul.mubr.f32.vlgmr.msra.gmra.mxu0 %v2336_v35 }
 0xd8a   :  { %5075 = vmatprep.subr.mxu0 %v5454_v3  ;;  %5095 = vmatmul.mubr.f32.vlgmr.msra.gmra.mxu1 %v2335_v34 }
 0xd8b   :  { %5076 = vmatpush3.msra.mxu0 %v5540_v13  ;;  %5083 = vmatprep.mubr.msk.f32.mxu0 %vm5455_vm1, %v5454_v3 }
 0xd8c   :  { %5077 = vmatprep.subr.mxu0 %v5454_v3  ;;  %5108 = vmatprep.subr.mxu1 %v5454_v3 }
 0xd8d   :  { %5078 = vmatpush3.msra.mxu0 %v5544_v14  ;;  %5109 = vmatpush3.msra.mxu1 %v5561_v21 }
 0xd8e   :  { %5079 = vmatprep.subr.mxu0 %v5454_v3  ;;  %5110 = vmatprep.subr.mxu1 %v5454_v3 }
 0xd8f   :  { %5080 = vmatpush3.msra.mxu0 %v5547_v15  ;;  %5111 = vmatpush3.msra.mxu1 %v5563_v22 }
 0xd90   :  { %5081 = vmatprep.subr.mxu0 %v5454_v3  ;;  %5112 = vmatprep.subr.mxu1 %v5454_v3 }
 0xd91   :  { %5082 = vmatpush3.msra.mxu0 %v5551_v16  ;;  %5113 = vmatpush3.msra.mxu1 %v5571_v26 }
 0xd92   :  { %5084 = vmatmul.mubr.f32.vlgmr.msra.gmra.mxu0 %v2335_v34  ;;  %5114 = vmatprep.subr.mxu1 %v5454_v3 }
 0xd93   :  { %5115 = vmatpush3.msra.mxu1 %v5575_v28  ;;  %5097 = vmatprep.subr.mxu0 %v5454_v3 }
 0xd94   :  { %5116 = vmatprep.mubr.msk.f32.mxu1 %vm5455_vm1, %v5454_v3  ;;  %5130 = vmatprep.subr.mxu1 %v5454_v3 }
 0xd95   :  { %5098 = vmatpush3.msra.mxu0 %v5506_v4  ;;  %5105 = vmatprep.mubr.msk.f32.mxu0 %vm5455_vm1, %v5454_v3 }
 0xd96   :  { %5099 = vmatprep.subr.mxu0 %v5454_v3 }
 0xd97   :  { %5100 = vmatpush3.msra.mxu0 %v5508_v5 }
 0xd98   :  { %5101 = vmatprep.subr.mxu0 %v5454_v3 }
 0xd99   :  { %5102 = vmatpush3.msra.mxu0 %v5510_v6 }
 0xd9a   :  { %5103 = vmatprep.subr.mxu0 %v5454_v3 }
 0xd9b   :  { %5104 = vmatpush3.msra.mxu0 %v5519_v8 }
 0xd9c   :  { %5119 = vmatprep.subr.mxu0 %v5454_v3 }
 0xe38   :  { %v2432_v38 = vpop.f32.mrf.mxu1 }
 0xe3a   :  { %v5052_v29 = vpop.f32.mrf.mxu1 }
 0xe40   :  { %v2589_v39 = vpop.f32.mrf.mxu1 }
 0xe41   :  { %v2341_v41 = vpop.f32.mrf.mxu0 }
 0xe42   :  { %v5074_v43 = vpop.f32.mrf.mxu1  ;;  %v2433_v46 = vadd.f32 %v2432_v38, %v2341_v41  ;;  %v6043_v41 = vld [vmem:[%s6292_s2] ss:$0 sm:$0xff] }
 0xe43   :  { %v5041_v44 = vpop.f32.mrf.mxu0 }
 0xe49   :  { %v2512_v24 = vpop.f32.mrf.mxu0 }
 0xe4a   :  { %v2747_v45 = vpop.f32.mrf.mxu1  ;;  %v2513_v49 = vadd.f32 %v2512_v24, %v2433_v46 }
 0xe4b   :  { %v5063_v47 = vpop.f32.mrf.mxu0 }
 0xe4c   :  { %v5096_v48 = vpop.f32.mrf.mxu1  ;;  %v2590_v50 = vadd.f32 %v2589_v39, %v2513_v49 }
 0xe52   :  { %v2672_v42 = vpop.f32.mrf.mxu0 }
 0xe53   :  { %v2673_v51 = vadd.f32 %v2672_v42, %v2590_v50 }
 0xe54   :  { %v5085_v57 = vpop.f32.mrf.mxu0 }
 0xe55   :  { %v2748_v58 = vadd.f32 %v2747_v45, %v2673_v51 }
 0xe57   :  { %v2751_v40 = vadd.f32 %v4507_v54, %v2748_v58 }
 0xe59   :  { %5365 = vtanh.f32 %v2751_v40  ;;  %v2766_v62 = vadd.f32 %v2765_v61, %v2751_v40  ;;  %v2757_v53 = vadd.f32 %v2755_v18, %v2751_v40 }
 0xe5b   :  { %v4509_v63 = vmul.f32 -1.442695, %v2766_v62  ;;  %v4508_v19 = vmul.f32 -1.442695, %v2757_v53 }
 0xe5d   :  { %5367 = vpow2.f32 %v4509_v63 }
 0xe66   :  { %v5366_v59 = vpop.eup %5365 }
 0xe67   :  { %2775 = vrot.lane.b32.xlu1 %v5366_v59, %s5457_s9 }
 0xe6a   :  { %v5368_v0 = vpop.eup %5367 }
 0xe6b   :  { %v2770_v55 = vadd.f32 1.0, %v5368_v0 }
 0xe6d   :  { %5369 = vrcp.f32 %v2770_v55 }
 0xe6e   :  { %5371 = vpow2.f32 %v4508_v19 }
 0xe7a   :  { %v5370_v56 = vpop.eup %5369 }
 0xe7b   :  { %v5372_v20 = vpop.eup %5371 }
 0xe7c   :  { %v2761_v23 = vadd.f32 1.0, %v5372_v20 }
 0xe7e   :  { %5373 = vrcp.f32 %v2761_v23 }
 0xe8b   :  { %v5374_v25 = vpop.eup %5373 }
 0xe8c   :  { %v2764_v7 = vmul.f32 %v5374_v25, %v5930_v1 }
 0xed9   :  { %v2776_v2 = vpop.permute.xlu1 %2775 }
 0xeda   :  { %v2778_v17 = vmul.f32 %v5370_v56, %v2776_v2 }
 0xedc   :  { %2780 = vrot.lane.b32.xlu1 %v2778_v17, %s5456_s1  ;;  %v4512_v17 = vld [vmem:[%s6290_s0 + $0xa] sm:$0x3] }
 0xf4e   :  { %v2781_v30 = vpop.permute.xlu1 %2780 }
 0xf4f   :  { %v6023_v31 = vadd.f32 %v2781_v30, %v2764_v7 }
 0xf51   :  { %5375 = vtanh.f32 %v6023_v31  ;;  %2785 = vrot.lane.b32.xlu0 %v6023_v31, %s5456_s1 }
 0xf5e   :  { %v5376_v32 = vpop.eup %5375 }
 0xf5f   :  { %2802 = vrot.lane.b32.xlu0 %v5376_v32, %s5458_s12 }
 0xfc3   :  { %v6029_v27 = vpop.permute.xlu0 %2785 }
 0xfc4   :  { %v2788_v1 = vmul.f32 %v6034_v33, %v6029_v27  ;;  %v3302_v43 = vmul.f32 %v6043_v41, %v6029_v27  ;;  %v3315_v23 = vmul.f32 %v6017_v60, %v6029_v27 }
 0xfc6   :  { %2790 = vrot.lane.b32.xlu1 %v2788_v1, %s5457_s9 }
 0xfd1   :  { %v2803_v29 = vpop.permute.xlu0 %2802 }
0x1038   :  { %v2791_v34 = vpop.permute.xlu1 %2790 }
0x1039   :  { %v2793_v35 = vadd.f32 %v2791_v34, %v2751_v40 }
0x103b   :  { %v4510_v36 = vmul.f32 -1.442695, %v2793_v35 }
0x103d   :  { %5377 = vpow2.f32 %v4510_v36 }
0x104a   :  { %v5378_v52 = vpop.eup %5377 }
0x104b   :  { %v2797_v37 = vadd.f32 1.0, %v5378_v52 }
0x104d   :  { %5379 = vrcp.f32 %v2797_v37 }
0x105a   :  { %v5380_v38 = vpop.eup %5379 }
0x105b   :  { %v2805_v39 = vmul.f32 %v5380_v38, %v2803_v29 }
0x105d   :  { %2807 = vrot.lane.b32.xlu1 %v2805_v39, %s5458_s12 }
0x1061   :  { %3304 = vrot.lane.b32.xlu1 %v3302_v43, %s5456_s1 }
0x10cf   :  { %v2808_v44 = vpop.permute.xlu1 %2807 }
0x10d0   :  { %4511 = vst.msk [vmem:[%s6295_s5 + $0x8] sm:$0x3] %vm27_vm0, %v2808_v44  ;;  %v2814_v24 = vsel %vm40_vm2, %v2808_v44, 0 }
0x10d1   :  { %v2885_v45 = vand.u32 4294901760, %v2814_v24 }
0x10d3   :  { %v2886_v46 = vsub.f32 %v2814_v24, %v2885_v45  ;;  %5117 = vmatmul.mubr.f32.vlgmr.msra.gmra.mxu1 %v2885_v45  ;;  %v3305_v36 = vpop.permute.xlu1 %3304 }
0x10d4   :  { %5131 = vmatpush3.msra.mxu1 %v5506_v4  ;;  %5138 = vmatprep.mubr.msk.f32.mxu1 %vm5455_vm1, %v5454_v3 }
0x10d5   :  { %v2887_v47 = vand.u32 4294901760, %v2886_v46  ;;  %5132 = vmatprep.subr.mxu1 %v5454_v3 }
0x10d6   :  { %5133 = vmatpush3.msra.mxu1 %v5508_v5 }
0x10d7   :  { %v2888_v48 = vsub.f32 %v2886_v46, %v2887_v47  ;;  %5134 = vmatprep.subr.mxu1 %v5454_v3 }
0x10d8   :  { %5135 = vmatpush3.msra.mxu1 %v5510_v6 }
0x10d9   :  { %5136 = vmatprep.subr.mxu1 %v5454_v3  ;;  %v2889_v49 = vand.u32 4294901760, %v2888_v48 }
0x10da   :  { %5137 = vmatpush3.msra.mxu1 %v5519_v8 }
0x10db   :  { %5139 = vmatmul.mubr.f32.vlgmr.msra.gmra.mxu1 %v2887_v47  ;;  %5152 = vmatprep.subr.mxu1 %v5454_v3 }
0x10dc   :  { %5106 = vmatmul.mubr.f32.vlgmr.msra.gmra.mxu0 %v2889_v49  ;;  %5153 = vmatpush3.msra.mxu1 %v5506_v4 }
0x10dd   :  { %5120 = vmatpush3.msra.mxu0 %v5527_v9  ;;  %5154 = vmatprep.subr.mxu1 %v5454_v3 }
0x10de   :  { %5121 = vmatprep.subr.mxu0 %v5454_v3  ;;  %5155 = vmatpush3.msra.mxu1 %v5508_v5 }
0x10df   :  { %5122 = vmatpush3.msra.mxu0 %v5530_v10  ;;  %5156 = vmatprep.subr.mxu1 %v5454_v3 }
0x10e0   :  { %5123 = vmatprep.subr.mxu0 %v5454_v3  ;;  %5157 = vmatpush3.msra.mxu1 %v5510_v6 }
0x10e1   :  { %5124 = vmatpush3.msra.mxu0 %v5533_v11  ;;  %5158 = vmatprep.subr.mxu1 %v5454_v3 }
0x10e2   :  { %5125 = vmatprep.subr.mxu0 %v5454_v3  ;;  %5127 = vmatprep.mubr.msk.f32.mxu0 %vm5455_vm1, %v5454_v3 }
0x10e3   :  { %5126 = vmatpush3.msra.mxu0 %v5537_v12  ;;  %5159 = vmatpush3.msra.mxu1 %v5519_v8 }
0x10e4   :  { %5160 = vmatprep.mubr.msk.f32.mxu1 %vm5455_vm1, %v5454_v3  ;;  %5128 = vmatmul.mubr.f32.vlgmr.msra.gmra.mxu0 %v2886_v46 }
0x10e5   :  { %5141 = vmatprep.subr.mxu0 %v5454_v3  ;;  %5161 = vmatmul.mubr.f32.vlgmr.msra.gmra.mxu1 %v2885_v45 }
0x10e6   :  { %5142 = vmatpush3.msra.mxu0 %v5540_v13  ;;  %5149 = vmatprep.mubr.msk.f32.mxu0 %vm5455_vm1, %v5454_v3 }
0x10e7   :  { %5143 = vmatprep.subr.mxu0 %v5454_v3  ;;  %5174 = vmatprep.subr.mxu1 %v5454_v3 }
0x10e8   :  { %5144 = vmatpush3.msra.mxu0 %v5544_v14  ;;  %5175 = vmatpush3.msra.mxu1 %v5561_v21 }
0x10e9   :  { %5145 = vmatprep.subr.mxu0 %v5454_v3  ;;  %5176 = vmatprep.subr.mxu1 %v5454_v3 }
0x10ea   :  { %5146 = vmatpush3.msra.mxu0 %v5547_v15  ;;  %5177 = vmatpush3.msra.mxu1 %v5563_v22 }
0x10eb   :  { %5147 = vmatprep.subr.mxu0 %v5454_v3  ;;  %5178 = vmatprep.subr.mxu1 %v5454_v3 }
0x10ec   :  { %5148 = vmatpush3.msra.mxu0 %v5551_v16  ;;  %5179 = vmatpush3.msra.mxu1 %v5571_v26 }
0x10ed   :  { %5150 = vmatmul.mubr.f32.vlgmr.msra.gmra.mxu0 %v2885_v45  ;;  %5180 = vmatprep.subr.mxu1 %v5454_v3 }
0x10ee   :  { %5181 = vmatpush3.msra.mxu1 %v5575_v28  ;;  %5163 = vmatprep.subr.mxu0 %v5454_v3 }
0x10ef   :  { %5182 = vmatprep.mubr.msk.f32.mxu1 %vm5455_vm1, %v5454_v3  ;;  %5196 = vmatprep.subr.mxu1 %v5454_v3 }
0x10f0   :  { %5164 = vmatpush3.msra.mxu0 %v5506_v4  ;;  %5171 = vmatprep.mubr.msk.f32.mxu0 %vm5455_vm1, %v5454_v3 }
0x10f1   :  { %5165 = vmatprep.subr.mxu0 %v5454_v3 }
0x10f2   :  { %5166 = vmatpush3.msra.mxu0 %v5508_v5 }
0x10f3   :  { %5167 = vmatprep.subr.mxu0 %v5454_v3 }
0x10f4   :  { %5168 = vmatpush3.msra.mxu0 %v5510_v6 }
0x10f5   :  { %5169 = vmatprep.subr.mxu0 %v5454_v3 }
0x10f6   :  { %5170 = vmatpush3.msra.mxu0 %v5519_v8 }
0x10f7   :  { %5185 = vmatprep.subr.mxu0 %v5454_v3 }
0x1193   :  { %v2982_v50 = vpop.f32.mrf.mxu1 }
0x1195   :  { %v5118_v42 = vpop.f32.mrf.mxu1 }
0x119b   :  { %v3139_v51 = vpop.f32.mrf.mxu1 }
0x119c   :  { %v2891_v54 = vpop.f32.mrf.mxu0 }
0x119d   :  { %v5140_v57 = vpop.f32.mrf.mxu1  ;;  %v2983_v61 = vadd.f32 %v2982_v50, %v2891_v54 }
0x119e   :  { %v5107_v58 = vpop.f32.mrf.mxu0 }
0x11a4   :  { %v3062_v40 = vpop.f32.mrf.mxu0 }
0x11a5   :  { %v3297_v59 = vpop.f32.mrf.mxu1  ;;  %v3063_v0 = vadd.f32 %v3062_v40, %v2983_v61 }
0x11a6   :  { %v5129_v62 = vpop.f32.mrf.mxu0 }
0x11a7   :  { %v5162_v63 = vpop.f32.mrf.mxu1  ;;  %v3140_v55 = vadd.f32 %v3139_v51, %v3063_v0 }
0x11ad   :  { %v3222_v56 = vpop.f32.mrf.mxu0 }
0x11ae   :  { %v3223_v2 = vadd.f32 %v3222_v56, %v3140_v55 }
0x11af   :  { %v5151_v18 = vpop.f32.mrf.mxu0 }
0x11b0   :  { %v3298_v53 = vadd.f32 %v3297_v59, %v3223_v2 }
0x11b2   :  { %v3301_v19 = vadd.f32 %v4512_v17, %v3298_v53 }
0x11b4   :  { %5381 = vtanh.f32 %v3301_v19  ;;  %v3316_v25 = vadd.f32 %v3315_v23, %v3301_v19  ;;  %v3307_v52 = vadd.f32 %v3305_v36, %v3301_v19 }
0x11b6   :  { %v4514_v7 = vmul.f32 -1.442695, %v3316_v25  ;;  %v4513_v37 = vmul.f32 -1.442695, %v3307_v52 }
0x11b8   :  { %5383 = vpow2.f32 %v4514_v7 }
0x11c1   :  { %v5382_v20 = vpop.eup %5381 }
0x11c2   :  { %3325 = vrot.lane.b32.xlu0 %v5382_v20, %s5457_s9 }
0x11c5   :  { %v5384_v30 = vpop.eup %5383 }
0x11c6   :  { %v3320_v32 = vadd.f32 1.0, %v5384_v30  ;;  %v4517_v30 = vld [vmem:[%s6290_s0 + $0xc] sm:$0x3] }
0x11c8   :  { %5385 = vrcp.f32 %v3320_v32 }
0x11c9   :  { %5387 = vpow2.f32 %v4513_v37 }
0x11d5   :  { %v5386_v1 = vpop.eup %5385 }
0x11d6   :  { %v5388_v38 = vpop.eup %5387 }
0x11d7   :  { %v3311_v29 = vadd.f32 1.0, %v5388_v38 }
0x11d9   :  { %5389 = vrcp.f32 %v3311_v29 }
0x11e6   :  { %v5390_v39 = vpop.eup %5389 }
0x11e7   :  { %v3314_v27 = vmul.f32 %v5390_v39, %v6023_v31 }
0x1234   :  { %v3326_v34 = vpop.permute.xlu0 %3325 }
0x1235   :  { %v3328_v35 = vmul.f32 %v5386_v1, %v3326_v34 }
0x1237   :  { %3330 = vrot.lane.b32.xlu0 %v3328_v35, %s5456_s1 }
0x12a9   :  { %v3331_v43 = vpop.permute.xlu0 %3330 }
0x12aa   :  { %v6121_v44 = vadd.f32 %v3331_v43, %v3314_v27 }
0x12ac   :  { %5391 = vtanh.f32 %v6121_v44  ;;  %3335 = vrot.lane.b32.xlu1 %v6121_v44, %s5456_s1 }
0x12b9   :  { %v5392_v24 = vpop.eup %5391 }
0x12ba   :  { %3352 = vrot.lane.b32.xlu1 %v5392_v24, %s5458_s12 }
0x131e   :  { %v6127_v45 = vpop.permute.xlu1 %3335 }
0x131f   :  { %v3338_v46 = vmul.f32 %v6034_v33, %v6127_v45  ;;  %v3852_v57 = vmul.f32 %v6043_v41, %v6127_v45  ;;  %v3865_v36 = vmul.f32 %v6017_v60, %v6127_v45 }
0x1321   :  { %3340 = vrot.lane.b32.xlu0 %v3338_v46, %s5457_s9 }
0x132c   :  { %v3353_v51 = vpop.permute.xlu1 %3352 }
0x1393   :  { %v3341_v47 = vpop.permute.xlu0 %3340 }
0x1394   :  { %v3343_v31 = vadd.f32 %v3341_v47, %v3301_v19 }
0x1396   :  { %v4515_v48 = vmul.f32 -1.442695, %v3343_v31 }
0x1398   :  { %5393 = vpow2.f32 %v4515_v48 }
0x13a5   :  { %v5394_v49 = vpop.eup %5393 }
0x13a6   :  { %v3347_v50 = vadd.f32 1.0, %v5394_v49 }
0x13a8   :  { %5395 = vrcp.f32 %v3347_v50 }
0x13b5   :  { %v5396_v42 = vpop.eup %5395 }
0x13b6   :  { %v3355_v54 = vmul.f32 %v5396_v42, %v3353_v51 }
0x13b8   :  { %3357 = vrot.lane.b32.xlu0 %v3355_v54, %s5458_s12 }
0x13bc   :  { %3854 = vrot.lane.b32.xlu0 %v3852_v57, %s5456_s1 }
0x142a   :  { %v3358_v58 = vpop.permute.xlu0 %3357 }
0x142b   :  { %4516 = vst.msk [vmem:[%s6295_s5 + $0xa] sm:$0x3] %vm27_vm0, %v3358_v58  ;;  %v3364_v40 = vsel %vm40_vm2, %v3358_v58, 0 }
0x142c   :  { %v3435_v59 = vand.u32 4294901760, %v3364_v40 }
0x142e   :  { %v3436_v61 = vsub.f32 %v3364_v40, %v3435_v59  ;;  %5183 = vmatmul.mubr.f32.vlgmr.msra.gmra.mxu1 %v3435_v59  ;;  %v3855_v24 = vpop.permute.xlu0 %3854 }
0x142f   :  { %5197 = vmatpush3.msra.mxu1 %v5506_v4  ;;  %5204 = vmatprep.mubr.msk.f32.mxu1 %vm5455_vm1, %v5454_v3 }
0x1430   :  { %v3437_v62 = vand.u32 4294901760, %v3436_v61  ;;  %5198 = vmatprep.subr.mxu1 %v5454_v3 }
0x1431   :  { %5199 = vmatpush3.msra.mxu1 %v5508_v5 }
0x1432   :  { %v3438_v63 = vsub.f32 %v3436_v61, %v3437_v62  ;;  %5200 = vmatprep.subr.mxu1 %v5454_v3 }
0x1433   :  { %5201 = vmatpush3.msra.mxu1 %v5510_v6 }
0x1434   :  { %5202 = vmatprep.subr.mxu1 %v5454_v3  ;;  %v3439_v0 = vand.u32 4294901760, %v3438_v63 }
0x1435   :  { %5203 = vmatpush3.msra.mxu1 %v5519_v8 }
0x1436   :  { %5205 = vmatmul.mubr.f32.vlgmr.msra.gmra.mxu1 %v3437_v62  ;;  %5218 = vmatprep.subr.mxu1 %v5454_v3 }
0x1437   :  { %5172 = vmatmul.mubr.f32.vlgmr.msra.gmra.mxu0 %v3439_v0  ;;  %5219 = vmatpush3.msra.mxu1 %v5506_v4 }
0x1438   :  { %5186 = vmatpush3.msra.mxu0 %v5527_v9  ;;  %5220 = vmatprep.subr.mxu1 %v5454_v3 }
0x1439   :  { %5187 = vmatprep.subr.mxu0 %v5454_v3  ;;  %5221 = vmatpush3.msra.mxu1 %v5508_v5 }
0x143a   :  { %5188 = vmatpush3.msra.mxu0 %v5530_v10  ;;  %5222 = vmatprep.subr.mxu1 %v5454_v3 }
0x143b   :  { %5189 = vmatprep.subr.mxu0 %v5454_v3  ;;  %5223 = vmatpush3.msra.mxu1 %v5510_v6 }
0x143c   :  { %5190 = vmatpush3.msra.mxu0 %v5533_v11  ;;  %5224 = vmatprep.subr.mxu1 %v5454_v3 }
0x143d   :  { %5191 = vmatprep.subr.mxu0 %v5454_v3  ;;  %5193 = vmatprep.mubr.msk.f32.mxu0 %vm5455_vm1, %v5454_v3 }
0x143e   :  { %5192 = vmatpush3.msra.mxu0 %v5537_v12  ;;  %5225 = vmatpush3.msra.mxu1 %v5519_v8 }
0x143f   :  { %5226 = vmatprep.mubr.msk.f32.mxu1 %vm5455_vm1, %v5454_v3  ;;  %5194 = vmatmul.mubr.f32.vlgmr.msra.gmra.mxu0 %v3436_v61 }
0x1440   :  { %5207 = vmatprep.subr.mxu0 %v5454_v3  ;;  %5227 = vmatmul.mubr.f32.vlgmr.msra.gmra.mxu1 %v3435_v59 }
0x1441   :  { %5208 = vmatpush3.msra.mxu0 %v5540_v13  ;;  %5215 = vmatprep.mubr.msk.f32.mxu0 %vm5455_vm1, %v5454_v3 }
0x1442   :  { %5209 = vmatprep.subr.mxu0 %v5454_v3  ;;  %5240 = vmatprep.subr.mxu1 %v5454_v3 }
0x1443   :  { %5210 = vmatpush3.msra.mxu0 %v5544_v14  ;;  %5241 = vmatpush3.msra.mxu1 %v5561_v21 }
0x1444   :  { %5211 = vmatprep.subr.mxu0 %v5454_v3  ;;  %5242 = vmatprep.subr.mxu1 %v5454_v3 }
0x1445   :  { %5212 = vmatpush3.msra.mxu0 %v5547_v15  ;;  %5243 = vmatpush3.msra.mxu1 %v5563_v22 }
0x1446   :  { %5213 = vmatprep.subr.mxu0 %v5454_v3  ;;  %5244 = vmatprep.subr.mxu1 %v5454_v3 }
0x1447   :  { %5214 = vmatpush3.msra.mxu0 %v5551_v16  ;;  %5245 = vmatpush3.msra.mxu1 %v5571_v26 }
0x1448   :  { %5216 = vmatmul.mubr.f32.vlgmr.msra.gmra.mxu0 %v3435_v59  ;;  %5246 = vmatprep.subr.mxu1 %v5454_v3 }
0x1449   :  { %5247 = vmatpush3.msra.mxu1 %v5575_v28  ;;  %5229 = vmatprep.subr.mxu0 %v5454_v3 }
0x144a   :  { %5248 = vmatprep.mubr.msk.f32.mxu1 %vm5455_vm1, %v5454_v3  ;;  %5262 = vmatprep.subr.mxu1 %v5454_v3 }
0x144b   :  { %5230 = vmatpush3.msra.mxu0 %v5506_v4  ;;  %5237 = vmatprep.mubr.msk.f32.mxu0 %vm5455_vm1, %v5454_v3 }
0x144c   :  { %5231 = vmatprep.subr.mxu0 %v5454_v3 }
0x144d   :  { %5232 = vmatpush3.msra.mxu0 %v5508_v5 }
0x144e   :  { %5233 = vmatprep.subr.mxu0 %v5454_v3 }
0x144f   :  { %5234 = vmatpush3.msra.mxu0 %v5510_v6 }
0x1450   :  { %5235 = vmatprep.subr.mxu0 %v5454_v3 }
0x1451   :  { %5236 = vmatpush3.msra.mxu0 %v5519_v8 }
0x1452   :  { %5251 = vmatprep.subr.mxu0 %v5454_v3 }
0x14ee   :  { %v3532_v21 = vpop.f32.mrf.mxu1 }
0x14f0   :  { %v5184_v22 = vpop.f32.mrf.mxu1 }
0x14f6   :  { %v3689_v26 = vpop.f32.mrf.mxu1 }
0x14f7   :  { %v3441_v28 = vpop.f32.mrf.mxu0 }
0x14f8   :  { %v5206_v55 = vpop.f32.mrf.mxu1  ;;  %v3533_v18 = vadd.f32 %v3532_v21, %v3441_v28 }
0x14f9   :  { %v5173_v56 = vpop.f32.mrf.mxu0 }
0x14ff   :  { %v3612_v2 = vpop.f32.mrf.mxu0 }
0x1500   :  { %v3847_v17 = vpop.f32.mrf.mxu1  ;;  %v3613_v20 = vadd.f32 %v3612_v2, %v3533_v18 }
0x1501   :  { %v5195_v53 = vpop.f32.mrf.mxu0 }
0x1502   :  { %v5228_v19 = vpop.f32.mrf.mxu1  ;;  %v3690_v23 = vadd.f32 %v3689_v26, %v3613_v20 }
0x1508   :  { %v3772_v25 = vpop.f32.mrf.mxu0 }
0x1509   :  { %v3773_v7 = vadd.f32 %v3772_v25, %v3690_v23 }
0x150a   :  { %v5217_v32 = vpop.f32.mrf.mxu0 }
0x150b   :  { %v3848_v1 = vadd.f32 %v3847_v17, %v3773_v7 }
0x150d   :  { %v3851_v34 = vadd.f32 %v4517_v30, %v3848_v1 }
0x150f   :  { %5397 = vtanh.f32 %v3851_v34  ;;  %v3866_v52 = vadd.f32 %v3865_v36, %v3851_v34  ;;  %v3857_v46 = vadd.f32 %v3855_v24, %v3851_v34 }
0x1511   :  { %v4519_v37 = vmul.f32 -1.442695, %v3866_v52  ;;  %v4518_v47 = vmul.f32 -1.442695, %v3857_v46 }
0x1513   :  { %5399 = vpow2.f32 %v4519_v37 }
0x151c   :  { %v5398_v35 = vpop.eup %5397 }
0x151d   :  { %3875 = vrot.lane.b32.xlu1 %v5398_v35, %s5457_s9 }
0x1520   :  { %v5400_v38 = vpop.eup %5399 }
0x1521   :  { %v3870_v29 = vadd.f32 1.0, %v5400_v38 }
0x1523   :  { %5401 = vrcp.f32 %v3870_v29 }
0x1524   :  { %5403 = vpow2.f32 %v4518_v47 }
0x1530   :  { %v5402_v39 = vpop.eup %5401 }
0x1531   :  { %v5404_v31 = vpop.eup %5403 }
0x1532   :  { %v3861_v48 = vadd.f32 1.0, %v5404_v31 }
0x1534   :  { %5405 = vrcp.f32 %v3861_v48 }
0x1541   :  { %v5406_v49 = vpop.eup %5405 }
0x1542   :  { %v3864_v45 = vmul.f32 %v5406_v49, %v6121_v44 }
0x158f   :  { %v3876_v27 = vpop.permute.xlu1 %3875 }
0x1590   :  { %v3878_v43 = vmul.f32 %v5402_v39, %v3876_v27 }
0x1592   :  { %3880 = vrot.lane.b32.xlu1 %v3878_v43, %s5456_s1 }
0x1604   :  { %v3881_v50 = vpop.permute.xlu1 %3880 }
0x1605   :  { %v6209_v42 = vadd.f32 %v3881_v50, %v3864_v45 }
0x1607   :  { %5407 = vtanh.f32 %v6209_v42  ;;  %3885 = vrot.lane.b32.xlu0 %v6209_v42, %s5456_s1 }
0x1614   :  { %v5408_v51 = vpop.eup %5407 }
0x1615   :  { %3902 = vrot.lane.b32.xlu0 %v5408_v51, %s5458_s12 }
0x1679   :  { %v6215_v54 = vpop.permute.xlu0 %3885 }
0x167a   :  { %v3888_v57 = vmul.f32 %v6034_v33, %v6215_v54  ;;  %v4402_v21 = vmul.f32 %v6043_v41, %v6215_v54  ;;  %v4415_v7 = vmul.f32 %v6017_v60, %v6215_v54 }
0x167c   :  { %3890 = vrot.lane.b32.xlu1 %v3888_v57, %s5457_s9 }
0x1687   :  { %v3903_v63 = vpop.permute.xlu0 %3902 }
0x16ee   :  { %v3891_v58 = vpop.permute.xlu1 %3890 }
0x16ef   :  { %v3893_v44 = vadd.f32 %v3891_v58, %v3851_v34 }
0x16f1   :  { %v4520_v40 = vmul.f32 -1.442695, %v3893_v44 }
0x16f3   :  { %5409 = vpow2.f32 %v4520_v40 }
0x1700   :  { %v5410_v59 = vpop.eup %5409 }
0x1701   :  { %v3897_v61 = vadd.f32 1.0, %v5410_v59 }
0x1703   :  { %5411 = vrcp.f32 %v3897_v61 }
0x1710   :  { %v5412_v62 = vpop.eup %5411 }
0x1711   :  { %v3905_v0 = vmul.f32 %v5412_v62, %v3903_v63 }
0x1713   :  { %3907 = vrot.lane.b32.xlu1 %v3905_v0, %s5458_s12 }
0x1717   :  { %4404 = vrot.lane.b32.xlu1 %v4402_v21, %s5456_s1 }
0x1785   :  { %v3908_v22 = vpop.permute.xlu1 %3907 }
0x1786   :  { %4521 = vst.msk [vmem:[%s6295_s5 + $0xc] sm:$0x3] %vm27_vm0, %v3908_v22  ;;  %v3914_v26 = vsel %vm40_vm2, %v3908_v22, 0 }
0x1787   :  { %v3985_v28 = vand.u32 4294901760, %v3914_v26 }
0x1789   :  { %v3986_v55 = vsub.f32 %v3914_v26, %v3985_v28  ;;  %5249 = vmatmul.mubr.f32.vlgmr.msra.gmra.mxu1 %v3985_v28  ;;  %v4405_v37 = vpop.permute.xlu1 %4404 }
0x178a   :  { %5263 = vmatpush3.msra.mxu1 %v5506_v4  ;;  %5270 = vmatprep.mubr.msk.f32.mxu1 %vm5455_vm1, %v5454_v3 }
0x178b   :  { %v3987_v56 = vand.u32 4294901760, %v3986_v55  ;;  %5264 = vmatprep.subr.mxu1 %v5454_v3 }
0x178c   :  { %5265 = vmatpush3.msra.mxu1 %v5508_v5 }
0x178d   :  { %v3988_v41 = vsub.f32 %v3986_v55, %v3987_v56  ;;  %5266 = vmatprep.subr.mxu1 %v5454_v3 }
0x178e   :  { %5267 = vmatpush3.msra.mxu1 %v5510_v6 }
0x178f   :  { %5268 = vmatprep.subr.mxu1 %v5454_v3  ;;  %v3989_v2 = vand.u32 4294901760, %v3988_v41 }
0x1790   :  { %5269 = vmatpush3.msra.mxu1 %v5519_v8 }
0x1791   :  { %5271 = vmatmul.mubr.f32.vlgmr.msra.gmra.mxu1 %v3987_v56  ;;  %5284 = vmatprep.subr.mxu1 %v5454_v3 }
0x1792   :  { %5238 = vmatmul.mubr.f32.vlgmr.msra.gmra.mxu0 %v3989_v2  ;;  %5285 = vmatpush3.msra.mxu1 %v5506_v4 }
0x1793   :  { %5252 = vmatpush3.msra.mxu0 %v5527_v9  ;;  %5286 = vmatprep.subr.mxu1 %v5454_v3 }
0x1794   :  { %5253 = vmatprep.subr.mxu0 %v5454_v3  ;;  %5287 = vmatpush3.msra.mxu1 %v5508_v5 }
0x1795   :  { %5254 = vmatpush3.msra.mxu0 %v5530_v10  ;;  %5288 = vmatprep.subr.mxu1 %v5454_v3 }
0x1796   :  { %5255 = vmatprep.subr.mxu0 %v5454_v3  ;;  %5289 = vmatpush3.msra.mxu1 %v5510_v6 }
0x1797   :  { %5256 = vmatpush3.msra.mxu0 %v5533_v11  ;;  %5290 = vmatprep.subr.mxu1 %v5454_v3 }
0x1798   :  { %5257 = vmatprep.subr.mxu0 %v5454_v3  ;;  %5259 = vmatprep.mubr.msk.f32.mxu0 %vm5455_vm1, %v5454_v3 }
0x1799   :  { %5258 = vmatpush3.msra.mxu0 %v5537_v12  ;;  %5291 = vmatpush3.msra.mxu1 %v5519_v8 }
0x179a   :  { %5292 = vmatprep.mubr.msk.f32.mxu1 %vm5455_vm1, %v5454_v3  ;;  %5260 = vmatmul.mubr.f32.vlgmr.msra.gmra.mxu0 %v3986_v55 }
0x179b   :  { %5273 = vmatprep.subr.mxu0 %v5454_v3  ;;  %5293 = vmatmul.mubr.f32.vlgmr.msra.gmra.mxu1 %v3985_v28 }
0x179c   :  { %5274 = vmatpush3.msra.mxu0 %v5540_v13  ;;  %5281 = vmatprep.mubr.msk.f32.mxu0 %vm5455_vm1, %v5454_v3 }
0x179d   :  { %5275 = vmatprep.subr.mxu0 %v5454_v3 }
0x179e   :  { %5276 = vmatpush3.msra.mxu0 %v5544_v14 }
0x179f   :  { %5277 = vmatprep.subr.mxu0 %v5454_v3 }
0x17a0   :  { %5278 = vmatpush3.msra.mxu0 %v5547_v15 }
0x17a1   :  { %5279 = vmatprep.subr.mxu0 %v5454_v3  ;;  %v4522_v3 = vld [vmem:[%s6290_s0 + $0xe] sm:$0x3]  ;;  %s5459_s0 = smov [#allocation4]  }
0x17a2   :  { %5280 = vmatpush3.msra.mxu0 %v5551_v16 }
0x17a3   :  { %5282 = vmatmul.mubr.f32.vlgmr.msra.gmra.mxu0 %v3985_v28 }
0x1849   :  { %v4082_v4 = vpop.f32.mrf.mxu1 }
0x184b   :  { %v5250_v5 = vpop.f32.mrf.mxu1 }
0x1851   :  { %v4239_v6 = vpop.f32.mrf.mxu1 }
0x1852   :  { %v3991_v8 = vpop.f32.mrf.mxu0 }
0x1853   :  { %v5272_v9 = vpop.f32.mrf.mxu1  ;;  %v4083_v13 = vadd.f32 %v4082_v4, %v3991_v8 }
0x1854   :  { %v5239_v10 = vpop.f32.mrf.mxu0 }
0x185a   :  { %v4162_v11 = vpop.f32.mrf.mxu0 }
0x185b   :  { %v4397_v12 = vpop.f32.mrf.mxu1  ;;  %v4163_v18 = vadd.f32 %v4162_v11, %v4083_v13 }
0x185c   :  { %v5261_v17 = vpop.f32.mrf.mxu0 }
0x185d   :  { %v5294_v14 = vpop.f32.mrf.mxu1  ;;  %v4240_v53 = vadd.f32 %v4239_v6, %v4163_v18 }
0x1863   :  { %v4322_v19 = vpop.f32.mrf.mxu0 }
0x1864   :  { %v4323_v15 = vadd.f32 %v4322_v19, %v4240_v53 }
0x1865   :  { %v5283_v16 = vpop.f32.mrf.mxu0 }
0x1866   :  { %v4398_v20 = vadd.f32 %v4397_v12, %v4323_v15 }
0x1868   :  { %v4401_v23 = vadd.f32 %v4522_v3, %v4398_v20 }
0x186a   :  { %5413 = vtanh.f32 %v4401_v23  ;;  %v4416_v30 = vadd.f32 %v4415_v7, %v4401_v23  ;;  %v4407_v38 = vadd.f32 %v4405_v37, %v4401_v23 }
0x186c   :  { %v4524_v32 = vmul.f32 -1.442695, %v4416_v30  ;;  %v4523_v29 = vmul.f32 -1.442695, %v4407_v38 }
0x186e   :  { %5415 = vpow2.f32 %v4524_v32 }
0x1877   :  { %v5414_v25 = vpop.eup %5413 }
0x1878   :  { %4425 = vrot.lane.b32.xlu0 %v5414_v25, %s5457_s9 }
0x187b   :  { %v5416_v1 = vpop.eup %5415 }
0x187c   :  { %v4420_v34 = vadd.f32 1.0, %v5416_v1 }
0x187e   :  { %5417 = vrcp.f32 %v4420_v34 }
0x187f   :  { %5419 = vpow2.f32 %v4523_v29 }
0x188b   :  { %v5418_v35 = vpop.eup %5417 }
0x188c   :  { %v5420_v39 = vpop.eup %5419 }
0x188d   :  { %v4411_v27 = vadd.f32 1.0, %v5420_v39 }
0x188f   :  { %5421 = vrcp.f32 %v4411_v27 }
0x189c   :  { %v5422_v43 = vpop.eup %5421 }
0x189d   :  { %v4414_v60 = vmul.f32 %v5422_v43, %v6209_v42 }
0x18ea   :  { %v4426_v36 = vpop.permute.xlu0 %4425 }
0x18eb   :  { %v4428_v52 = vmul.f32 %v5418_v35, %v4426_v36 }
0x18ed   :  { %4430 = vrot.lane.b32.xlu0 %v4428_v52, %s5456_s1 }
0x195f   :  { %v4431_v24 = vpop.permute.xlu0 %4430 }
0x1960   :  { %v4433_v46 = vadd.f32 %v4431_v24, %v4414_v60 }
0x1962   :  { %5423 = vtanh.f32 %v4433_v46  ;;  %4435 = vrot.lane.b32.xlu1 %v4433_v46, %s5456_s1  ;;  %s4476_s1 = sshll.u32 %s5459_s0, 4  ;;  %s4477_s1 = int_to_ptr.vmem [resolvable:$true] %s4476_s1 }
0x1963   :  { %s5432_s24 = scalar_lea.vmem %s4477_s1, 32  ;;  %p5437_p1 = scmp.lt.s32.totalorder %s4477_s1, %s4477_s1 }
0x1964   :  { %p5433_p0 = scmp.ne.s32.totalorder %s4477_s1, %s5432_s24  ;;  %p5438_p2 = scmp.lt.s32.totalorder %s5432_s24, %s5432_s24 }
0x1966   :  { %p5439_p3 = por %p5438_p2, %p5437_p1 }
0x1968   :  { %p5440_p4 = pnand %p5439_p3, %p5433_p0 }
0x196f   :  { %v5424_v47 = vpop.eup %5423 }
0x1970   :  { %4452 = vrot.lane.b32.xlu1 %v5424_v47, %s5458_s12 }
0x19d4   :  { %v4436_v31 = vpop.permute.xlu1 %4435 }
0x19d5   :  { %v4438_v48 = vmul.f32 %v6034_v33, %v4436_v31  ;;  %4463 = vst.msk [vmem:[#allocation3] sm:$0x3] %vm27_vm0, %v4436_v31  ;;  %4467 = vst.msk [vmem:[#allocation4] sm:$0x3] %vm27_vm0, %v4436_v31 }
0x19d7   :  { %4440 = vrot.lane.b32.xlu0 %v4438_v48, %s5457_s9 }
0x1a49   :  { %v4441_v49 = vpop.permute.xlu0 %4440 }
0x1a4a   :  { %v4443_v45 = vadd.f32 %v4441_v49, %v4401_v23 }
0x1a4c   :  { %v4525_v50 = vmul.f32 -1.442695, %v4443_v45 }
0x1a4e   :  { %5425 = vpow2.f32 %v4525_v50 }
0x1a5b   :  { %v5426_v42 = vpop.eup %5425 }
0x1a5c   :  { %v4447_v51 = vadd.f32 1.0, %v5426_v42 }
0x1a5e   :  { %5427 = vrcp.f32 %v4447_v51 }
0x1a5f   :  { %5443 = shalt.err (!%p5440_p4)
}
0x1a60   :  { %4479 = dma.vmem_to_hbm [thread:$0]  %s4477_s1, 32, %s6296_s6, [#allocation5]   ;;  %v4453_v54 = vpop.permute.xlu1 %4452 }
0x1a6b   :  { %v5428_v33 = vpop.eup %5427 }
0x1a6c   :  { %v4455_v57 = vmul.f32 %v5428_v33, %v4453_v54 }
0x1a6e   :  { %4457 = vrot.lane.b32.xlu0 %v4455_v57, %s5458_s12 }
0x1ae0   :  { %v4458_v58 = vpop.permute.xlu0 %4457 }
0x1ae1   :  { %4526 = vst.msk [vmem:[%s6295_s5 + $0xe] sm:$0x3] %vm27_vm0, %v4458_v58  ;;  %4462 = vst.msk [vmem:[#allocation2] sm:$0x3] %vm27_vm0, %v4458_v58 }
0x1ae2   :  { %5452 = dma.done.wait [#allocation5], 32  }
0x1ae3   :  { %5453 = vsyncadd [#allocation5], 4294967264 }
0x1ae4   :  { %4485 = vsyncpa [#allocation5], 1 }

</bundles_post_ra>
